<compile_context>
chip_gen: v5e
topology: v5e:2x2
jax: 0.10.0
libtpu: 0.0.40
codegen_flags: <defaults>
</compile_context>

<pallas_src>
import functools

import jax
import jax.numpy as jnp
from jax.experimental import pallas as pl
from jax.experimental.pallas import tpu as pltpu


def _full_spec(shape):
    """Whole-array VMEM block (grid has a single point)."""
    nd = len(shape)
    return pl.BlockSpec(shape, lambda *_, nd=nd: (0,) * nd)


def _emo_kernel(lt_ref, seq_ref, x_ref, *args, num_layers, T, N, H):
    """Fused bi-LSTM stack + FC head.

    args = [w_ih_0, w_hh_0, b_0, ..., w_ih_{L-1}, w_hh_{L-1}, b_{L-1},
            fc_w, fc_b, out_ref, seq_scr]
      w_ih_l : (D_l, 8H) bf16   [fwd | bwd] input weights (transposed)
      w_hh_l : (H, 8H)   bf16   [fwd | bwd] hidden weights (transposed)
      b_l    : (1, 8H)   f32    combined b_ih + b_hh, [fwd | bwd]
      fc_w   : (2H, Cpad) bf16  lane-padded FC weight
      fc_b   : (1, Cpad)  f32
      seq_scr: (T*N, 2H)  f32   current layer's output, row = t*N + n
    """
    layer_refs = args[:3 * num_layers]
    fc_w_ref = args[3 * num_layers]
    fc_b_ref = args[3 * num_layers + 1]
    out_ref = args[3 * num_layers + 2]
    seq_scr = args[3 * num_layers + 3]

    H4 = 4 * H

    # Validity masks (t < seq_len), hoisted out of all loops.
    seq_v = seq_ref[...]                                    # (N, 1) int32
    masks = [seq_v > t for t in range(T)]                   # list of (N, 1) bool
    zero = jnp.zeros((N, H), jnp.float32)

    x_prev = x_ref[...]                                     # (T*N, D_in) f32

    for layer in range(num_layers):
        w_ih = layer_refs[3 * layer][...]                   # (D_l, 8H) bf16
        w_hh = layer_refs[3 * layer + 1][...]               # (H, 8H)   bf16
        b = layer_refs[3 * layer + 2][...]                  # (1, 8H)   f32

        # Hoisted input projection: all timesteps, both directions, one matmul.
        xg = jnp.dot(x_prev.astype(jnp.bfloat16), w_ih,
                     preferred_element_type=jnp.float32) + b  # (T*N, 8H) f32

        w_hh_f = w_hh[:, :H4]                               # (H, 4H)
        w_hh_b = w_hh[:, H4:]                               # (H, 4H)

        h_f = jnp.zeros((N, H), jnp.float32)
        c_f = jnp.zeros((N, H), jnp.float32)
        h_b = jnp.zeros((N, H), jnp.float32)
        c_b = jnp.zeros((N, H), jnp.float32)

        def cell(gates, c_prev):
            # PyTorch gate order: i, f, g, o
            i = jax.nn.sigmoid(gates[:, 0 * H:1 * H])
            f = jax.nn.sigmoid(gates[:, 1 * H:2 * H])
            g = jnp.tanh(gates[:, 2 * H:3 * H])
            o = jax.nn.sigmoid(gates[:, 3 * H:4 * H])
            c_new = f * c_prev + i * g
            h_new = o * jnp.tanh(c_new)
            return h_new, c_new

        # Fully unrolled time loop; fwd (t = s) and bwd (t = T-1-s) are two
        # independent recurrence chains -> their serial latencies overlap.
        for s in range(T):
            tf = s
            tb = T - 1 - s
            m_f = masks[tf]
            m_b = masks[tb]

            g_f = xg[tf * N:(tf + 1) * N, :H4] + jnp.dot(
                h_f.astype(jnp.bfloat16), w_hh_f,
                preferred_element_type=jnp.float32)
            g_b = xg[tb * N:(tb + 1) * N, H4:] + jnp.dot(
                h_b.astype(jnp.bfloat16), w_hh_b,
                preferred_element_type=jnp.float32)

            hf_new, cf_new = cell(g_f, c_f)
            hb_new, cb_new = cell(g_b, c_b)

            # Packed-sequence semantics: state frozen on padded steps ...
            h_f = jnp.where(m_f, hf_new, h_f)
            c_f = jnp.where(m_f, cf_new, c_f)
            h_b = jnp.where(m_b, hb_new, h_b)
            c_b = jnp.where(m_b, cb_new, c_b)

            # ... and padded outputs are zero (pad_packed_sequence).
            seq_scr[tf * N:(tf + 1) * N, 0:H] = jnp.where(m_f, h_f, zero)
            seq_scr[tb * N:(tb + 1) * N, H:2 * H] = jnp.where(m_b, h_b, zero)

        if layer + 1 < num_layers:
            x_prev = seq_scr[...]                           # feeds next layer

    # out[:, -1, :] of the padded output == rows at t = max(seq_len) - 1.
    last_t = lt_ref[0]
    start = pl.multiple_of(last_t * N, N)
    feat = seq_scr[pl.ds(start, N), :]                      # (N, 2H)

    # FC head (lane-padded to Cpad >= 128 for a dense store).
    out_ref[...] = (jnp.dot(feat.astype(jnp.bfloat16), fc_w_ref[...],
                            preferred_element_type=jnp.float32)
                    + fc_b_ref[...])


def init_params(key, num_layers, emb_dim, hidden_dim, num_classes):
    """Deterministic synthetic parameters with PyTorch-LSTM-like shapes.

    Weights are pre-transposed, fwd/bwd-concatenated, and stored bf16 for the
    MXU; biases stay f32 (b_ih + b_hh combined into one term).
    """
    H = hidden_dim
    bound = 1.0 / (H ** 0.5)
    layers = []
    d_in = emb_dim
    for _ in range(num_layers):
        key, kif, kib, khf, khb, kbf, kbb = jax.random.split(key, 7)
        w_ih_f = jax.random.uniform(kif, (d_in, 4 * H), jnp.float32, -bound, bound)
        w_ih_b = jax.random.uniform(kib, (d_in, 4 * H), jnp.float32, -bound, bound)
        w_hh_f = jax.random.uniform(khf, (H, 4 * H), jnp.float32, -bound, bound)
        w_hh_b = jax.random.uniform(khb, (H, 4 * H), jnp.float32, -bound, bound)
        b_f = jax.random.uniform(kbf, (1, 4 * H), jnp.float32, -bound, bound)
        b_b = jax.random.uniform(kbb, (1, 4 * H), jnp.float32, -bound, bound)
        layers.append({
            "w_ih": jnp.concatenate([w_ih_f, w_ih_b], axis=1).astype(jnp.bfloat16),
            "w_hh": jnp.concatenate([w_hh_f, w_hh_b], axis=1).astype(jnp.bfloat16),
            "b": jnp.concatenate([b_f, b_b], axis=1),
        })
        d_in = 2 * H

    key, kfw, kfb = jax.random.split(key, 3)
    fb = 1.0 / ((2 * H) ** 0.5)
    c_pad = max(128, ((num_classes + 127) // 128) * 128)
    fc_w = jax.random.uniform(kfw, (2 * H, num_classes), jnp.float32, -fb, fb)
    fc_b = jax.random.uniform(kfb, (1, num_classes), jnp.float32, -fb, fb)
    fc_w_pad = jnp.zeros((2 * H, c_pad), jnp.float32).at[:, :num_classes].set(fc_w)
    fc_b_pad = jnp.zeros((1, c_pad), jnp.float32).at[:, :num_classes].set(fc_b)

    return {
        "lstm": layers,
        "fc_w": fc_w_pad.astype(jnp.bfloat16),
        "fc_b": fc_b_pad,
        "num_classes": num_classes,
        "hidden_dim": hidden_dim,
    }


def emo_classifier_forward(params, input_embed, seq_len):
    """
    input_embed: (N, T, emb_dim) f32   (PyTorch batch_first layout)
    seq_len:     (N,) int
    returns logits (N, num_classes) f32
    """
    N, T, D = input_embed.shape
    layers = params["lstm"]
    num_layers = len(layers)
    H = params["hidden_dim"]
    C = params["num_classes"]
    c_pad = params["fc_w"].shape[1]

    # Time-major, then flatten (t, n) -> rows: row = t*N + n.
    x = jnp.transpose(input_embed, (1, 0, 2)).astype(jnp.float32)
    x = jnp.reshape(x, (T * N, D))
    seq = seq_len.astype(jnp.int32).reshape(N, 1)
    last_t = jnp.reshape(jnp.max(seq_len).astype(jnp.int32) - 1, (1,))

    inputs = [seq, x]
    in_specs = [_full_spec((N, 1)), _full_spec((T * N, D))]
    for layer in layers:
        inputs += [layer["w_ih"], layer["w_hh"], layer["b"]]
        in_specs += [_full_spec(tuple(layer["w_ih"].shape)),
                     _full_spec(tuple(layer["w_hh"].shape)),
                     _full_spec(tuple(layer["b"].shape))]
    inputs += [params["fc_w"], params["fc_b"]]
    in_specs += [_full_spec((2 * H, c_pad)), _full_spec((1, c_pad))]

    kernel = functools.partial(_emo_kernel, num_layers=num_layers, T=T, N=N, H=H)

    logits_pad = pl.pallas_call(
        kernel,
        out_shape=jax.ShapeDtypeStruct((N, c_pad), jnp.float32),
        grid_spec=pltpu.PrefetchScalarGridSpec(
            num_scalar_prefetch=1,               # last_t -> SMEM
            grid=(1,),                           # single invocation, no per-step grid
            in_specs=in_specs,
            out_specs=pl.BlockSpec((N, c_pad), lambda *_: (0, 0)),
            scratch_shapes=[pltpu.VMEM((T * N, 2 * H), jnp.float32)],
        ),
        compiler_params=pltpu.CompilerParams(
            dimension_semantics=("arbitrary",)),
    )(last_t, *inputs)

    # Dropout: eval-mode identity (p only acts in training).
    # TODO(synk): training-mode dropout (random masking) is not implemented.
    return logits_pad[:, :C]


if __name__ == "__main__":
    N, T, EMB, HID, LAYERS, CLASSES = 2, 8, 16, 32, 2, 6
    key = jax.random.PRNGKey(0)
    kx, kp = jax.random.split(key)

    input_embed = jax.random.normal(kx, (N, T, EMB), jnp.float32)
    seq_len = jnp.array([T, T - 3], dtype=jnp.int32)   # max(seq_len) == T

    params = init_params(kp, LAYERS, EMB, HID, CLASSES)
    logits = emo_classifier_forward(params, input_embed, seq_len)
    jax.block_until_ready(logits)
    assert logits.shape == (N, CLASSES)
    assert bool(jnp.all(jnp.isfinite(logits)))
    print("KERNEL_OK")
</pallas_src>

<mosaic_0001>
module attributes {stable_mosaic.version = 11 : i64} {
  func.func @_emo_kernel(%arg0: i32, %arg1: memref<1xi32, #tpu.memory_space<smem>>, %arg2: memref<2x1xi32, #tpu.memory_space<vmem>>, %arg3: memref<16x16xf32, #tpu.memory_space<vmem>>, %arg4: memref<16x256xbf16, #tpu.memory_space<vmem>>, %arg5: memref<32x256xbf16, #tpu.memory_space<vmem>>, %arg6: memref<1x256xf32, #tpu.memory_space<vmem>>, %arg7: memref<64x256xbf16, #tpu.memory_space<vmem>>, %arg8: memref<32x256xbf16, #tpu.memory_space<vmem>>, %arg9: memref<1x256xf32, #tpu.memory_space<vmem>>, %arg10: memref<64x128xbf16, #tpu.memory_space<vmem>>, %arg11: memref<1x128xf32, #tpu.memory_space<vmem>>, %arg12: memref<2x128xf32, #tpu.memory_space<vmem>>, %arg13: memref<16x64xf32, #tpu.memory_space<vmem>>) attributes {dimension_semantics = [#tpu.dimension_semantics<arbitrary>], iteration_bounds = array<i64: 1>, scalar_prefetch = 1 : i64, scratch_operands = 1 : i64, tpu.core_type = #tpu.core_type<tc>, window_params = [{pipeline_mode = #tpu.pipeline_mode<synchronous>, transform_indices = @transform_0, window_bounds = array<i64: 2, 1>}, {pipeline_mode = #tpu.pipeline_mode<synchronous>, transform_indices = @transform_1, window_bounds = array<i64: 16, 16>}, {pipeline_mode = #tpu.pipeline_mode<synchronous>, transform_indices = @transform_2, window_bounds = array<i64: 16, 256>}, {pipeline_mode = #tpu.pipeline_mode<synchronous>, transform_indices = @transform_3, window_bounds = array<i64: 32, 256>}, {pipeline_mode = #tpu.pipeline_mode<synchronous>, transform_indices = @transform_4, window_bounds = array<i64: 1, 256>}, {pipeline_mode = #tpu.pipeline_mode<synchronous>, transform_indices = @transform_5, window_bounds = array<i64: 64, 256>}, {pipeline_mode = #tpu.pipeline_mode<synchronous>, transform_indices = @transform_6, window_bounds = array<i64: 32, 256>}, {pipeline_mode = #tpu.pipeline_mode<synchronous>, transform_indices = @transform_7, window_bounds = array<i64: 1, 256>}, {pipeline_mode = #tpu.pipeline_mode<synchronous>, transform_indices = @transform_8, window_bounds = array<i64: 64, 128>}, {pipeline_mode = #tpu.pipeline_mode<synchronous>, transform_indices = @transform_9, window_bounds = array<i64: 1, 128>}, {pipeline_mode = #tpu.pipeline_mode<synchronous>, transform_indices = @transform_10, window_bounds = array<i64: 2, 128>}]} {
    %c0 = arith.constant 0 : index
    %c0_0 = arith.constant 0 : index
    %0 = vector.load %arg2[%c0, %c0_0] : memref<2x1xi32, #tpu.memory_space<vmem>>, vector<2x1xi32>
    %c0_i32 = arith.constant 0 : i32
    %1 = vector.broadcast %c0_i32 : i32 to vector<2x1xi32>
    %2 = arith.cmpi sgt, %0, %1 : vector<2x1xi32>
    %c1_i32 = arith.constant 1 : i32
    %3 = vector.broadcast %c1_i32 : i32 to vector<2x1xi32>
    %4 = arith.cmpi sgt, %0, %3 : vector<2x1xi32>
    %c2_i32 = arith.constant 2 : i32
    %5 = vector.broadcast %c2_i32 : i32 to vector<2x1xi32>
    %6 = arith.cmpi sgt, %0, %5 : vector<2x1xi32>
    %c3_i32 = arith.constant 3 : i32
    %7 = vector.broadcast %c3_i32 : i32 to vector<2x1xi32>
    %8 = arith.cmpi sgt, %0, %7 : vector<2x1xi32>
    %c4_i32 = arith.constant 4 : i32
    %9 = vector.broadcast %c4_i32 : i32 to vector<2x1xi32>
    %10 = arith.cmpi sgt, %0, %9 : vector<2x1xi32>
    %c5_i32 = arith.constant 5 : i32
    %11 = vector.broadcast %c5_i32 : i32 to vector<2x1xi32>
    %12 = arith.cmpi sgt, %0, %11 : vector<2x1xi32>
    %c6_i32 = arith.constant 6 : i32
    %13 = vector.broadcast %c6_i32 : i32 to vector<2x1xi32>
    %14 = arith.cmpi sgt, %0, %13 : vector<2x1xi32>
    %c7_i32 = arith.constant 7 : i32
    %15 = vector.broadcast %c7_i32 : i32 to vector<2x1xi32>
    %16 = arith.cmpi sgt, %0, %15 : vector<2x1xi32>
    %cst = arith.constant 0.000000e+00 : f32
    %17 = vector.broadcast %cst : f32 to vector<2x32xf32>
    %c0_1 = arith.constant 0 : index
    %c0_2 = arith.constant 0 : index
    %18 = vector.load %arg3[%c0_1, %c0_2] : memref<16x16xf32, #tpu.memory_space<vmem>>, vector<16x16xf32>
    %c0_3 = arith.constant 0 : index
    %c0_4 = arith.constant 0 : index
    %19 = vector.load %arg4[%c0_3, %c0_4] : memref<16x256xbf16, #tpu.memory_space<vmem>>, vector<16x256xbf16>
    %c0_5 = arith.constant 0 : index
    %c0_6 = arith.constant 0 : index
    %20 = vector.load %arg5[%c0_5, %c0_6] : memref<32x256xbf16, #tpu.memory_space<vmem>>, vector<32x256xbf16>
    %c0_7 = arith.constant 0 : index
    %c0_8 = arith.constant 0 : index
    %21 = vector.load %arg6[%c0_7, %c0_8] : memref<1x256xf32, #tpu.memory_space<vmem>>, vector<1x256xf32>
    %22 = arith.truncf %18 : vector<16x16xf32> to vector<16x16xbf16>
    %cst_9 = arith.constant dense<0.000000e+00> : vector<16x256xf32>
    %23 = tpu.matmul %22, %19, %cst_9 {dimension_numbers = #tpu.dot_dimension_numbers<[1], [0], [0], [1], [0, 0, 1, 1], [], []>} : vector<16x16xbf16>, vector<16x256xbf16>, vector<16x256xf32> -> vector<16x256xf32>
    %24 = vector.broadcast %21 : vector<1x256xf32> to vector<16x256xf32>
    %25 = arith.addf %23, %24 : vector<16x256xf32>
    %26 = vector.extract_strided_slice %20 {offsets = [0, 0], sizes = [32, 128], strides = [1, 1]} : vector<32x256xbf16> to vector<32x128xbf16>
    %27 = vector.extract_strided_slice %20 {offsets = [0, 128], sizes = [32, 128], strides = [1, 1]} : vector<32x256xbf16> to vector<32x128xbf16>
    %cst_10 = arith.constant 0.000000e+00 : f32
    %28 = vector.broadcast %cst_10 : f32 to vector<2x32xf32>
    %cst_11 = arith.constant 0.000000e+00 : f32
    %29 = vector.broadcast %cst_11 : f32 to vector<2x32xf32>
    %cst_12 = arith.constant 0.000000e+00 : f32
    %30 = vector.broadcast %cst_12 : f32 to vector<2x32xf32>
    %cst_13 = arith.constant 0.000000e+00 : f32
    %31 = vector.broadcast %cst_13 : f32 to vector<2x32xf32>
    %32 = vector.extract_strided_slice %25 {offsets = [0, 0], sizes = [2, 128], strides = [1, 1]} : vector<16x256xf32> to vector<2x128xf32>
    %33 = arith.truncf %28 : vector<2x32xf32> to vector<2x32xbf16>
    %cst_14 = arith.constant dense<0.000000e+00> : vector<2x128xf32>
    %34 = tpu.matmul %33, %26, %cst_14 {dimension_numbers = #tpu.dot_dimension_numbers<[1], [0], [0], [1], [0, 0, 1, 1], [], []>} : vector<2x32xbf16>, vector<32x128xbf16>, vector<2x128xf32> -> vector<2x128xf32>
    %35 = arith.addf %32, %34 : vector<2x128xf32>
    %36 = vector.extract_strided_slice %25 {offsets = [14, 128], sizes = [2, 128], strides = [1, 1]} : vector<16x256xf32> to vector<2x128xf32>
    %37 = arith.truncf %30 : vector<2x32xf32> to vector<2x32xbf16>
    %cst_15 = arith.constant dense<0.000000e+00> : vector<2x128xf32>
    %38 = tpu.matmul %37, %27, %cst_15 {dimension_numbers = #tpu.dot_dimension_numbers<[1], [0], [0], [1], [0, 0, 1, 1], [], []>} : vector<2x32xbf16>, vector<32x128xbf16>, vector<2x128xf32> -> vector<2x128xf32>
    %39 = arith.addf %36, %38 : vector<2x128xf32>
    %40 = vector.extract_strided_slice %35 {offsets = [0, 0], sizes = [2, 32], strides = [1, 1]} : vector<2x128xf32> to vector<2x32xf32>
    %41 = arith.negf %40 : vector<2x32xf32>
    %42 = math.exp %41 : vector<2x32xf32>
    %cst_16 = arith.constant 1.000000e+00 : f32
    %43 = vector.broadcast %cst_16 : f32 to vector<2x32xf32>
    %44 = arith.addf %43, %42 : vector<2x32xf32>
    %45 = arith.divf %43, %44 : vector<2x32xf32>
    %46 = vector.extract_strided_slice %35 {offsets = [0, 32], sizes = [2, 32], strides = [1, 1]} : vector<2x128xf32> to vector<2x32xf32>
    %47 = arith.negf %46 : vector<2x32xf32>
    %48 = math.exp %47 : vector<2x32xf32>
    %cst_17 = arith.constant 1.000000e+00 : f32
    %49 = vector.broadcast %cst_17 : f32 to vector<2x32xf32>
    %50 = arith.addf %49, %48 : vector<2x32xf32>
    %51 = arith.divf %49, %50 : vector<2x32xf32>
    %52 = vector.extract_strided_slice %35 {offsets = [0, 64], sizes = [2, 32], strides = [1, 1]} : vector<2x128xf32> to vector<2x32xf32>
    %53 = math.tanh %52 : vector<2x32xf32>
    %54 = vector.extract_strided_slice %35 {offsets = [0, 96], sizes = [2, 32], strides = [1, 1]} : vector<2x128xf32> to vector<2x32xf32>
    %55 = arith.negf %54 : vector<2x32xf32>
    %56 = math.exp %55 : vector<2x32xf32>
    %cst_18 = arith.constant 1.000000e+00 : f32
    %57 = vector.broadcast %cst_18 : f32 to vector<2x32xf32>
    %58 = arith.addf %57, %56 : vector<2x32xf32>
    %59 = arith.divf %57, %58 : vector<2x32xf32>
    %60 = arith.mulf %51, %29 : vector<2x32xf32>
    %61 = arith.mulf %45, %53 : vector<2x32xf32>
    %62 = arith.addf %60, %61 : vector<2x32xf32>
    %63 = math.tanh %62 : vector<2x32xf32>
    %64 = arith.mulf %59, %63 : vector<2x32xf32>
    %65 = vector.extract_strided_slice %39 {offsets = [0, 0], sizes = [2, 32], strides = [1, 1]} : vector<2x128xf32> to vector<2x32xf32>
    %66 = arith.negf %65 : vector<2x32xf32>
    %67 = math.exp %66 : vector<2x32xf32>
    %cst_19 = arith.constant 1.000000e+00 : f32
    %68 = vector.broadcast %cst_19 : f32 to vector<2x32xf32>
    %69 = arith.addf %68, %67 : vector<2x32xf32>
    %70 = arith.divf %68, %69 : vector<2x32xf32>
    %71 = vector.extract_strided_slice %39 {offsets = [0, 32], sizes = [2, 32], strides = [1, 1]} : vector<2x128xf32> to vector<2x32xf32>
    %72 = arith.negf %71 : vector<2x32xf32>
    %73 = math.exp %72 : vector<2x32xf32>
    %cst_20 = arith.constant 1.000000e+00 : f32
    %74 = vector.broadcast %cst_20 : f32 to vector<2x32xf32>
    %75 = arith.addf %74, %73 : vector<2x32xf32>
    %76 = arith.divf %74, %75 : vector<2x32xf32>
    %77 = vector.extract_strided_slice %39 {offsets = [0, 64], sizes = [2, 32], strides = [1, 1]} : vector<2x128xf32> to vector<2x32xf32>
    %78 = math.tanh %77 : vector<2x32xf32>
    %79 = vector.extract_strided_slice %39 {offsets = [0, 96], sizes = [2, 32], strides = [1, 1]} : vector<2x128xf32> to vector<2x32xf32>
    %80 = arith.negf %79 : vector<2x32xf32>
    %81 = math.exp %80 : vector<2x32xf32>
    %cst_21 = arith.constant 1.000000e+00 : f32
    %82 = vector.broadcast %cst_21 : f32 to vector<2x32xf32>
    %83 = arith.addf %82, %81 : vector<2x32xf32>
    %84 = arith.divf %82, %83 : vector<2x32xf32>
    %85 = arith.mulf %76, %31 : vector<2x32xf32>
    %86 = arith.mulf %70, %78 : vector<2x32xf32>
    %87 = arith.addf %85, %86 : vector<2x32xf32>
    %88 = math.tanh %87 : vector<2x32xf32>
    %89 = arith.mulf %84, %88 : vector<2x32xf32>
    %90 = vector.shape_cast %2 : vector<2x1xi1> to vector<2x1xi1>
    %91 = vector.broadcast %90 : vector<2x1xi1> to vector<2x32xi1>
    %92 = arith.select %91, %64, %28 : vector<2x32xi1>, vector<2x32xf32>
    %93 = vector.shape_cast %2 : vector<2x1xi1> to vector<2x1xi1>
    %94 = vector.broadcast %93 : vector<2x1xi1> to vector<2x32xi1>
    %95 = arith.select %94, %62, %29 : vector<2x32xi1>, vector<2x32xf32>
    %96 = vector.shape_cast %16 : vector<2x1xi1> to vector<2x1xi1>
    %97 = vector.broadcast %96 : vector<2x1xi1> to vector<2x32xi1>
    %98 = arith.select %97, %89, %30 : vector<2x32xi1>, vector<2x32xf32>
    %99 = vector.shape_cast %16 : vector<2x1xi1> to vector<2x1xi1>
    %100 = vector.broadcast %99 : vector<2x1xi1> to vector<2x32xi1>
    %101 = arith.select %100, %87, %31 : vector<2x32xi1>, vector<2x32xf32>
    %102 = vector.shape_cast %2 : vector<2x1xi1> to vector<2x1xi1>
    %103 = vector.broadcast %102 : vector<2x1xi1> to vector<2x32xi1>
    %104 = arith.select %103, %92, %17 : vector<2x32xi1>, vector<2x32xf32>
    %c0_22 = arith.constant 0 : index
    %c0_23 = arith.constant 0 : index
    %105 = vector.load %arg13[%c0_22, %c0_23] : memref<16x64xf32, #tpu.memory_space<vmem>>, vector<2x32xf32>
    tpu.vector_store %arg13[%c0_22, %c0_23], %104 {strides = array<i32>} : memref<16x64xf32, #tpu.memory_space<vmem>>, vector<2x32xf32>,
    %106 = vector.shape_cast %16 : vector<2x1xi1> to vector<2x1xi1>
    %107 = vector.broadcast %106 : vector<2x1xi1> to vector<2x32xi1>
    %108 = arith.select %107, %98, %17 : vector<2x32xi1>, vector<2x32xf32>
    %c14 = arith.constant 14 : index
    %c32 = arith.constant 32 : index
    %109 = vector.load %arg13[%c14, %c32] : memref<16x64xf32, #tpu.memory_space<vmem>>, vector<2x32xf32>
    tpu.vector_store %arg13[%c14, %c32], %108 {strides = array<i32>} : memref<16x64xf32, #tpu.memory_space<vmem>>, vector<2x32xf32>,
    %110 = vector.extract_strided_slice %25 {offsets = [2, 0], sizes = [2, 128], strides = [1, 1]} : vector<16x256xf32> to vector<2x128xf32>
    %111 = arith.truncf %92 : vector<2x32xf32> to vector<2x32xbf16>
    %cst_24 = arith.constant dense<0.000000e+00> : vector<2x128xf32>
    %112 = tpu.matmul %111, %26, %cst_24 {dimension_numbers = #tpu.dot_dimension_numbers<[1], [0], [0], [1], [0, 0, 1, 1], [], []>} : vector<2x32xbf16>, vector<32x128xbf16>, vector<2x128xf32> -> vector<2x128xf32>
    %113 = arith.addf %110, %112 : vector<2x128xf32>
    %114 = vector.extract_strided_slice %25 {offsets = [12, 128], sizes = [2, 128], strides = [1, 1]} : vector<16x256xf32> to vector<2x128xf32>
    %115 = arith.truncf %98 : vector<2x32xf32> to vector<2x32xbf16>
    %cst_25 = arith.constant dense<0.000000e+00> : vector<2x128xf32>
    %116 = tpu.matmul %115, %27, %cst_25 {dimension_numbers = #tpu.dot_dimension_numbers<[1], [0], [0], [1], [0, 0, 1, 1], [], []>} : vector<2x32xbf16>, vector<32x128xbf16>, vector<2x128xf32> -> vector<2x128xf32>
    %117 = arith.addf %114, %116 : vector<2x128xf32>
    %118 = vector.extract_strided_slice %113 {offsets = [0, 0], sizes = [2, 32], strides = [1, 1]} : vector<2x128xf32> to vector<2x32xf32>
    %119 = arith.negf %118 : vector<2x32xf32>
    %120 = math.exp %119 : vector<2x32xf32>
    %cst_26 = arith.constant 1.000000e+00 : f32
    %121 = vector.broadcast %cst_26 : f32 to vector<2x32xf32>
    %122 = arith.addf %121, %120 : vector<2x32xf32>
    %123 = arith.divf %121, %122 : vector<2x32xf32>
    %124 = vector.extract_strided_slice %113 {offsets = [0, 32], sizes = [2, 32], strides = [1, 1]} : vector<2x128xf32> to vector<2x32xf32>
    %125 = arith.negf %124 : vector<2x32xf32>
    %126 = math.exp %125 : vector<2x32xf32>
    %cst_27 = arith.constant 1.000000e+00 : f32
    %127 = vector.broadcast %cst_27 : f32 to vector<2x32xf32>
    %128 = arith.addf %127, %126 : vector<2x32xf32>
    %129 = arith.divf %127, %128 : vector<2x32xf32>
    %130 = vector.extract_strided_slice %113 {offsets = [0, 64], sizes = [2, 32], strides = [1, 1]} : vector<2x128xf32> to vector<2x32xf32>
    %131 = math.tanh %130 : vector<2x32xf32>
    %132 = vector.extract_strided_slice %113 {offsets = [0, 96], sizes = [2, 32], strides = [1, 1]} : vector<2x128xf32> to vector<2x32xf32>
    %133 = arith.negf %132 : vector<2x32xf32>
    %134 = math.exp %133 : vector<2x32xf32>
    %cst_28 = arith.constant 1.000000e+00 : f32
    %135 = vector.broadcast %cst_28 : f32 to vector<2x32xf32>
    %136 = arith.addf %135, %134 : vector<2x32xf32>
    %137 = arith.divf %135, %136 : vector<2x32xf32>
    %138 = arith.mulf %129, %95 : vector<2x32xf32>
    %139 = arith.mulf %123, %131 : vector<2x32xf32>
    %140 = arith.addf %138, %139 : vector<2x32xf32>
    %141 = math.tanh %140 : vector<2x32xf32>
    %142 = arith.mulf %137, %141 : vector<2x32xf32>
    %143 = vector.extract_strided_slice %117 {offsets = [0, 0], sizes = [2, 32], strides = [1, 1]} : vector<2x128xf32> to vector<2x32xf32>
    %144 = arith.negf %143 : vector<2x32xf32>
    %145 = math.exp %144 : vector<2x32xf32>
    %cst_29 = arith.constant 1.000000e+00 : f32
    %146 = vector.broadcast %cst_29 : f32 to vector<2x32xf32>
    %147 = arith.addf %146, %145 : vector<2x32xf32>
    %148 = arith.divf %146, %147 : vector<2x32xf32>
    %149 = vector.extract_strided_slice %117 {offsets = [0, 32], sizes = [2, 32], strides = [1, 1]} : vector<2x128xf32> to vector<2x32xf32>
    %150 = arith.negf %149 : vector<2x32xf32>
    %151 = math.exp %150 : vector<2x32xf32>
    %cst_30 = arith.constant 1.000000e+00 : f32
    %152 = vector.broadcast %cst_30 : f32 to vector<2x32xf32>
    %153 = arith.addf %152, %151 : vector<2x32xf32>
    %154 = arith.divf %152, %153 : vector<2x32xf32>
    %155 = vector.extract_strided_slice %117 {offsets = [0, 64], sizes = [2, 32], strides = [1, 1]} : vector<2x128xf32> to vector<2x32xf32>
    %156 = math.tanh %155 : vector<2x32xf32>
    %157 = vector.extract_strided_slice %117 {offsets = [0, 96], sizes = [2, 32], strides = [1, 1]} : vector<2x128xf32> to vector<2x32xf32>
    %158 = arith.negf %157 : vector<2x32xf32>
    %159 = math.exp %158 : vector<2x32xf32>
    %cst_31 = arith.constant 1.000000e+00 : f32
    %160 = vector.broadcast %cst_31 : f32 to vector<2x32xf32>
    %161 = arith.addf %160, %159 : vector<2x32xf32>
    %162 = arith.divf %160, %161 : vector<2x32xf32>
    %163 = arith.mulf %154, %101 : vector<2x32xf32>
    %164 = arith.mulf %148, %156 : vector<2x32xf32>
    %165 = arith.addf %163, %164 : vector<2x32xf32>
    %166 = math.tanh %165 : vector<2x32xf32>
    %167 = arith.mulf %162, %166 : vector<2x32xf32>
    %168 = vector.shape_cast %4 : vector<2x1xi1> to vector<2x1xi1>
    %169 = vector.broadcast %168 : vector<2x1xi1> to vector<2x32xi1>
    %170 = arith.select %169, %142, %92 : vector<2x32xi1>, vector<2x32xf32>
    %171 = vector.shape_cast %4 : vector<2x1xi1> to vector<2x1xi1>
    %172 = vector.broadcast %171 : vector<2x1xi1> to vector<2x32xi1>
    %173 = arith.select %172, %140, %95 : vector<2x32xi1>, vector<2x32xf32>
    %174 = vector.shape_cast %14 : vector<2x1xi1> to vector<2x1xi1>
    %175 = vector.broadcast %174 : vector<2x1xi1> to vector<2x32xi1>
    %176 = arith.select %175, %167, %98 : vector<2x32xi1>, vector<2x32xf32>
    %177 = vector.shape_cast %14 : vector<2x1xi1> to vector<2x1xi1>
    %178 = vector.broadcast %177 : vector<2x1xi1> to vector<2x32xi1>
    %179 = arith.select %178, %165, %101 : vector<2x32xi1>, vector<2x32xf32>
    %180 = vector.shape_cast %4 : vector<2x1xi1> to vector<2x1xi1>
    %181 = vector.broadcast %180 : vector<2x1xi1> to vector<2x32xi1>
    %182 = arith.select %181, %170, %17 : vector<2x32xi1>, vector<2x32xf32>
    %c2 = arith.constant 2 : index
    %c0_32 = arith.constant 0 : index
    %183 = vector.load %arg13[%c2, %c0_32] : memref<16x64xf32, #tpu.memory_space<vmem>>, vector<2x32xf32>
    tpu.vector_store %arg13[%c2, %c0_32], %182 {strides = array<i32>} : memref<16x64xf32, #tpu.memory_space<vmem>>, vector<2x32xf32>,
    %184 = vector.shape_cast %14 : vector<2x1xi1> to vector<2x1xi1>
    %185 = vector.broadcast %184 : vector<2x1xi1> to vector<2x32xi1>
    %186 = arith.select %185, %176, %17 : vector<2x32xi1>, vector<2x32xf32>
    %c12 = arith.constant 12 : index
    %c32_33 = arith.constant 32 : index
    %187 = vector.load %arg13[%c12, %c32_33] : memref<16x64xf32, #tpu.memory_space<vmem>>, vector<2x32xf32>
    tpu.vector_store %arg13[%c12, %c32_33], %186 {strides = array<i32>} : memref<16x64xf32, #tpu.memory_space<vmem>>, vector<2x32xf32>,
    %188 = vector.extract_strided_slice %25 {offsets = [4, 0], sizes = [2, 128], strides = [1, 1]} : vector<16x256xf32> to vector<2x128xf32>
    %189 = arith.truncf %170 : vector<2x32xf32> to vector<2x32xbf16>
    %cst_34 = arith.constant dense<0.000000e+00> : vector<2x128xf32>
    %190 = tpu.matmul %189, %26, %cst_34 {dimension_numbers = #tpu.dot_dimension_numbers<[1], [0], [0], [1], [0, 0, 1, 1], [], []>} : vector<2x32xbf16>, vector<32x128xbf16>, vector<2x128xf32> -> vector<2x128xf32>
    %191 = arith.addf %188, %190 : vector<2x128xf32>
    %192 = vector.extract_strided_slice %25 {offsets = [10, 128], sizes = [2, 128], strides = [1, 1]} : vector<16x256xf32> to vector<2x128xf32>
    %193 = arith.truncf %176 : vector<2x32xf32> to vector<2x32xbf16>
    %cst_35 = arith.constant dense<0.000000e+00> : vector<2x128xf32>
    %194 = tpu.matmul %193, %27, %cst_35 {dimension_numbers = #tpu.dot_dimension_numbers<[1], [0], [0], [1], [0, 0, 1, 1], [], []>} : vector<2x32xbf16>, vector<32x128xbf16>, vector<2x128xf32> -> vector<2x128xf32>
    %195 = arith.addf %192, %194 : vector<2x128xf32>
    %196 = vector.extract_strided_slice %191 {offsets = [0, 0], sizes = [2, 32], strides = [1, 1]} : vector<2x128xf32> to vector<2x32xf32>
    %197 = arith.negf %196 : vector<2x32xf32>
    %198 = math.exp %197 : vector<2x32xf32>
    %cst_36 = arith.constant 1.000000e+00 : f32
    %199 = vector.broadcast %cst_36 : f32 to vector<2x32xf32>
    %200 = arith.addf %199, %198 : vector<2x32xf32>
    %201 = arith.divf %199, %200 : vector<2x32xf32>
    %202 = vector.extract_strided_slice %191 {offsets = [0, 32], sizes = [2, 32], strides = [1, 1]} : vector<2x128xf32> to vector<2x32xf32>
    %203 = arith.negf %202 : vector<2x32xf32>
    %204 = math.exp %203 : vector<2x32xf32>
    %cst_37 = arith.constant 1.000000e+00 : f32
    %205 = vector.broadcast %cst_37 : f32 to vector<2x32xf32>
    %206 = arith.addf %205, %204 : vector<2x32xf32>
    %207 = arith.divf %205, %206 : vector<2x32xf32>
    %208 = vector.extract_strided_slice %191 {offsets = [0, 64], sizes = [2, 32], strides = [1, 1]} : vector<2x128xf32> to vector<2x32xf32>
    %209 = math.tanh %208 : vector<2x32xf32>
    %210 = vector.extract_strided_slice %191 {offsets = [0, 96], sizes = [2, 32], strides = [1, 1]} : vector<2x128xf32> to vector<2x32xf32>
    %211 = arith.negf %210 : vector<2x32xf32>
    %212 = math.exp %211 : vector<2x32xf32>
    %cst_38 = arith.constant 1.000000e+00 : f32
    %213 = vector.broadcast %cst_38 : f32 to vector<2x32xf32>
    %214 = arith.addf %213, %212 : vector<2x32xf32>
    %215 = arith.divf %213, %214 : vector<2x32xf32>
    %216 = arith.mulf %207, %173 : vector<2x32xf32>
    %217 = arith.mulf %201, %209 : vector<2x32xf32>
    %218 = arith.addf %216, %217 : vector<2x32xf32>
    %219 = math.tanh %218 : vector<2x32xf32>
    %220 = arith.mulf %215, %219 : vector<2x32xf32>
    %221 = vector.extract_strided_slice %195 {offsets = [0, 0], sizes = [2, 32], strides = [1, 1]} : vector<2x128xf32> to vector<2x32xf32>
    %222 = arith.negf %221 : vector<2x32xf32>
    %223 = math.exp %222 : vector<2x32xf32>
    %cst_39 = arith.constant 1.000000e+00 : f32
    %224 = vector.broadcast %cst_39 : f32 to vector<2x32xf32>
    %225 = arith.addf %224, %223 : vector<2x32xf32>
    %226 = arith.divf %224, %225 : vector<2x32xf32>
    %227 = vector.extract_strided_slice %195 {offsets = [0, 32], sizes = [2, 32], strides = [1, 1]} : vector<2x128xf32> to vector<2x32xf32>
    %228 = arith.negf %227 : vector<2x32xf32>
    %229 = math.exp %228 : vector<2x32xf32>
    %cst_40 = arith.constant 1.000000e+00 : f32
    %230 = vector.broadcast %cst_40 : f32 to vector<2x32xf32>
    %231 = arith.addf %230, %229 : vector<2x32xf32>
    %232 = arith.divf %230, %231 : vector<2x32xf32>
    %233 = vector.extract_strided_slice %195 {offsets = [0, 64], sizes = [2, 32], strides = [1, 1]} : vector<2x128xf32> to vector<2x32xf32>
    %234 = math.tanh %233 : vector<2x32xf32>
    %235 = vector.extract_strided_slice %195 {offsets = [0, 96], sizes = [2, 32], strides = [1, 1]} : vector<2x128xf32> to vector<2x32xf32>
    %236 = arith.negf %235 : vector<2x32xf32>
    %237 = math.exp %236 : vector<2x32xf32>
    %cst_41 = arith.constant 1.000000e+00 : f32
    %238 = vector.broadcast %cst_41 : f32 to vector<2x32xf32>
    %239 = arith.addf %238, %237 : vector<2x32xf32>
    %240 = arith.divf %238, %239 : vector<2x32xf32>
    %241 = arith.mulf %232, %179 : vector<2x32xf32>
    %242 = arith.mulf %226, %234 : vector<2x32xf32>
    %243 = arith.addf %241, %242 : vector<2x32xf32>
    %244 = math.tanh %243 : vector<2x32xf32>
    %245 = arith.mulf %240, %244 : vector<2x32xf32>
    %246 = vector.shape_cast %6 : vector<2x1xi1> to vector<2x1xi1>
    %247 = vector.broadcast %246 : vector<2x1xi1> to vector<2x32xi1>
    %248 = arith.select %247, %220, %170 : vector<2x32xi1>, vector<2x32xf32>
    %249 = vector.shape_cast %6 : vector<2x1xi1> to vector<2x1xi1>
    %250 = vector.broadcast %249 : vector<2x1xi1> to vector<2x32xi1>
    %251 = arith.select %250, %218, %173 : vector<2x32xi1>, vector<2x32xf32>
    %252 = vector.shape_cast %12 : vector<2x1xi1> to vector<2x1xi1>
    %253 = vector.broadcast %252 : vector<2x1xi1> to vector<2x32xi1>
    %254 = arith.select %253, %245, %176 : vector<2x32xi1>, vector<2x32xf32>
    %255 = vector.shape_cast %12 : vector<2x1xi1> to vector<2x1xi1>
    %256 = vector.broadcast %255 : vector<2x1xi1> to vector<2x32xi1>
    %257 = arith.select %256, %243, %179 : vector<2x32xi1>, vector<2x32xf32>
    %258 = vector.shape_cast %6 : vector<2x1xi1> to vector<2x1xi1>
    %259 = vector.broadcast %258 : vector<2x1xi1> to vector<2x32xi1>
    %260 = arith.select %259, %248, %17 : vector<2x32xi1>, vector<2x32xf32>
    %c4 = arith.constant 4 : index
    %c0_42 = arith.constant 0 : index
    %261 = vector.load %arg13[%c4, %c0_42] : memref<16x64xf32, #tpu.memory_space<vmem>>, vector<2x32xf32>
    tpu.vector_store %arg13[%c4, %c0_42], %260 {strides = array<i32>} : memref<16x64xf32, #tpu.memory_space<vmem>>, vector<2x32xf32>,
    %262 = vector.shape_cast %12 : vector<2x1xi1> to vector<2x1xi1>
    %263 = vector.broadcast %262 : vector<2x1xi1> to vector<2x32xi1>
    %264 = arith.select %263, %254, %17 : vector<2x32xi1>, vector<2x32xf32>
    %c10 = arith.constant 10 : index
    %c32_43 = arith.constant 32 : index
    %265 = vector.load %arg13[%c10, %c32_43] : memref<16x64xf32, #tpu.memory_space<vmem>>, vector<2x32xf32>
    tpu.vector_store %arg13[%c10, %c32_43], %264 {strides = array<i32>} : memref<16x64xf32, #tpu.memory_space<vmem>>, vector<2x32xf32>,
    %266 = vector.extract_strided_slice %25 {offsets = [6, 0], sizes = [2, 128], strides = [1, 1]} : vector<16x256xf32> to vector<2x128xf32>
    %267 = arith.truncf %248 : vector<2x32xf32> to vector<2x32xbf16>
    %cst_44 = arith.constant dense<0.000000e+00> : vector<2x128xf32>
    %268 = tpu.matmul %267, %26, %cst_44 {dimension_numbers = #tpu.dot_dimension_numbers<[1], [0], [0], [1], [0, 0, 1, 1], [], []>} : vector<2x32xbf16>, vector<32x128xbf16>, vector<2x128xf32> -> vector<2x128xf32>
    %269 = arith.addf %266, %268 : vector<2x128xf32>
    %270 = vector.extract_strided_slice %25 {offsets = [8, 128], sizes = [2, 128], strides = [1, 1]} : vector<16x256xf32> to vector<2x128xf32>
    %271 = arith.truncf %254 : vector<2x32xf32> to vector<2x32xbf16>
    %cst_45 = arith.constant dense<0.000000e+00> : vector<2x128xf32>
    %272 = tpu.matmul %271, %27, %cst_45 {dimension_numbers = #tpu.dot_dimension_numbers<[1], [0], [0], [1], [0, 0, 1, 1], [], []>} : vector<2x32xbf16>, vector<32x128xbf16>, vector<2x128xf32> -> vector<2x128xf32>
    %273 = arith.addf %270, %272 : vector<2x128xf32>
    %274 = vector.extract_strided_slice %269 {offsets = [0, 0], sizes = [2, 32], strides = [1, 1]} : vector<2x128xf32> to vector<2x32xf32>
    %275 = arith.negf %274 : vector<2x32xf32>
    %276 = math.exp %275 : vector<2x32xf32>
    %cst_46 = arith.constant 1.000000e+00 : f32
    %277 = vector.broadcast %cst_46 : f32 to vector<2x32xf32>
    %278 = arith.addf %277, %276 : vector<2x32xf32>
    %279 = arith.divf %277, %278 : vector<2x32xf32>
    %280 = vector.extract_strided_slice %269 {offsets = [0, 32], sizes = [2, 32], strides = [1, 1]} : vector<2x128xf32> to vector<2x32xf32>
    %281 = arith.negf %280 : vector<2x32xf32>
    %282 = math.exp %281 : vector<2x32xf32>
    %cst_47 = arith.constant 1.000000e+00 : f32
    %283 = vector.broadcast %cst_47 : f32 to vector<2x32xf32>
    %284 = arith.addf %283, %282 : vector<2x32xf32>
    %285 = arith.divf %283, %284 : vector<2x32xf32>
    %286 = vector.extract_strided_slice %269 {offsets = [0, 64], sizes = [2, 32], strides = [1, 1]} : vector<2x128xf32> to vector<2x32xf32>
    %287 = math.tanh %286 : vector<2x32xf32>
    %288 = vector.extract_strided_slice %269 {offsets = [0, 96], sizes = [2, 32], strides = [1, 1]} : vector<2x128xf32> to vector<2x32xf32>
    %289 = arith.negf %288 : vector<2x32xf32>
    %290 = math.exp %289 : vector<2x32xf32>
    %cst_48 = arith.constant 1.000000e+00 : f32
    %291 = vector.broadcast %cst_48 : f32 to vector<2x32xf32>
    %292 = arith.addf %291, %290 : vector<2x32xf32>
    %293 = arith.divf %291, %292 : vector<2x32xf32>
    %294 = arith.mulf %285, %251 : vector<2x32xf32>
    %295 = arith.mulf %279, %287 : vector<2x32xf32>
    %296 = arith.addf %294, %295 : vector<2x32xf32>
    %297 = math.tanh %296 : vector<2x32xf32>
    %298 = arith.mulf %293, %297 : vector<2x32xf32>
    %299 = vector.extract_strided_slice %273 {offsets = [0, 0], sizes = [2, 32], strides = [1, 1]} : vector<2x128xf32> to vector<2x32xf32>
    %300 = arith.negf %299 : vector<2x32xf32>
    %301 = math.exp %300 : vector<2x32xf32>
    %cst_49 = arith.constant 1.000000e+00 : f32
    %302 = vector.broadcast %cst_49 : f32 to vector<2x32xf32>
    %303 = arith.addf %302, %301 : vector<2x32xf32>
    %304 = arith.divf %302, %303 : vector<2x32xf32>
    %305 = vector.extract_strided_slice %273 {offsets = [0, 32], sizes = [2, 32], strides = [1, 1]} : vector<2x128xf32> to vector<2x32xf32>
    %306 = arith.negf %305 : vector<2x32xf32>
    %307 = math.exp %306 : vector<2x32xf32>
    %cst_50 = arith.constant 1.000000e+00 : f32
    %308 = vector.broadcast %cst_50 : f32 to vector<2x32xf32>
    %309 = arith.addf %308, %307 : vector<2x32xf32>
    %310 = arith.divf %308, %309 : vector<2x32xf32>
    %311 = vector.extract_strided_slice %273 {offsets = [0, 64], sizes = [2, 32], strides = [1, 1]} : vector<2x128xf32> to vector<2x32xf32>
    %312 = math.tanh %311 : vector<2x32xf32>
    %313 = vector.extract_strided_slice %273 {offsets = [0, 96], sizes = [2, 32], strides = [1, 1]} : vector<2x128xf32> to vector<2x32xf32>
    %314 = arith.negf %313 : vector<2x32xf32>
    %315 = math.exp %314 : vector<2x32xf32>
    %cst_51 = arith.constant 1.000000e+00 : f32
    %316 = vector.broadcast %cst_51 : f32 to vector<2x32xf32>
    %317 = arith.addf %316, %315 : vector<2x32xf32>
    %318 = arith.divf %316, %317 : vector<2x32xf32>
    %319 = arith.mulf %310, %257 : vector<2x32xf32>
    %320 = arith.mulf %304, %312 : vector<2x32xf32>
    %321 = arith.addf %319, %320 : vector<2x32xf32>
    %322 = math.tanh %321 : vector<2x32xf32>
    %323 = arith.mulf %318, %322 : vector<2x32xf32>
    %324 = vector.shape_cast %8 : vector<2x1xi1> to vector<2x1xi1>
    %325 = vector.broadcast %324 : vector<2x1xi1> to vector<2x32xi1>
    %326 = arith.select %325, %298, %248 : vector<2x32xi1>, vector<2x32xf32>
    %327 = vector.shape_cast %8 : vector<2x1xi1> to vector<2x1xi1>
    %328 = vector.broadcast %327 : vector<2x1xi1> to vector<2x32xi1>
    %329 = arith.select %328, %296, %251 : vector<2x32xi1>, vector<2x32xf32>
    %330 = vector.shape_cast %10 : vector<2x1xi1> to vector<2x1xi1>
    %331 = vector.broadcast %330 : vector<2x1xi1> to vector<2x32xi1>
    %332 = arith.select %331, %323, %254 : vector<2x32xi1>, vector<2x32xf32>
    %333 = vector.shape_cast %10 : vector<2x1xi1> to vector<2x1xi1>
    %334 = vector.broadcast %333 : vector<2x1xi1> to vector<2x32xi1>
    %335 = arith.select %334, %321, %257 : vector<2x32xi1>, vector<2x32xf32>
    %336 = vector.shape_cast %8 : vector<2x1xi1> to vector<2x1xi1>
    %337 = vector.broadcast %336 : vector<2x1xi1> to vector<2x32xi1>
    %338 = arith.select %337, %326, %17 : vector<2x32xi1>, vector<2x32xf32>
    %c6 = arith.constant 6 : index
    %c0_52 = arith.constant 0 : index
    %339 = vector.load %arg13[%c6, %c0_52] : memref<16x64xf32, #tpu.memory_space<vmem>>, vector<2x32xf32>
    tpu.vector_store %arg13[%c6, %c0_52], %338 {strides = array<i32>} : memref<16x64xf32, #tpu.memory_space<vmem>>, vector<2x32xf32>,
    %340 = vector.shape_cast %10 : vector<2x1xi1> to vector<2x1xi1>
    %341 = vector.broadcast %340 : vector<2x1xi1> to vector<2x32xi1>
    %342 = arith.select %341, %332, %17 : vector<2x32xi1>, vector<2x32xf32>
    %c8 = arith.constant 8 : index
    %c32_53 = arith.constant 32 : index
    %343 = vector.load %arg13[%c8, %c32_53] : memref<16x64xf32, #tpu.memory_space<vmem>>, vector<2x32xf32>
    tpu.vector_store %arg13[%c8, %c32_53], %342 {strides = array<i32>} : memref<16x64xf32, #tpu.memory_space<vmem>>, vector<2x32xf32>,
    %344 = vector.extract_strided_slice %25 {offsets = [8, 0], sizes = [2, 128], strides = [1, 1]} : vector<16x256xf32> to vector<2x128xf32>
    %345 = arith.truncf %326 : vector<2x32xf32> to vector<2x32xbf16>
    %cst_54 = arith.constant dense<0.000000e+00> : vector<2x128xf32>
    %346 = tpu.matmul %345, %26, %cst_54 {dimension_numbers = #tpu.dot_dimension_numbers<[1], [0], [0], [1], [0, 0, 1, 1], [], []>} : vector<2x32xbf16>, vector<32x128xbf16>, vector<2x128xf32> -> vector<2x128xf32>
    %347 = arith.addf %344, %346 : vector<2x128xf32>
    %348 = vector.extract_strided_slice %25 {offsets = [6, 128], sizes = [2, 128], strides = [1, 1]} : vector<16x256xf32> to vector<2x128xf32>
    %349 = arith.truncf %332 : vector<2x32xf32> to vector<2x32xbf16>
    %cst_55 = arith.constant dense<0.000000e+00> : vector<2x128xf32>
    %350 = tpu.matmul %349, %27, %cst_55 {dimension_numbers = #tpu.dot_dimension_numbers<[1], [0], [0], [1], [0, 0, 1, 1], [], []>} : vector<2x32xbf16>, vector<32x128xbf16>, vector<2x128xf32> -> vector<2x128xf32>
    %351 = arith.addf %348, %350 : vector<2x128xf32>
    %352 = vector.extract_strided_slice %347 {offsets = [0, 0], sizes = [2, 32], strides = [1, 1]} : vector<2x128xf32> to vector<2x32xf32>
    %353 = arith.negf %352 : vector<2x32xf32>
    %354 = math.exp %353 : vector<2x32xf32>
    %cst_56 = arith.constant 1.000000e+00 : f32
    %355 = vector.broadcast %cst_56 : f32 to vector<2x32xf32>
    %356 = arith.addf %355, %354 : vector<2x32xf32>
    %357 = arith.divf %355, %356 : vector<2x32xf32>
    %358 = vector.extract_strided_slice %347 {offsets = [0, 32], sizes = [2, 32], strides = [1, 1]} : vector<2x128xf32> to vector<2x32xf32>
    %359 = arith.negf %358 : vector<2x32xf32>
    %360 = math.exp %359 : vector<2x32xf32>
    %cst_57 = arith.constant 1.000000e+00 : f32
    %361 = vector.broadcast %cst_57 : f32 to vector<2x32xf32>
    %362 = arith.addf %361, %360 : vector<2x32xf32>
    %363 = arith.divf %361, %362 : vector<2x32xf32>
    %364 = vector.extract_strided_slice %347 {offsets = [0, 64], sizes = [2, 32], strides = [1, 1]} : vector<2x128xf32> to vector<2x32xf32>
    %365 = math.tanh %364 : vector<2x32xf32>
    %366 = vector.extract_strided_slice %347 {offsets = [0, 96], sizes = [2, 32], strides = [1, 1]} : vector<2x128xf32> to vector<2x32xf32>
    %367 = arith.negf %366 : vector<2x32xf32>
    %368 = math.exp %367 : vector<2x32xf32>
    %cst_58 = arith.constant 1.000000e+00 : f32
    %369 = vector.broadcast %cst_58 : f32 to vector<2x32xf32>
    %370 = arith.addf %369, %368 : vector<2x32xf32>
    %371 = arith.divf %369, %370 : vector<2x32xf32>
    %372 = arith.mulf %363, %329 : vector<2x32xf32>
    %373 = arith.mulf %357, %365 : vector<2x32xf32>
    %374 = arith.addf %372, %373 : vector<2x32xf32>
    %375 = math.tanh %374 : vector<2x32xf32>
    %376 = arith.mulf %371, %375 : vector<2x32xf32>
    %377 = vector.extract_strided_slice %351 {offsets = [0, 0], sizes = [2, 32], strides = [1, 1]} : vector<2x128xf32> to vector<2x32xf32>
    %378 = arith.negf %377 : vector<2x32xf32>
    %379 = math.exp %378 : vector<2x32xf32>
    %cst_59 = arith.constant 1.000000e+00 : f32
    %380 = vector.broadcast %cst_59 : f32 to vector<2x32xf32>
    %381 = arith.addf %380, %379 : vector<2x32xf32>
    %382 = arith.divf %380, %381 : vector<2x32xf32>
    %383 = vector.extract_strided_slice %351 {offsets = [0, 32], sizes = [2, 32], strides = [1, 1]} : vector<2x128xf32> to vector<2x32xf32>
    %384 = arith.negf %383 : vector<2x32xf32>
    %385 = math.exp %384 : vector<2x32xf32>
    %cst_60 = arith.constant 1.000000e+00 : f32
    %386 = vector.broadcast %cst_60 : f32 to vector<2x32xf32>
    %387 = arith.addf %386, %385 : vector<2x32xf32>
    %388 = arith.divf %386, %387 : vector<2x32xf32>
    %389 = vector.extract_strided_slice %351 {offsets = [0, 64], sizes = [2, 32], strides = [1, 1]} : vector<2x128xf32> to vector<2x32xf32>
    %390 = math.tanh %389 : vector<2x32xf32>
    %391 = vector.extract_strided_slice %351 {offsets = [0, 96], sizes = [2, 32], strides = [1, 1]} : vector<2x128xf32> to vector<2x32xf32>
    %392 = arith.negf %391 : vector<2x32xf32>
    %393 = math.exp %392 : vector<2x32xf32>
    %cst_61 = arith.constant 1.000000e+00 : f32
    %394 = vector.broadcast %cst_61 : f32 to vector<2x32xf32>
    %395 = arith.addf %394, %393 : vector<2x32xf32>
    %396 = arith.divf %394, %395 : vector<2x32xf32>
    %397 = arith.mulf %388, %335 : vector<2x32xf32>
    %398 = arith.mulf %382, %390 : vector<2x32xf32>
    %399 = arith.addf %397, %398 : vector<2x32xf32>
    %400 = math.tanh %399 : vector<2x32xf32>
    %401 = arith.mulf %396, %400 : vector<2x32xf32>
    %402 = vector.shape_cast %10 : vector<2x1xi1> to vector<2x1xi1>
    %403 = vector.broadcast %402 : vector<2x1xi1> to vector<2x32xi1>
    %404 = arith.select %403, %376, %326 : vector<2x32xi1>, vector<2x32xf32>
    %405 = vector.shape_cast %10 : vector<2x1xi1> to vector<2x1xi1>
    %406 = vector.broadcast %405 : vector<2x1xi1> to vector<2x32xi1>
    %407 = arith.select %406, %374, %329 : vector<2x32xi1>, vector<2x32xf32>
    %408 = vector.shape_cast %8 : vector<2x1xi1> to vector<2x1xi1>
    %409 = vector.broadcast %408 : vector<2x1xi1> to vector<2x32xi1>
    %410 = arith.select %409, %401, %332 : vector<2x32xi1>, vector<2x32xf32>
    %411 = vector.shape_cast %8 : vector<2x1xi1> to vector<2x1xi1>
    %412 = vector.broadcast %411 : vector<2x1xi1> to vector<2x32xi1>
    %413 = arith.select %412, %399, %335 : vector<2x32xi1>, vector<2x32xf32>
    %414 = vector.shape_cast %10 : vector<2x1xi1> to vector<2x1xi1>
    %415 = vector.broadcast %414 : vector<2x1xi1> to vector<2x32xi1>
    %416 = arith.select %415, %404, %17 : vector<2x32xi1>, vector<2x32xf32>
    %c8_62 = arith.constant 8 : index
    %c0_63 = arith.constant 0 : index
    %417 = vector.load %arg13[%c8_62, %c0_63] : memref<16x64xf32, #tpu.memory_space<vmem>>, vector<2x32xf32>
    tpu.vector_store %arg13[%c8_62, %c0_63], %416 {strides = array<i32>} : memref<16x64xf32, #tpu.memory_space<vmem>>, vector<2x32xf32>,
    %418 = vector.shape_cast %8 : vector<2x1xi1> to vector<2x1xi1>
    %419 = vector.broadcast %418 : vector<2x1xi1> to vector<2x32xi1>
    %420 = arith.select %419, %410, %17 : vector<2x32xi1>, vector<2x32xf32>
    %c6_64 = arith.constant 6 : index
    %c32_65 = arith.constant 32 : index
    %421 = vector.load %arg13[%c6_64, %c32_65] : memref<16x64xf32, #tpu.memory_space<vmem>>, vector<2x32xf32>
    tpu.vector_store %arg13[%c6_64, %c32_65], %420 {strides = array<i32>} : memref<16x64xf32, #tpu.memory_space<vmem>>, vector<2x32xf32>,
    %422 = vector.extract_strided_slice %25 {offsets = [10, 0], sizes = [2, 128], strides = [1, 1]} : vector<16x256xf32> to vector<2x128xf32>
    %423 = arith.truncf %404 : vector<2x32xf32> to vector<2x32xbf16>
    %cst_66 = arith.constant dense<0.000000e+00> : vector<2x128xf32>
    %424 = tpu.matmul %423, %26, %cst_66 {dimension_numbers = #tpu.dot_dimension_numbers<[1], [0], [0], [1], [0, 0, 1, 1], [], []>} : vector<2x32xbf16>, vector<32x128xbf16>, vector<2x128xf32> -> vector<2x128xf32>
    %425 = arith.addf %422, %424 : vector<2x128xf32>
    %426 = vector.extract_strided_slice %25 {offsets = [4, 128], sizes = [2, 128], strides = [1, 1]} : vector<16x256xf32> to vector<2x128xf32>
    %427 = arith.truncf %410 : vector<2x32xf32> to vector<2x32xbf16>
    %cst_67 = arith.constant dense<0.000000e+00> : vector<2x128xf32>
    %428 = tpu.matmul %427, %27, %cst_67 {dimension_numbers = #tpu.dot_dimension_numbers<[1], [0], [0], [1], [0, 0, 1, 1], [], []>} : vector<2x32xbf16>, vector<32x128xbf16>, vector<2x128xf32> -> vector<2x128xf32>
    %429 = arith.addf %426, %428 : vector<2x128xf32>
    %430 = vector.extract_strided_slice %425 {offsets = [0, 0], sizes = [2, 32], strides = [1, 1]} : vector<2x128xf32> to vector<2x32xf32>
    %431 = arith.negf %430 : vector<2x32xf32>
    %432 = math.exp %431 : vector<2x32xf32>
    %cst_68 = arith.constant 1.000000e+00 : f32
    %433 = vector.broadcast %cst_68 : f32 to vector<2x32xf32>
    %434 = arith.addf %433, %432 : vector<2x32xf32>
    %435 = arith.divf %433, %434 : vector<2x32xf32>
    %436 = vector.extract_strided_slice %425 {offsets = [0, 32], sizes = [2, 32], strides = [1, 1]} : vector<2x128xf32> to vector<2x32xf32>
    %437 = arith.negf %436 : vector<2x32xf32>
    %438 = math.exp %437 : vector<2x32xf32>
    %cst_69 = arith.constant 1.000000e+00 : f32
    %439 = vector.broadcast %cst_69 : f32 to vector<2x32xf32>
    %440 = arith.addf %439, %438 : vector<2x32xf32>
    %441 = arith.divf %439, %440 : vector<2x32xf32>
    %442 = vector.extract_strided_slice %425 {offsets = [0, 64], sizes = [2, 32], strides = [1, 1]} : vector<2x128xf32> to vector<2x32xf32>
    %443 = math.tanh %442 : vector<2x32xf32>
    %444 = vector.extract_strided_slice %425 {offsets = [0, 96], sizes = [2, 32], strides = [1, 1]} : vector<2x128xf32> to vector<2x32xf32>
    %445 = arith.negf %444 : vector<2x32xf32>
    %446 = math.exp %445 : vector<2x32xf32>
    %cst_70 = arith.constant 1.000000e+00 : f32
    %447 = vector.broadcast %cst_70 : f32 to vector<2x32xf32>
    %448 = arith.addf %447, %446 : vector<2x32xf32>
    %449 = arith.divf %447, %448 : vector<2x32xf32>
    %450 = arith.mulf %441, %407 : vector<2x32xf32>
    %451 = arith.mulf %435, %443 : vector<2x32xf32>
    %452 = arith.addf %450, %451 : vector<2x32xf32>
    %453 = math.tanh %452 : vector<2x32xf32>
    %454 = arith.mulf %449, %453 : vector<2x32xf32>
    %455 = vector.extract_strided_slice %429 {offsets = [0, 0], sizes = [2, 32], strides = [1, 1]} : vector<2x128xf32> to vector<2x32xf32>
    %456 = arith.negf %455 : vector<2x32xf32>
    %457 = math.exp %456 : vector<2x32xf32>
    %cst_71 = arith.constant 1.000000e+00 : f32
    %458 = vector.broadcast %cst_71 : f32 to vector<2x32xf32>
    %459 = arith.addf %458, %457 : vector<2x32xf32>
    %460 = arith.divf %458, %459 : vector<2x32xf32>
    %461 = vector.extract_strided_slice %429 {offsets = [0, 32], sizes = [2, 32], strides = [1, 1]} : vector<2x128xf32> to vector<2x32xf32>
    %462 = arith.negf %461 : vector<2x32xf32>
    %463 = math.exp %462 : vector<2x32xf32>
    %cst_72 = arith.constant 1.000000e+00 : f32
    %464 = vector.broadcast %cst_72 : f32 to vector<2x32xf32>
    %465 = arith.addf %464, %463 : vector<2x32xf32>
    %466 = arith.divf %464, %465 : vector<2x32xf32>
    %467 = vector.extract_strided_slice %429 {offsets = [0, 64], sizes = [2, 32], strides = [1, 1]} : vector<2x128xf32> to vector<2x32xf32>
    %468 = math.tanh %467 : vector<2x32xf32>
    %469 = vector.extract_strided_slice %429 {offsets = [0, 96], sizes = [2, 32], strides = [1, 1]} : vector<2x128xf32> to vector<2x32xf32>
    %470 = arith.negf %469 : vector<2x32xf32>
    %471 = math.exp %470 : vector<2x32xf32>
    %cst_73 = arith.constant 1.000000e+00 : f32
    %472 = vector.broadcast %cst_73 : f32 to vector<2x32xf32>
    %473 = arith.addf %472, %471 : vector<2x32xf32>
    %474 = arith.divf %472, %473 : vector<2x32xf32>
    %475 = arith.mulf %466, %413 : vector<2x32xf32>
    %476 = arith.mulf %460, %468 : vector<2x32xf32>
    %477 = arith.addf %475, %476 : vector<2x32xf32>
    %478 = math.tanh %477 : vector<2x32xf32>
    %479 = arith.mulf %474, %478 : vector<2x32xf32>
    %480 = vector.shape_cast %12 : vector<2x1xi1> to vector<2x1xi1>
    %481 = vector.broadcast %480 : vector<2x1xi1> to vector<2x32xi1>
    %482 = arith.select %481, %454, %404 : vector<2x32xi1>, vector<2x32xf32>
    %483 = vector.shape_cast %12 : vector<2x1xi1> to vector<2x1xi1>
    %484 = vector.broadcast %483 : vector<2x1xi1> to vector<2x32xi1>
    %485 = arith.select %484, %452, %407 : vector<2x32xi1>, vector<2x32xf32>
    %486 = vector.shape_cast %6 : vector<2x1xi1> to vector<2x1xi1>
    %487 = vector.broadcast %486 : vector<2x1xi1> to vector<2x32xi1>
    %488 = arith.select %487, %479, %410 : vector<2x32xi1>, vector<2x32xf32>
    %489 = vector.shape_cast %6 : vector<2x1xi1> to vector<2x1xi1>
    %490 = vector.broadcast %489 : vector<2x1xi1> to vector<2x32xi1>
    %491 = arith.select %490, %477, %413 : vector<2x32xi1>, vector<2x32xf32>
    %492 = vector.shape_cast %12 : vector<2x1xi1> to vector<2x1xi1>
    %493 = vector.broadcast %492 : vector<2x1xi1> to vector<2x32xi1>
    %494 = arith.select %493, %482, %17 : vector<2x32xi1>, vector<2x32xf32>
    %c10_74 = arith.constant 10 : index
    %c0_75 = arith.constant 0 : index
    %495 = vector.load %arg13[%c10_74, %c0_75] : memref<16x64xf32, #tpu.memory_space<vmem>>, vector<2x32xf32>
    tpu.vector_store %arg13[%c10_74, %c0_75], %494 {strides = array<i32>} : memref<16x64xf32, #tpu.memory_space<vmem>>, vector<2x32xf32>,
    %496 = vector.shape_cast %6 : vector<2x1xi1> to vector<2x1xi1>
    %497 = vector.broadcast %496 : vector<2x1xi1> to vector<2x32xi1>
    %498 = arith.select %497, %488, %17 : vector<2x32xi1>, vector<2x32xf32>
    %c4_76 = arith.constant 4 : index
    %c32_77 = arith.constant 32 : index
    %499 = vector.load %arg13[%c4_76, %c32_77] : memref<16x64xf32, #tpu.memory_space<vmem>>, vector<2x32xf32>
    tpu.vector_store %arg13[%c4_76, %c32_77], %498 {strides = array<i32>} : memref<16x64xf32, #tpu.memory_space<vmem>>, vector<2x32xf32>,
    %500 = vector.extract_strided_slice %25 {offsets = [12, 0], sizes = [2, 128], strides = [1, 1]} : vector<16x256xf32> to vector<2x128xf32>
    %501 = arith.truncf %482 : vector<2x32xf32> to vector<2x32xbf16>
    %cst_78 = arith.constant dense<0.000000e+00> : vector<2x128xf32>
    %502 = tpu.matmul %501, %26, %cst_78 {dimension_numbers = #tpu.dot_dimension_numbers<[1], [0], [0], [1], [0, 0, 1, 1], [], []>} : vector<2x32xbf16>, vector<32x128xbf16>, vector<2x128xf32> -> vector<2x128xf32>
    %503 = arith.addf %500, %502 : vector<2x128xf32>
    %504 = vector.extract_strided_slice %25 {offsets = [2, 128], sizes = [2, 128], strides = [1, 1]} : vector<16x256xf32> to vector<2x128xf32>
    %505 = arith.truncf %488 : vector<2x32xf32> to vector<2x32xbf16>
    %cst_79 = arith.constant dense<0.000000e+00> : vector<2x128xf32>
    %506 = tpu.matmul %505, %27, %cst_79 {dimension_numbers = #tpu.dot_dimension_numbers<[1], [0], [0], [1], [0, 0, 1, 1], [], []>} : vector<2x32xbf16>, vector<32x128xbf16>, vector<2x128xf32> -> vector<2x128xf32>
    %507 = arith.addf %504, %506 : vector<2x128xf32>
    %508 = vector.extract_strided_slice %503 {offsets = [0, 0], sizes = [2, 32], strides = [1, 1]} : vector<2x128xf32> to vector<2x32xf32>
    %509 = arith.negf %508 : vector<2x32xf32>
    %510 = math.exp %509 : vector<2x32xf32>
    %cst_80 = arith.constant 1.000000e+00 : f32
    %511 = vector.broadcast %cst_80 : f32 to vector<2x32xf32>
    %512 = arith.addf %511, %510 : vector<2x32xf32>
    %513 = arith.divf %511, %512 : vector<2x32xf32>
    %514 = vector.extract_strided_slice %503 {offsets = [0, 32], sizes = [2, 32], strides = [1, 1]} : vector<2x128xf32> to vector<2x32xf32>
    %515 = arith.negf %514 : vector<2x32xf32>
    %516 = math.exp %515 : vector<2x32xf32>
    %cst_81 = arith.constant 1.000000e+00 : f32
    %517 = vector.broadcast %cst_81 : f32 to vector<2x32xf32>
    %518 = arith.addf %517, %516 : vector<2x32xf32>
    %519 = arith.divf %517, %518 : vector<2x32xf32>
    %520 = vector.extract_strided_slice %503 {offsets = [0, 64], sizes = [2, 32], strides = [1, 1]} : vector<2x128xf32> to vector<2x32xf32>
    %521 = math.tanh %520 : vector<2x32xf32>
    %522 = vector.extract_strided_slice %503 {offsets = [0, 96], sizes = [2, 32], strides = [1, 1]} : vector<2x128xf32> to vector<2x32xf32>
    %523 = arith.negf %522 : vector<2x32xf32>
    %524 = math.exp %523 : vector<2x32xf32>
    %cst_82 = arith.constant 1.000000e+00 : f32
    %525 = vector.broadcast %cst_82 : f32 to vector<2x32xf32>
    %526 = arith.addf %525, %524 : vector<2x32xf32>
    %527 = arith.divf %525, %526 : vector<2x32xf32>
    %528 = arith.mulf %519, %485 : vector<2x32xf32>
    %529 = arith.mulf %513, %521 : vector<2x32xf32>
    %530 = arith.addf %528, %529 : vector<2x32xf32>
    %531 = math.tanh %530 : vector<2x32xf32>
    %532 = arith.mulf %527, %531 : vector<2x32xf32>
    %533 = vector.extract_strided_slice %507 {offsets = [0, 0], sizes = [2, 32], strides = [1, 1]} : vector<2x128xf32> to vector<2x32xf32>
    %534 = arith.negf %533 : vector<2x32xf32>
    %535 = math.exp %534 : vector<2x32xf32>
    %cst_83 = arith.constant 1.000000e+00 : f32
    %536 = vector.broadcast %cst_83 : f32 to vector<2x32xf32>
    %537 = arith.addf %536, %535 : vector<2x32xf32>
    %538 = arith.divf %536, %537 : vector<2x32xf32>
    %539 = vector.extract_strided_slice %507 {offsets = [0, 32], sizes = [2, 32], strides = [1, 1]} : vector<2x128xf32> to vector<2x32xf32>
    %540 = arith.negf %539 : vector<2x32xf32>
    %541 = math.exp %540 : vector<2x32xf32>
    %cst_84 = arith.constant 1.000000e+00 : f32
    %542 = vector.broadcast %cst_84 : f32 to vector<2x32xf32>
    %543 = arith.addf %542, %541 : vector<2x32xf32>
    %544 = arith.divf %542, %543 : vector<2x32xf32>
    %545 = vector.extract_strided_slice %507 {offsets = [0, 64], sizes = [2, 32], strides = [1, 1]} : vector<2x128xf32> to vector<2x32xf32>
    %546 = math.tanh %545 : vector<2x32xf32>
    %547 = vector.extract_strided_slice %507 {offsets = [0, 96], sizes = [2, 32], strides = [1, 1]} : vector<2x128xf32> to vector<2x32xf32>
    %548 = arith.negf %547 : vector<2x32xf32>
    %549 = math.exp %548 : vector<2x32xf32>
    %cst_85 = arith.constant 1.000000e+00 : f32
    %550 = vector.broadcast %cst_85 : f32 to vector<2x32xf32>
    %551 = arith.addf %550, %549 : vector<2x32xf32>
    %552 = arith.divf %550, %551 : vector<2x32xf32>
    %553 = arith.mulf %544, %491 : vector<2x32xf32>
    %554 = arith.mulf %538, %546 : vector<2x32xf32>
    %555 = arith.addf %553, %554 : vector<2x32xf32>
    %556 = math.tanh %555 : vector<2x32xf32>
    %557 = arith.mulf %552, %556 : vector<2x32xf32>
    %558 = vector.shape_cast %14 : vector<2x1xi1> to vector<2x1xi1>
    %559 = vector.broadcast %558 : vector<2x1xi1> to vector<2x32xi1>
    %560 = arith.select %559, %532, %482 : vector<2x32xi1>, vector<2x32xf32>
    %561 = vector.shape_cast %14 : vector<2x1xi1> to vector<2x1xi1>
    %562 = vector.broadcast %561 : vector<2x1xi1> to vector<2x32xi1>
    %563 = arith.select %562, %530, %485 : vector<2x32xi1>, vector<2x32xf32>
    %564 = vector.shape_cast %4 : vector<2x1xi1> to vector<2x1xi1>
    %565 = vector.broadcast %564 : vector<2x1xi1> to vector<2x32xi1>
    %566 = arith.select %565, %557, %488 : vector<2x32xi1>, vector<2x32xf32>
    %567 = vector.shape_cast %4 : vector<2x1xi1> to vector<2x1xi1>
    %568 = vector.broadcast %567 : vector<2x1xi1> to vector<2x32xi1>
    %569 = arith.select %568, %555, %491 : vector<2x32xi1>, vector<2x32xf32>
    %570 = vector.shape_cast %14 : vector<2x1xi1> to vector<2x1xi1>
    %571 = vector.broadcast %570 : vector<2x1xi1> to vector<2x32xi1>
    %572 = arith.select %571, %560, %17 : vector<2x32xi1>, vector<2x32xf32>
    %c12_86 = arith.constant 12 : index
    %c0_87 = arith.constant 0 : index
    %573 = vector.load %arg13[%c12_86, %c0_87] : memref<16x64xf32, #tpu.memory_space<vmem>>, vector<2x32xf32>
    tpu.vector_store %arg13[%c12_86, %c0_87], %572 {strides = array<i32>} : memref<16x64xf32, #tpu.memory_space<vmem>>, vector<2x32xf32>,
    %574 = vector.shape_cast %4 : vector<2x1xi1> to vector<2x1xi1>
    %575 = vector.broadcast %574 : vector<2x1xi1> to vector<2x32xi1>
    %576 = arith.select %575, %566, %17 : vector<2x32xi1>, vector<2x32xf32>
    %c2_88 = arith.constant 2 : index
    %c32_89 = arith.constant 32 : index
    %577 = vector.load %arg13[%c2_88, %c32_89] : memref<16x64xf32, #tpu.memory_space<vmem>>, vector<2x32xf32>
    tpu.vector_store %arg13[%c2_88, %c32_89], %576 {strides = array<i32>} : memref<16x64xf32, #tpu.memory_space<vmem>>, vector<2x32xf32>,
    %578 = vector.extract_strided_slice %25 {offsets = [14, 0], sizes = [2, 128], strides = [1, 1]} : vector<16x256xf32> to vector<2x128xf32>
    %579 = arith.truncf %560 : vector<2x32xf32> to vector<2x32xbf16>
    %cst_90 = arith.constant dense<0.000000e+00> : vector<2x128xf32>
    %580 = tpu.matmul %579, %26, %cst_90 {dimension_numbers = #tpu.dot_dimension_numbers<[1], [0], [0], [1], [0, 0, 1, 1], [], []>} : vector<2x32xbf16>, vector<32x128xbf16>, vector<2x128xf32> -> vector<2x128xf32>
    %581 = arith.addf %578, %580 : vector<2x128xf32>
    %582 = vector.extract_strided_slice %25 {offsets = [0, 128], sizes = [2, 128], strides = [1, 1]} : vector<16x256xf32> to vector<2x128xf32>
    %583 = arith.truncf %566 : vector<2x32xf32> to vector<2x32xbf16>
    %cst_91 = arith.constant dense<0.000000e+00> : vector<2x128xf32>
    %584 = tpu.matmul %583, %27, %cst_91 {dimension_numbers = #tpu.dot_dimension_numbers<[1], [0], [0], [1], [0, 0, 1, 1], [], []>} : vector<2x32xbf16>, vector<32x128xbf16>, vector<2x128xf32> -> vector<2x128xf32>
    %585 = arith.addf %582, %584 : vector<2x128xf32>
    %586 = vector.extract_strided_slice %581 {offsets = [0, 0], sizes = [2, 32], strides = [1, 1]} : vector<2x128xf32> to vector<2x32xf32>
    %587 = arith.negf %586 : vector<2x32xf32>
    %588 = math.exp %587 : vector<2x32xf32>
    %cst_92 = arith.constant 1.000000e+00 : f32
    %589 = vector.broadcast %cst_92 : f32 to vector<2x32xf32>
    %590 = arith.addf %589, %588 : vector<2x32xf32>
    %591 = arith.divf %589, %590 : vector<2x32xf32>
    %592 = vector.extract_strided_slice %581 {offsets = [0, 32], sizes = [2, 32], strides = [1, 1]} : vector<2x128xf32> to vector<2x32xf32>
    %593 = arith.negf %592 : vector<2x32xf32>
    %594 = math.exp %593 : vector<2x32xf32>
    %cst_93 = arith.constant 1.000000e+00 : f32
    %595 = vector.broadcast %cst_93 : f32 to vector<2x32xf32>
    %596 = arith.addf %595, %594 : vector<2x32xf32>
    %597 = arith.divf %595, %596 : vector<2x32xf32>
    %598 = vector.extract_strided_slice %581 {offsets = [0, 64], sizes = [2, 32], strides = [1, 1]} : vector<2x128xf32> to vector<2x32xf32>
    %599 = math.tanh %598 : vector<2x32xf32>
    %600 = vector.extract_strided_slice %581 {offsets = [0, 96], sizes = [2, 32], strides = [1, 1]} : vector<2x128xf32> to vector<2x32xf32>
    %601 = arith.negf %600 : vector<2x32xf32>
    %602 = math.exp %601 : vector<2x32xf32>
    %cst_94 = arith.constant 1.000000e+00 : f32
    %603 = vector.broadcast %cst_94 : f32 to vector<2x32xf32>
    %604 = arith.addf %603, %602 : vector<2x32xf32>
    %605 = arith.divf %603, %604 : vector<2x32xf32>
    %606 = arith.mulf %597, %563 : vector<2x32xf32>
    %607 = arith.mulf %591, %599 : vector<2x32xf32>
    %608 = arith.addf %606, %607 : vector<2x32xf32>
    %609 = math.tanh %608 : vector<2x32xf32>
    %610 = arith.mulf %605, %609 : vector<2x32xf32>
    %611 = vector.extract_strided_slice %585 {offsets = [0, 0], sizes = [2, 32], strides = [1, 1]} : vector<2x128xf32> to vector<2x32xf32>
    %612 = arith.negf %611 : vector<2x32xf32>
    %613 = math.exp %612 : vector<2x32xf32>
    %cst_95 = arith.constant 1.000000e+00 : f32
    %614 = vector.broadcast %cst_95 : f32 to vector<2x32xf32>
    %615 = arith.addf %614, %613 : vector<2x32xf32>
    %616 = arith.divf %614, %615 : vector<2x32xf32>
    %617 = vector.extract_strided_slice %585 {offsets = [0, 32], sizes = [2, 32], strides = [1, 1]} : vector<2x128xf32> to vector<2x32xf32>
    %618 = arith.negf %617 : vector<2x32xf32>
    %619 = math.exp %618 : vector<2x32xf32>
    %cst_96 = arith.constant 1.000000e+00 : f32
    %620 = vector.broadcast %cst_96 : f32 to vector<2x32xf32>
    %621 = arith.addf %620, %619 : vector<2x32xf32>
    %622 = arith.divf %620, %621 : vector<2x32xf32>
    %623 = vector.extract_strided_slice %585 {offsets = [0, 64], sizes = [2, 32], strides = [1, 1]} : vector<2x128xf32> to vector<2x32xf32>
    %624 = math.tanh %623 : vector<2x32xf32>
    %625 = vector.extract_strided_slice %585 {offsets = [0, 96], sizes = [2, 32], strides = [1, 1]} : vector<2x128xf32> to vector<2x32xf32>
    %626 = arith.negf %625 : vector<2x32xf32>
    %627 = math.exp %626 : vector<2x32xf32>
    %cst_97 = arith.constant 1.000000e+00 : f32
    %628 = vector.broadcast %cst_97 : f32 to vector<2x32xf32>
    %629 = arith.addf %628, %627 : vector<2x32xf32>
    %630 = arith.divf %628, %629 : vector<2x32xf32>
    %631 = arith.mulf %622, %569 : vector<2x32xf32>
    %632 = arith.mulf %616, %624 : vector<2x32xf32>
    %633 = arith.addf %631, %632 : vector<2x32xf32>
    %634 = math.tanh %633 : vector<2x32xf32>
    %635 = arith.mulf %630, %634 : vector<2x32xf32>
    %636 = vector.shape_cast %16 : vector<2x1xi1> to vector<2x1xi1>
    %637 = vector.broadcast %636 : vector<2x1xi1> to vector<2x32xi1>
    %638 = arith.select %637, %610, %560 : vector<2x32xi1>, vector<2x32xf32>
    %639 = vector.shape_cast %2 : vector<2x1xi1> to vector<2x1xi1>
    %640 = vector.broadcast %639 : vector<2x1xi1> to vector<2x32xi1>
    %641 = arith.select %640, %635, %566 : vector<2x32xi1>, vector<2x32xf32>
    %642 = vector.shape_cast %16 : vector<2x1xi1> to vector<2x1xi1>
    %643 = vector.broadcast %642 : vector<2x1xi1> to vector<2x32xi1>
    %644 = arith.select %643, %638, %17 : vector<2x32xi1>, vector<2x32xf32>
    %c14_98 = arith.constant 14 : index
    %c0_99 = arith.constant 0 : index
    %645 = vector.load %arg13[%c14_98, %c0_99] : memref<16x64xf32, #tpu.memory_space<vmem>>, vector<2x32xf32>
    tpu.vector_store %arg13[%c14_98, %c0_99], %644 {strides = array<i32>} : memref<16x64xf32, #tpu.memory_space<vmem>>, vector<2x32xf32>,
    %646 = vector.shape_cast %2 : vector<2x1xi1> to vector<2x1xi1>
    %647 = vector.broadcast %646 : vector<2x1xi1> to vector<2x32xi1>
    %648 = arith.select %647, %641, %17 : vector<2x32xi1>, vector<2x32xf32>
    %c0_100 = arith.constant 0 : index
    %c32_101 = arith.constant 32 : index
    %649 = vector.load %arg13[%c0_100, %c32_101] : memref<16x64xf32, #tpu.memory_space<vmem>>, vector<2x32xf32>
    tpu.vector_store %arg13[%c0_100, %c32_101], %648 {strides = array<i32>} : memref<16x64xf32, #tpu.memory_space<vmem>>, vector<2x32xf32>,
    %c0_102 = arith.constant 0 : index
    %c0_103 = arith.constant 0 : index
    %650 = vector.load %arg13[%c0_102, %c0_103] : memref<16x64xf32, #tpu.memory_space<vmem>>, vector<16x64xf32>
    %c0_104 = arith.constant 0 : index
    %c0_105 = arith.constant 0 : index
    %651 = vector.load %arg7[%c0_104, %c0_105] : memref<64x256xbf16, #tpu.memory_space<vmem>>, vector<64x256xbf16>
    %c0_106 = arith.constant 0 : index
    %c0_107 = arith.constant 0 : index
    %652 = vector.load %arg8[%c0_106, %c0_107] : memref<32x256xbf16, #tpu.memory_space<vmem>>, vector<32x256xbf16>
    %c0_108 = arith.constant 0 : index
    %c0_109 = arith.constant 0 : index
    %653 = vector.load %arg9[%c0_108, %c0_109] : memref<1x256xf32, #tpu.memory_space<vmem>>, vector<1x256xf32>
    %654 = arith.truncf %650 : vector<16x64xf32> to vector<16x64xbf16>
    %cst_110 = arith.constant dense<0.000000e+00> : vector<16x256xf32>
    %655 = tpu.matmul %654, %651, %cst_110 {dimension_numbers = #tpu.dot_dimension_numbers<[1], [0], [0], [1], [0, 0, 1, 1], [], []>} : vector<16x64xbf16>, vector<64x256xbf16>, vector<16x256xf32> -> vector<16x256xf32>
    %656 = vector.broadcast %653 : vector<1x256xf32> to vector<16x256xf32>
    %657 = arith.addf %655, %656 : vector<16x256xf32>
    %658 = vector.extract_strided_slice %652 {offsets = [0, 0], sizes = [32, 128], strides = [1, 1]} : vector<32x256xbf16> to vector<32x128xbf16>
    %659 = vector.extract_strided_slice %652 {offsets = [0, 128], sizes = [32, 128], strides = [1, 1]} : vector<32x256xbf16> to vector<32x128xbf16>
    %cst_111 = arith.constant 0.000000e+00 : f32
    %660 = vector.broadcast %cst_111 : f32 to vector<2x32xf32>
    %cst_112 = arith.constant 0.000000e+00 : f32
    %661 = vector.broadcast %cst_112 : f32 to vector<2x32xf32>
    %cst_113 = arith.constant 0.000000e+00 : f32
    %662 = vector.broadcast %cst_113 : f32 to vector<2x32xf32>
    %cst_114 = arith.constant 0.000000e+00 : f32
    %663 = vector.broadcast %cst_114 : f32 to vector<2x32xf32>
    %664 = vector.extract_strided_slice %657 {offsets = [0, 0], sizes = [2, 128], strides = [1, 1]} : vector<16x256xf32> to vector<2x128xf32>
    %665 = arith.truncf %660 : vector<2x32xf32> to vector<2x32xbf16>
    %cst_115 = arith.constant dense<0.000000e+00> : vector<2x128xf32>
    %666 = tpu.matmul %665, %658, %cst_115 {dimension_numbers = #tpu.dot_dimension_numbers<[1], [0], [0], [1], [0, 0, 1, 1], [], []>} : vector<2x32xbf16>, vector<32x128xbf16>, vector<2x128xf32> -> vector<2x128xf32>
    %667 = arith.addf %664, %666 : vector<2x128xf32>
    %668 = vector.extract_strided_slice %657 {offsets = [14, 128], sizes = [2, 128], strides = [1, 1]} : vector<16x256xf32> to vector<2x128xf32>
    %669 = arith.truncf %662 : vector<2x32xf32> to vector<2x32xbf16>
    %cst_116 = arith.constant dense<0.000000e+00> : vector<2x128xf32>
    %670 = tpu.matmul %669, %659, %cst_116 {dimension_numbers = #tpu.dot_dimension_numbers<[1], [0], [0], [1], [0, 0, 1, 1], [], []>} : vector<2x32xbf16>, vector<32x128xbf16>, vector<2x128xf32> -> vector<2x128xf32>
    %671 = arith.addf %668, %670 : vector<2x128xf32>
    %672 = vector.extract_strided_slice %667 {offsets = [0, 0], sizes = [2, 32], strides = [1, 1]} : vector<2x128xf32> to vector<2x32xf32>
    %673 = arith.negf %672 : vector<2x32xf32>
    %674 = math.exp %673 : vector<2x32xf32>
    %cst_117 = arith.constant 1.000000e+00 : f32
    %675 = vector.broadcast %cst_117 : f32 to vector<2x32xf32>
    %676 = arith.addf %675, %674 : vector<2x32xf32>
    %677 = arith.divf %675, %676 : vector<2x32xf32>
    %678 = vector.extract_strided_slice %667 {offsets = [0, 32], sizes = [2, 32], strides = [1, 1]} : vector<2x128xf32> to vector<2x32xf32>
    %679 = arith.negf %678 : vector<2x32xf32>
    %680 = math.exp %679 : vector<2x32xf32>
    %cst_118 = arith.constant 1.000000e+00 : f32
    %681 = vector.broadcast %cst_118 : f32 to vector<2x32xf32>
    %682 = arith.addf %681, %680 : vector<2x32xf32>
    %683 = arith.divf %681, %682 : vector<2x32xf32>
    %684 = vector.extract_strided_slice %667 {offsets = [0, 64], sizes = [2, 32], strides = [1, 1]} : vector<2x128xf32> to vector<2x32xf32>
    %685 = math.tanh %684 : vector<2x32xf32>
    %686 = vector.extract_strided_slice %667 {offsets = [0, 96], sizes = [2, 32], strides = [1, 1]} : vector<2x128xf32> to vector<2x32xf32>
    %687 = arith.negf %686 : vector<2x32xf32>
    %688 = math.exp %687 : vector<2x32xf32>
    %cst_119 = arith.constant 1.000000e+00 : f32
    %689 = vector.broadcast %cst_119 : f32 to vector<2x32xf32>
    %690 = arith.addf %689, %688 : vector<2x32xf32>
    %691 = arith.divf %689, %690 : vector<2x32xf32>
    %692 = arith.mulf %683, %661 : vector<2x32xf32>
    %693 = arith.mulf %677, %685 : vector<2x32xf32>
    %694 = arith.addf %692, %693 : vector<2x32xf32>
    %695 = math.tanh %694 : vector<2x32xf32>
    %696 = arith.mulf %691, %695 : vector<2x32xf32>
    %697 = vector.extract_strided_slice %671 {offsets = [0, 0], sizes = [2, 32], strides = [1, 1]} : vector<2x128xf32> to vector<2x32xf32>
    %698 = arith.negf %697 : vector<2x32xf32>
    %699 = math.exp %698 : vector<2x32xf32>
    %cst_120 = arith.constant 1.000000e+00 : f32
    %700 = vector.broadcast %cst_120 : f32 to vector<2x32xf32>
    %701 = arith.addf %700, %699 : vector<2x32xf32>
    %702 = arith.divf %700, %701 : vector<2x32xf32>
    %703 = vector.extract_strided_slice %671 {offsets = [0, 32], sizes = [2, 32], strides = [1, 1]} : vector<2x128xf32> to vector<2x32xf32>
    %704 = arith.negf %703 : vector<2x32xf32>
    %705 = math.exp %704 : vector<2x32xf32>
    %cst_121 = arith.constant 1.000000e+00 : f32
    %706 = vector.broadcast %cst_121 : f32 to vector<2x32xf32>
    %707 = arith.addf %706, %705 : vector<2x32xf32>
    %708 = arith.divf %706, %707 : vector<2x32xf32>
    %709 = vector.extract_strided_slice %671 {offsets = [0, 64], sizes = [2, 32], strides = [1, 1]} : vector<2x128xf32> to vector<2x32xf32>
    %710 = math.tanh %709 : vector<2x32xf32>
    %711 = vector.extract_strided_slice %671 {offsets = [0, 96], sizes = [2, 32], strides = [1, 1]} : vector<2x128xf32> to vector<2x32xf32>
    %712 = arith.negf %711 : vector<2x32xf32>
    %713 = math.exp %712 : vector<2x32xf32>
    %cst_122 = arith.constant 1.000000e+00 : f32
    %714 = vector.broadcast %cst_122 : f32 to vector<2x32xf32>
    %715 = arith.addf %714, %713 : vector<2x32xf32>
    %716 = arith.divf %714, %715 : vector<2x32xf32>
    %717 = arith.mulf %708, %663 : vector<2x32xf32>
    %718 = arith.mulf %702, %710 : vector<2x32xf32>
    %719 = arith.addf %717, %718 : vector<2x32xf32>
    %720 = math.tanh %719 : vector<2x32xf32>
    %721 = arith.mulf %716, %720 : vector<2x32xf32>
    %722 = vector.shape_cast %2 : vector<2x1xi1> to vector<2x1xi1>
    %723 = vector.broadcast %722 : vector<2x1xi1> to vector<2x32xi1>
    %724 = arith.select %723, %696, %660 : vector<2x32xi1>, vector<2x32xf32>
    %725 = vector.shape_cast %2 : vector<2x1xi1> to vector<2x1xi1>
    %726 = vector.broadcast %725 : vector<2x1xi1> to vector<2x32xi1>
    %727 = arith.select %726, %694, %661 : vector<2x32xi1>, vector<2x32xf32>
    %728 = vector.shape_cast %16 : vector<2x1xi1> to vector<2x1xi1>
    %729 = vector.broadcast %728 : vector<2x1xi1> to vector<2x32xi1>
    %730 = arith.select %729, %721, %662 : vector<2x32xi1>, vector<2x32xf32>
    %731 = vector.shape_cast %16 : vector<2x1xi1> to vector<2x1xi1>
    %732 = vector.broadcast %731 : vector<2x1xi1> to vector<2x32xi1>
    %733 = arith.select %732, %719, %663 : vector<2x32xi1>, vector<2x32xf32>
    %734 = vector.shape_cast %2 : vector<2x1xi1> to vector<2x1xi1>
    %735 = vector.broadcast %734 : vector<2x1xi1> to vector<2x32xi1>
    %736 = arith.select %735, %724, %17 : vector<2x32xi1>, vector<2x32xf32>
    %c0_123 = arith.constant 0 : index
    %c0_124 = arith.constant 0 : index
    %737 = vector.load %arg13[%c0_123, %c0_124] : memref<16x64xf32, #tpu.memory_space<vmem>>, vector<2x32xf32>
    tpu.vector_store %arg13[%c0_123, %c0_124], %736 {strides = array<i32>} : memref<16x64xf32, #tpu.memory_space<vmem>>, vector<2x32xf32>,
    %738 = vector.shape_cast %16 : vector<2x1xi1> to vector<2x1xi1>
    %739 = vector.broadcast %738 : vector<2x1xi1> to vector<2x32xi1>
    %740 = arith.select %739, %730, %17 : vector<2x32xi1>, vector<2x32xf32>
    %c14_125 = arith.constant 14 : index
    %c32_126 = arith.constant 32 : index
    %741 = vector.load %arg13[%c14_125, %c32_126] : memref<16x64xf32, #tpu.memory_space<vmem>>, vector<2x32xf32>
    tpu.vector_store %arg13[%c14_125, %c32_126], %740 {strides = array<i32>} : memref<16x64xf32, #tpu.memory_space<vmem>>, vector<2x32xf32>,
    %742 = vector.extract_strided_slice %657 {offsets = [2, 0], sizes = [2, 128], strides = [1, 1]} : vector<16x256xf32> to vector<2x128xf32>
    %743 = arith.truncf %724 : vector<2x32xf32> to vector<2x32xbf16>
    %cst_127 = arith.constant dense<0.000000e+00> : vector<2x128xf32>
    %744 = tpu.matmul %743, %658, %cst_127 {dimension_numbers = #tpu.dot_dimension_numbers<[1], [0], [0], [1], [0, 0, 1, 1], [], []>} : vector<2x32xbf16>, vector<32x128xbf16>, vector<2x128xf32> -> vector<2x128xf32>
    %745 = arith.addf %742, %744 : vector<2x128xf32>
    %746 = vector.extract_strided_slice %657 {offsets = [12, 128], sizes = [2, 128], strides = [1, 1]} : vector<16x256xf32> to vector<2x128xf32>
    %747 = arith.truncf %730 : vector<2x32xf32> to vector<2x32xbf16>
    %cst_128 = arith.constant dense<0.000000e+00> : vector<2x128xf32>
    %748 = tpu.matmul %747, %659, %cst_128 {dimension_numbers = #tpu.dot_dimension_numbers<[1], [0], [0], [1], [0, 0, 1, 1], [], []>} : vector<2x32xbf16>, vector<32x128xbf16>, vector<2x128xf32> -> vector<2x128xf32>
    %749 = arith.addf %746, %748 : vector<2x128xf32>
    %750 = vector.extract_strided_slice %745 {offsets = [0, 0], sizes = [2, 32], strides = [1, 1]} : vector<2x128xf32> to vector<2x32xf32>
    %751 = arith.negf %750 : vector<2x32xf32>
    %752 = math.exp %751 : vector<2x32xf32>
    %cst_129 = arith.constant 1.000000e+00 : f32
    %753 = vector.broadcast %cst_129 : f32 to vector<2x32xf32>
    %754 = arith.addf %753, %752 : vector<2x32xf32>
    %755 = arith.divf %753, %754 : vector<2x32xf32>
    %756 = vector.extract_strided_slice %745 {offsets = [0, 32], sizes = [2, 32], strides = [1, 1]} : vector<2x128xf32> to vector<2x32xf32>
    %757 = arith.negf %756 : vector<2x32xf32>
    %758 = math.exp %757 : vector<2x32xf32>
    %cst_130 = arith.constant 1.000000e+00 : f32
    %759 = vector.broadcast %cst_130 : f32 to vector<2x32xf32>
    %760 = arith.addf %759, %758 : vector<2x32xf32>
    %761 = arith.divf %759, %760 : vector<2x32xf32>
    %762 = vector.extract_strided_slice %745 {offsets = [0, 64], sizes = [2, 32], strides = [1, 1]} : vector<2x128xf32> to vector<2x32xf32>
    %763 = math.tanh %762 : vector<2x32xf32>
    %764 = vector.extract_strided_slice %745 {offsets = [0, 96], sizes = [2, 32], strides = [1, 1]} : vector<2x128xf32> to vector<2x32xf32>
    %765 = arith.negf %764 : vector<2x32xf32>
    %766 = math.exp %765 : vector<2x32xf32>
    %cst_131 = arith.constant 1.000000e+00 : f32
    %767 = vector.broadcast %cst_131 : f32 to vector<2x32xf32>
    %768 = arith.addf %767, %766 : vector<2x32xf32>
    %769 = arith.divf %767, %768 : vector<2x32xf32>
    %770 = arith.mulf %761, %727 : vector<2x32xf32>
    %771 = arith.mulf %755, %763 : vector<2x32xf32>
    %772 = arith.addf %770, %771 : vector<2x32xf32>
    %773 = math.tanh %772 : vector<2x32xf32>
    %774 = arith.mulf %769, %773 : vector<2x32xf32>
    %775 = vector.extract_strided_slice %749 {offsets = [0, 0], sizes = [2, 32], strides = [1, 1]} : vector<2x128xf32> to vector<2x32xf32>
    %776 = arith.negf %775 : vector<2x32xf32>
    %777 = math.exp %776 : vector<2x32xf32>
    %cst_132 = arith.constant 1.000000e+00 : f32
    %778 = vector.broadcast %cst_132 : f32 to vector<2x32xf32>
    %779 = arith.addf %778, %777 : vector<2x32xf32>
    %780 = arith.divf %778, %779 : vector<2x32xf32>
    %781 = vector.extract_strided_slice %749 {offsets = [0, 32], sizes = [2, 32], strides = [1, 1]} : vector<2x128xf32> to vector<2x32xf32>
    %782 = arith.negf %781 : vector<2x32xf32>
    %783 = math.exp %782 : vector<2x32xf32>
    %cst_133 = arith.constant 1.000000e+00 : f32
    %784 = vector.broadcast %cst_133 : f32 to vector<2x32xf32>
    %785 = arith.addf %784, %783 : vector<2x32xf32>
    %786 = arith.divf %784, %785 : vector<2x32xf32>
    %787 = vector.extract_strided_slice %749 {offsets = [0, 64], sizes = [2, 32], strides = [1, 1]} : vector<2x128xf32> to vector<2x32xf32>
    %788 = math.tanh %787 : vector<2x32xf32>
    %789 = vector.extract_strided_slice %749 {offsets = [0, 96], sizes = [2, 32], strides = [1, 1]} : vector<2x128xf32> to vector<2x32xf32>
    %790 = arith.negf %789 : vector<2x32xf32>
    %791 = math.exp %790 : vector<2x32xf32>
    %cst_134 = arith.constant 1.000000e+00 : f32
    %792 = vector.broadcast %cst_134 : f32 to vector<2x32xf32>
    %793 = arith.addf %792, %791 : vector<2x32xf32>
    %794 = arith.divf %792, %793 : vector<2x32xf32>
    %795 = arith.mulf %786, %733 : vector<2x32xf32>
    %796 = arith.mulf %780, %788 : vector<2x32xf32>
    %797 = arith.addf %795, %796 : vector<2x32xf32>
    %798 = math.tanh %797 : vector<2x32xf32>
    %799 = arith.mulf %794, %798 : vector<2x32xf32>
    %800 = vector.shape_cast %4 : vector<2x1xi1> to vector<2x1xi1>
    %801 = vector.broadcast %800 : vector<2x1xi1> to vector<2x32xi1>
    %802 = arith.select %801, %774, %724 : vector<2x32xi1>, vector<2x32xf32>
    %803 = vector.shape_cast %4 : vector<2x1xi1> to vector<2x1xi1>
    %804 = vector.broadcast %803 : vector<2x1xi1> to vector<2x32xi1>
    %805 = arith.select %804, %772, %727 : vector<2x32xi1>, vector<2x32xf32>
    %806 = vector.shape_cast %14 : vector<2x1xi1> to vector<2x1xi1>
    %807 = vector.broadcast %806 : vector<2x1xi1> to vector<2x32xi1>
    %808 = arith.select %807, %799, %730 : vector<2x32xi1>, vector<2x32xf32>
    %809 = vector.shape_cast %14 : vector<2x1xi1> to vector<2x1xi1>
    %810 = vector.broadcast %809 : vector<2x1xi1> to vector<2x32xi1>
    %811 = arith.select %810, %797, %733 : vector<2x32xi1>, vector<2x32xf32>
    %812 = vector.shape_cast %4 : vector<2x1xi1> to vector<2x1xi1>
    %813 = vector.broadcast %812 : vector<2x1xi1> to vector<2x32xi1>
    %814 = arith.select %813, %802, %17 : vector<2x32xi1>, vector<2x32xf32>
    %c2_135 = arith.constant 2 : index
    %c0_136 = arith.constant 0 : index
    %815 = vector.load %arg13[%c2_135, %c0_136] : memref<16x64xf32, #tpu.memory_space<vmem>>, vector<2x32xf32>
    tpu.vector_store %arg13[%c2_135, %c0_136], %814 {strides = array<i32>} : memref<16x64xf32, #tpu.memory_space<vmem>>, vector<2x32xf32>,
    %816 = vector.shape_cast %14 : vector<2x1xi1> to vector<2x1xi1>
    %817 = vector.broadcast %816 : vector<2x1xi1> to vector<2x32xi1>
    %818 = arith.select %817, %808, %17 : vector<2x32xi1>, vector<2x32xf32>
    %c12_137 = arith.constant 12 : index
    %c32_138 = arith.constant 32 : index
    %819 = vector.load %arg13[%c12_137, %c32_138] : memref<16x64xf32, #tpu.memory_space<vmem>>, vector<2x32xf32>
    tpu.vector_store %arg13[%c12_137, %c32_138], %818 {strides = array<i32>} : memref<16x64xf32, #tpu.memory_space<vmem>>, vector<2x32xf32>,
    %820 = vector.extract_strided_slice %657 {offsets = [4, 0], sizes = [2, 128], strides = [1, 1]} : vector<16x256xf32> to vector<2x128xf32>
    %821 = arith.truncf %802 : vector<2x32xf32> to vector<2x32xbf16>
    %cst_139 = arith.constant dense<0.000000e+00> : vector<2x128xf32>
    %822 = tpu.matmul %821, %658, %cst_139 {dimension_numbers = #tpu.dot_dimension_numbers<[1], [0], [0], [1], [0, 0, 1, 1], [], []>} : vector<2x32xbf16>, vector<32x128xbf16>, vector<2x128xf32> -> vector<2x128xf32>
    %823 = arith.addf %820, %822 : vector<2x128xf32>
    %824 = vector.extract_strided_slice %657 {offsets = [10, 128], sizes = [2, 128], strides = [1, 1]} : vector<16x256xf32> to vector<2x128xf32>
    %825 = arith.truncf %808 : vector<2x32xf32> to vector<2x32xbf16>
    %cst_140 = arith.constant dense<0.000000e+00> : vector<2x128xf32>
    %826 = tpu.matmul %825, %659, %cst_140 {dimension_numbers = #tpu.dot_dimension_numbers<[1], [0], [0], [1], [0, 0, 1, 1], [], []>} : vector<2x32xbf16>, vector<32x128xbf16>, vector<2x128xf32> -> vector<2x128xf32>
    %827 = arith.addf %824, %826 : vector<2x128xf32>
    %828 = vector.extract_strided_slice %823 {offsets = [0, 0], sizes = [2, 32], strides = [1, 1]} : vector<2x128xf32> to vector<2x32xf32>
    %829 = arith.negf %828 : vector<2x32xf32>
    %830 = math.exp %829 : vector<2x32xf32>
    %cst_141 = arith.constant 1.000000e+00 : f32
    %831 = vector.broadcast %cst_141 : f32 to vector<2x32xf32>
    %832 = arith.addf %831, %830 : vector<2x32xf32>
    %833 = arith.divf %831, %832 : vector<2x32xf32>
    %834 = vector.extract_strided_slice %823 {offsets = [0, 32], sizes = [2, 32], strides = [1, 1]} : vector<2x128xf32> to vector<2x32xf32>
    %835 = arith.negf %834 : vector<2x32xf32>
    %836 = math.exp %835 : vector<2x32xf32>
    %cst_142 = arith.constant 1.000000e+00 : f32
    %837 = vector.broadcast %cst_142 : f32 to vector<2x32xf32>
    %838 = arith.addf %837, %836 : vector<2x32xf32>
    %839 = arith.divf %837, %838 : vector<2x32xf32>
    %840 = vector.extract_strided_slice %823 {offsets = [0, 64], sizes = [2, 32], strides = [1, 1]} : vector<2x128xf32> to vector<2x32xf32>
    %841 = math.tanh %840 : vector<2x32xf32>
    %842 = vector.extract_strided_slice %823 {offsets = [0, 96], sizes = [2, 32], strides = [1, 1]} : vector<2x128xf32> to vector<2x32xf32>
    %843 = arith.negf %842 : vector<2x32xf32>
    %844 = math.exp %843 : vector<2x32xf32>
    %cst_143 = arith.constant 1.000000e+00 : f32
    %845 = vector.broadcast %cst_143 : f32 to vector<2x32xf32>
    %846 = arith.addf %845, %844 : vector<2x32xf32>
    %847 = arith.divf %845, %846 : vector<2x32xf32>
    %848 = arith.mulf %839, %805 : vector<2x32xf32>
    %849 = arith.mulf %833, %841 : vector<2x32xf32>
    %850 = arith.addf %848, %849 : vector<2x32xf32>
    %851 = math.tanh %850 : vector<2x32xf32>
    %852 = arith.mulf %847, %851 : vector<2x32xf32>
    %853 = vector.extract_strided_slice %827 {offsets = [0, 0], sizes = [2, 32], strides = [1, 1]} : vector<2x128xf32> to vector<2x32xf32>
    %854 = arith.negf %853 : vector<2x32xf32>
    %855 = math.exp %854 : vector<2x32xf32>
    %cst_144 = arith.constant 1.000000e+00 : f32
    %856 = vector.broadcast %cst_144 : f32 to vector<2x32xf32>
    %857 = arith.addf %856, %855 : vector<2x32xf32>
    %858 = arith.divf %856, %857 : vector<2x32xf32>
    %859 = vector.extract_strided_slice %827 {offsets = [0, 32], sizes = [2, 32], strides = [1, 1]} : vector<2x128xf32> to vector<2x32xf32>
    %860 = arith.negf %859 : vector<2x32xf32>
    %861 = math.exp %860 : vector<2x32xf32>
    %cst_145 = arith.constant 1.000000e+00 : f32
    %862 = vector.broadcast %cst_145 : f32 to vector<2x32xf32>
    %863 = arith.addf %862, %861 : vector<2x32xf32>
    %864 = arith.divf %862, %863 : vector<2x32xf32>
    %865 = vector.extract_strided_slice %827 {offsets = [0, 64], sizes = [2, 32], strides = [1, 1]} : vector<2x128xf32> to vector<2x32xf32>
    %866 = math.tanh %865 : vector<2x32xf32>
    %867 = vector.extract_strided_slice %827 {offsets = [0, 96], sizes = [2, 32], strides = [1, 1]} : vector<2x128xf32> to vector<2x32xf32>
    %868 = arith.negf %867 : vector<2x32xf32>
    %869 = math.exp %868 : vector<2x32xf32>
    %cst_146 = arith.constant 1.000000e+00 : f32
    %870 = vector.broadcast %cst_146 : f32 to vector<2x32xf32>
    %871 = arith.addf %870, %869 : vector<2x32xf32>
    %872 = arith.divf %870, %871 : vector<2x32xf32>
    %873 = arith.mulf %864, %811 : vector<2x32xf32>
    %874 = arith.mulf %858, %866 : vector<2x32xf32>
    %875 = arith.addf %873, %874 : vector<2x32xf32>
    %876 = math.tanh %875 : vector<2x32xf32>
    %877 = arith.mulf %872, %876 : vector<2x32xf32>
    %878 = vector.shape_cast %6 : vector<2x1xi1> to vector<2x1xi1>
    %879 = vector.broadcast %878 : vector<2x1xi1> to vector<2x32xi1>
    %880 = arith.select %879, %852, %802 : vector<2x32xi1>, vector<2x32xf32>
    %881 = vector.shape_cast %6 : vector<2x1xi1> to vector<2x1xi1>
    %882 = vector.broadcast %881 : vector<2x1xi1> to vector<2x32xi1>
    %883 = arith.select %882, %850, %805 : vector<2x32xi1>, vector<2x32xf32>
    %884 = vector.shape_cast %12 : vector<2x1xi1> to vector<2x1xi1>
    %885 = vector.broadcast %884 : vector<2x1xi1> to vector<2x32xi1>
    %886 = arith.select %885, %877, %808 : vector<2x32xi1>, vector<2x32xf32>
    %887 = vector.shape_cast %12 : vector<2x1xi1> to vector<2x1xi1>
    %888 = vector.broadcast %887 : vector<2x1xi1> to vector<2x32xi1>
    %889 = arith.select %888, %875, %811 : vector<2x32xi1>, vector<2x32xf32>
    %890 = vector.shape_cast %6 : vector<2x1xi1> to vector<2x1xi1>
    %891 = vector.broadcast %890 : vector<2x1xi1> to vector<2x32xi1>
    %892 = arith.select %891, %880, %17 : vector<2x32xi1>, vector<2x32xf32>
    %c4_147 = arith.constant 4 : index
    %c0_148 = arith.constant 0 : index
    %893 = vector.load %arg13[%c4_147, %c0_148] : memref<16x64xf32, #tpu.memory_space<vmem>>, vector<2x32xf32>
    tpu.vector_store %arg13[%c4_147, %c0_148], %892 {strides = array<i32>} : memref<16x64xf32, #tpu.memory_space<vmem>>, vector<2x32xf32>,
    %894 = vector.shape_cast %12 : vector<2x1xi1> to vector<2x1xi1>
    %895 = vector.broadcast %894 : vector<2x1xi1> to vector<2x32xi1>
    %896 = arith.select %895, %886, %17 : vector<2x32xi1>, vector<2x32xf32>
    %c10_149 = arith.constant 10 : index
    %c32_150 = arith.constant 32 : index
    %897 = vector.load %arg13[%c10_149, %c32_150] : memref<16x64xf32, #tpu.memory_space<vmem>>, vector<2x32xf32>
    tpu.vector_store %arg13[%c10_149, %c32_150], %896 {strides = array<i32>} : memref<16x64xf32, #tpu.memory_space<vmem>>, vector<2x32xf32>,
    %898 = vector.extract_strided_slice %657 {offsets = [6, 0], sizes = [2, 128], strides = [1, 1]} : vector<16x256xf32> to vector<2x128xf32>
    %899 = arith.truncf %880 : vector<2x32xf32> to vector<2x32xbf16>
    %cst_151 = arith.constant dense<0.000000e+00> : vector<2x128xf32>
    %900 = tpu.matmul %899, %658, %cst_151 {dimension_numbers = #tpu.dot_dimension_numbers<[1], [0], [0], [1], [0, 0, 1, 1], [], []>} : vector<2x32xbf16>, vector<32x128xbf16>, vector<2x128xf32> -> vector<2x128xf32>
    %901 = arith.addf %898, %900 : vector<2x128xf32>
    %902 = vector.extract_strided_slice %657 {offsets = [8, 128], sizes = [2, 128], strides = [1, 1]} : vector<16x256xf32> to vector<2x128xf32>
    %903 = arith.truncf %886 : vector<2x32xf32> to vector<2x32xbf16>
    %cst_152 = arith.constant dense<0.000000e+00> : vector<2x128xf32>
    %904 = tpu.matmul %903, %659, %cst_152 {dimension_numbers = #tpu.dot_dimension_numbers<[1], [0], [0], [1], [0, 0, 1, 1], [], []>} : vector<2x32xbf16>, vector<32x128xbf16>, vector<2x128xf32> -> vector<2x128xf32>
    %905 = arith.addf %902, %904 : vector<2x128xf32>
    %906 = vector.extract_strided_slice %901 {offsets = [0, 0], sizes = [2, 32], strides = [1, 1]} : vector<2x128xf32> to vector<2x32xf32>
    %907 = arith.negf %906 : vector<2x32xf32>
    %908 = math.exp %907 : vector<2x32xf32>
    %cst_153 = arith.constant 1.000000e+00 : f32
    %909 = vector.broadcast %cst_153 : f32 to vector<2x32xf32>
    %910 = arith.addf %909, %908 : vector<2x32xf32>
    %911 = arith.divf %909, %910 : vector<2x32xf32>
    %912 = vector.extract_strided_slice %901 {offsets = [0, 32], sizes = [2, 32], strides = [1, 1]} : vector<2x128xf32> to vector<2x32xf32>
    %913 = arith.negf %912 : vector<2x32xf32>
    %914 = math.exp %913 : vector<2x32xf32>
    %cst_154 = arith.constant 1.000000e+00 : f32
    %915 = vector.broadcast %cst_154 : f32 to vector<2x32xf32>
    %916 = arith.addf %915, %914 : vector<2x32xf32>
    %917 = arith.divf %915, %916 : vector<2x32xf32>
    %918 = vector.extract_strided_slice %901 {offsets = [0, 64], sizes = [2, 32], strides = [1, 1]} : vector<2x128xf32> to vector<2x32xf32>
    %919 = math.tanh %918 : vector<2x32xf32>
    %920 = vector.extract_strided_slice %901 {offsets = [0, 96], sizes = [2, 32], strides = [1, 1]} : vector<2x128xf32> to vector<2x32xf32>
    %921 = arith.negf %920 : vector<2x32xf32>
    %922 = math.exp %921 : vector<2x32xf32>
    %cst_155 = arith.constant 1.000000e+00 : f32
    %923 = vector.broadcast %cst_155 : f32 to vector<2x32xf32>
    %924 = arith.addf %923, %922 : vector<2x32xf32>
    %925 = arith.divf %923, %924 : vector<2x32xf32>
    %926 = arith.mulf %917, %883 : vector<2x32xf32>
    %927 = arith.mulf %911, %919 : vector<2x32xf32>
    %928 = arith.addf %926, %927 : vector<2x32xf32>
    %929 = math.tanh %928 : vector<2x32xf32>
    %930 = arith.mulf %925, %929 : vector<2x32xf32>
    %931 = vector.extract_strided_slice %905 {offsets = [0, 0], sizes = [2, 32], strides = [1, 1]} : vector<2x128xf32> to vector<2x32xf32>
    %932 = arith.negf %931 : vector<2x32xf32>
    %933 = math.exp %932 : vector<2x32xf32>
    %cst_156 = arith.constant 1.000000e+00 : f32
    %934 = vector.broadcast %cst_156 : f32 to vector<2x32xf32>
    %935 = arith.addf %934, %933 : vector<2x32xf32>
    %936 = arith.divf %934, %935 : vector<2x32xf32>
    %937 = vector.extract_strided_slice %905 {offsets = [0, 32], sizes = [2, 32], strides = [1, 1]} : vector<2x128xf32> to vector<2x32xf32>
    %938 = arith.negf %937 : vector<2x32xf32>
    %939 = math.exp %938 : vector<2x32xf32>
    %cst_157 = arith.constant 1.000000e+00 : f32
    %940 = vector.broadcast %cst_157 : f32 to vector<2x32xf32>
    %941 = arith.addf %940, %939 : vector<2x32xf32>
    %942 = arith.divf %940, %941 : vector<2x32xf32>
    %943 = vector.extract_strided_slice %905 {offsets = [0, 64], sizes = [2, 32], strides = [1, 1]} : vector<2x128xf32> to vector<2x32xf32>
    %944 = math.tanh %943 : vector<2x32xf32>
    %945 = vector.extract_strided_slice %905 {offsets = [0, 96], sizes = [2, 32], strides = [1, 1]} : vector<2x128xf32> to vector<2x32xf32>
    %946 = arith.negf %945 : vector<2x32xf32>
    %947 = math.exp %946 : vector<2x32xf32>
    %cst_158 = arith.constant 1.000000e+00 : f32
    %948 = vector.broadcast %cst_158 : f32 to vector<2x32xf32>
    %949 = arith.addf %948, %947 : vector<2x32xf32>
    %950 = arith.divf %948, %949 : vector<2x32xf32>
    %951 = arith.mulf %942, %889 : vector<2x32xf32>
    %952 = arith.mulf %936, %944 : vector<2x32xf32>
    %953 = arith.addf %951, %952 : vector<2x32xf32>
    %954 = math.tanh %953 : vector<2x32xf32>
    %955 = arith.mulf %950, %954 : vector<2x32xf32>
    %956 = vector.shape_cast %8 : vector<2x1xi1> to vector<2x1xi1>
    %957 = vector.broadcast %956 : vector<2x1xi1> to vector<2x32xi1>
    %958 = arith.select %957, %930, %880 : vector<2x32xi1>, vector<2x32xf32>
    %959 = vector.shape_cast %8 : vector<2x1xi1> to vector<2x1xi1>
    %960 = vector.broadcast %959 : vector<2x1xi1> to vector<2x32xi1>
    %961 = arith.select %960, %928, %883 : vector<2x32xi1>, vector<2x32xf32>
    %962 = vector.shape_cast %10 : vector<2x1xi1> to vector<2x1xi1>
    %963 = vector.broadcast %962 : vector<2x1xi1> to vector<2x32xi1>
    %964 = arith.select %963, %955, %886 : vector<2x32xi1>, vector<2x32xf32>
    %965 = vector.shape_cast %10 : vector<2x1xi1> to vector<2x1xi1>
    %966 = vector.broadcast %965 : vector<2x1xi1> to vector<2x32xi1>
    %967 = arith.select %966, %953, %889 : vector<2x32xi1>, vector<2x32xf32>
    %968 = vector.shape_cast %8 : vector<2x1xi1> to vector<2x1xi1>
    %969 = vector.broadcast %968 : vector<2x1xi1> to vector<2x32xi1>
    %970 = arith.select %969, %958, %17 : vector<2x32xi1>, vector<2x32xf32>
    %c6_159 = arith.constant 6 : index
    %c0_160 = arith.constant 0 : index
    %971 = vector.load %arg13[%c6_159, %c0_160] : memref<16x64xf32, #tpu.memory_space<vmem>>, vector<2x32xf32>
    tpu.vector_store %arg13[%c6_159, %c0_160], %970 {strides = array<i32>} : memref<16x64xf32, #tpu.memory_space<vmem>>, vector<2x32xf32>,
    %972 = vector.shape_cast %10 : vector<2x1xi1> to vector<2x1xi1>
    %973 = vector.broadcast %972 : vector<2x1xi1> to vector<2x32xi1>
    %974 = arith.select %973, %964, %17 : vector<2x32xi1>, vector<2x32xf32>
    %c8_161 = arith.constant 8 : index
    %c32_162 = arith.constant 32 : index
    %975 = vector.load %arg13[%c8_161, %c32_162] : memref<16x64xf32, #tpu.memory_space<vmem>>, vector<2x32xf32>
    tpu.vector_store %arg13[%c8_161, %c32_162], %974 {strides = array<i32>} : memref<16x64xf32, #tpu.memory_space<vmem>>, vector<2x32xf32>,
    %976 = vector.extract_strided_slice %657 {offsets = [8, 0], sizes = [2, 128], strides = [1, 1]} : vector<16x256xf32> to vector<2x128xf32>
    %977 = arith.truncf %958 : vector<2x32xf32> to vector<2x32xbf16>
    %cst_163 = arith.constant dense<0.000000e+00> : vector<2x128xf32>
    %978 = tpu.matmul %977, %658, %cst_163 {dimension_numbers = #tpu.dot_dimension_numbers<[1], [0], [0], [1], [0, 0, 1, 1], [], []>} : vector<2x32xbf16>, vector<32x128xbf16>, vector<2x128xf32> -> vector<2x128xf32>
    %979 = arith.addf %976, %978 : vector<2x128xf32>
    %980 = vector.extract_strided_slice %657 {offsets = [6, 128], sizes = [2, 128], strides = [1, 1]} : vector<16x256xf32> to vector<2x128xf32>
    %981 = arith.truncf %964 : vector<2x32xf32> to vector<2x32xbf16>
    %cst_164 = arith.constant dense<0.000000e+00> : vector<2x128xf32>
    %982 = tpu.matmul %981, %659, %cst_164 {dimension_numbers = #tpu.dot_dimension_numbers<[1], [0], [0], [1], [0, 0, 1, 1], [], []>} : vector<2x32xbf16>, vector<32x128xbf16>, vector<2x128xf32> -> vector<2x128xf32>
    %983 = arith.addf %980, %982 : vector<2x128xf32>
    %984 = vector.extract_strided_slice %979 {offsets = [0, 0], sizes = [2, 32], strides = [1, 1]} : vector<2x128xf32> to vector<2x32xf32>
    %985 = arith.negf %984 : vector<2x32xf32>
    %986 = math.exp %985 : vector<2x32xf32>
    %cst_165 = arith.constant 1.000000e+00 : f32
    %987 = vector.broadcast %cst_165 : f32 to vector<2x32xf32>
    %988 = arith.addf %987, %986 : vector<2x32xf32>
    %989 = arith.divf %987, %988 : vector<2x32xf32>
    %990 = vector.extract_strided_slice %979 {offsets = [0, 32], sizes = [2, 32], strides = [1, 1]} : vector<2x128xf32> to vector<2x32xf32>
    %991 = arith.negf %990 : vector<2x32xf32>
    %992 = math.exp %991 : vector<2x32xf32>
    %cst_166 = arith.constant 1.000000e+00 : f32
    %993 = vector.broadcast %cst_166 : f32 to vector<2x32xf32>
    %994 = arith.addf %993, %992 : vector<2x32xf32>
    %995 = arith.divf %993, %994 : vector<2x32xf32>
    %996 = vector.extract_strided_slice %979 {offsets = [0, 64], sizes = [2, 32], strides = [1, 1]} : vector<2x128xf32> to vector<2x32xf32>
    %997 = math.tanh %996 : vector<2x32xf32>
    %998 = vector.extract_strided_slice %979 {offsets = [0, 96], sizes = [2, 32], strides = [1, 1]} : vector<2x128xf32> to vector<2x32xf32>
    %999 = arith.negf %998 : vector<2x32xf32>
    %1000 = math.exp %999 : vector<2x32xf32>
    %cst_167 = arith.constant 1.000000e+00 : f32
    %1001 = vector.broadcast %cst_167 : f32 to vector<2x32xf32>
    %1002 = arith.addf %1001, %1000 : vector<2x32xf32>
    %1003 = arith.divf %1001, %1002 : vector<2x32xf32>
    %1004 = arith.mulf %995, %961 : vector<2x32xf32>
    %1005 = arith.mulf %989, %997 : vector<2x32xf32>
    %1006 = arith.addf %1004, %1005 : vector<2x32xf32>
    %1007 = math.tanh %1006 : vector<2x32xf32>
    %1008 = arith.mulf %1003, %1007 : vector<2x32xf32>
    %1009 = vector.extract_strided_slice %983 {offsets = [0, 0], sizes = [2, 32], strides = [1, 1]} : vector<2x128xf32> to vector<2x32xf32>
    %1010 = arith.negf %1009 : vector<2x32xf32>
    %1011 = math.exp %1010 : vector<2x32xf32>
    %cst_168 = arith.constant 1.000000e+00 : f32
    %1012 = vector.broadcast %cst_168 : f32 to vector<2x32xf32>
    %1013 = arith.addf %1012, %1011 : vector<2x32xf32>
    %1014 = arith.divf %1012, %1013 : vector<2x32xf32>
    %1015 = vector.extract_strided_slice %983 {offsets = [0, 32], sizes = [2, 32], strides = [1, 1]} : vector<2x128xf32> to vector<2x32xf32>
    %1016 = arith.negf %1015 : vector<2x32xf32>
    %1017 = math.exp %1016 : vector<2x32xf32>
    %cst_169 = arith.constant 1.000000e+00 : f32
    %1018 = vector.broadcast %cst_169 : f32 to vector<2x32xf32>
    %1019 = arith.addf %1018, %1017 : vector<2x32xf32>
    %1020 = arith.divf %1018, %1019 : vector<2x32xf32>
    %1021 = vector.extract_strided_slice %983 {offsets = [0, 64], sizes = [2, 32], strides = [1, 1]} : vector<2x128xf32> to vector<2x32xf32>
    %1022 = math.tanh %1021 : vector<2x32xf32>
    %1023 = vector.extract_strided_slice %983 {offsets = [0, 96], sizes = [2, 32], strides = [1, 1]} : vector<2x128xf32> to vector<2x32xf32>
    %1024 = arith.negf %1023 : vector<2x32xf32>
    %1025 = math.exp %1024 : vector<2x32xf32>
    %cst_170 = arith.constant 1.000000e+00 : f32
    %1026 = vector.broadcast %cst_170 : f32 to vector<2x32xf32>
    %1027 = arith.addf %1026, %1025 : vector<2x32xf32>
    %1028 = arith.divf %1026, %1027 : vector<2x32xf32>
    %1029 = arith.mulf %1020, %967 : vector<2x32xf32>
    %1030 = arith.mulf %1014, %1022 : vector<2x32xf32>
    %1031 = arith.addf %1029, %1030 : vector<2x32xf32>
    %1032 = math.tanh %1031 : vector<2x32xf32>
    %1033 = arith.mulf %1028, %1032 : vector<2x32xf32>
    %1034 = vector.shape_cast %10 : vector<2x1xi1> to vector<2x1xi1>
    %1035 = vector.broadcast %1034 : vector<2x1xi1> to vector<2x32xi1>
    %1036 = arith.select %1035, %1008, %958 : vector<2x32xi1>, vector<2x32xf32>
    %1037 = vector.shape_cast %10 : vector<2x1xi1> to vector<2x1xi1>
    %1038 = vector.broadcast %1037 : vector<2x1xi1> to vector<2x32xi1>
    %1039 = arith.select %1038, %1006, %961 : vector<2x32xi1>, vector<2x32xf32>
    %1040 = vector.shape_cast %8 : vector<2x1xi1> to vector<2x1xi1>
    %1041 = vector.broadcast %1040 : vector<2x1xi1> to vector<2x32xi1>
    %1042 = arith.select %1041, %1033, %964 : vector<2x32xi1>, vector<2x32xf32>
    %1043 = vector.shape_cast %8 : vector<2x1xi1> to vector<2x1xi1>
    %1044 = vector.broadcast %1043 : vector<2x1xi1> to vector<2x32xi1>
    %1045 = arith.select %1044, %1031, %967 : vector<2x32xi1>, vector<2x32xf32>
    %1046 = vector.shape_cast %10 : vector<2x1xi1> to vector<2x1xi1>
    %1047 = vector.broadcast %1046 : vector<2x1xi1> to vector<2x32xi1>
    %1048 = arith.select %1047, %1036, %17 : vector<2x32xi1>, vector<2x32xf32>
    %c8_171 = arith.constant 8 : index
    %c0_172 = arith.constant 0 : index
    %1049 = vector.load %arg13[%c8_171, %c0_172] : memref<16x64xf32, #tpu.memory_space<vmem>>, vector<2x32xf32>
    tpu.vector_store %arg13[%c8_171, %c0_172], %1048 {strides = array<i32>} : memref<16x64xf32, #tpu.memory_space<vmem>>, vector<2x32xf32>,
    %1050 = vector.shape_cast %8 : vector<2x1xi1> to vector<2x1xi1>
    %1051 = vector.broadcast %1050 : vector<2x1xi1> to vector<2x32xi1>
    %1052 = arith.select %1051, %1042, %17 : vector<2x32xi1>, vector<2x32xf32>
    %c6_173 = arith.constant 6 : index
    %c32_174 = arith.constant 32 : index
    %1053 = vector.load %arg13[%c6_173, %c32_174] : memref<16x64xf32, #tpu.memory_space<vmem>>, vector<2x32xf32>
    tpu.vector_store %arg13[%c6_173, %c32_174], %1052 {strides = array<i32>} : memref<16x64xf32, #tpu.memory_space<vmem>>, vector<2x32xf32>,
    %1054 = vector.extract_strided_slice %657 {offsets = [10, 0], sizes = [2, 128], strides = [1, 1]} : vector<16x256xf32> to vector<2x128xf32>
    %1055 = arith.truncf %1036 : vector<2x32xf32> to vector<2x32xbf16>
    %cst_175 = arith.constant dense<0.000000e+00> : vector<2x128xf32>
    %1056 = tpu.matmul %1055, %658, %cst_175 {dimension_numbers = #tpu.dot_dimension_numbers<[1], [0], [0], [1], [0, 0, 1, 1], [], []>} : vector<2x32xbf16>, vector<32x128xbf16>, vector<2x128xf32> -> vector<2x128xf32>
    %1057 = arith.addf %1054, %1056 : vector<2x128xf32>
    %1058 = vector.extract_strided_slice %657 {offsets = [4, 128], sizes = [2, 128], strides = [1, 1]} : vector<16x256xf32> to vector<2x128xf32>
    %1059 = arith.truncf %1042 : vector<2x32xf32> to vector<2x32xbf16>
    %cst_176 = arith.constant dense<0.000000e+00> : vector<2x128xf32>
    %1060 = tpu.matmul %1059, %659, %cst_176 {dimension_numbers = #tpu.dot_dimension_numbers<[1], [0], [0], [1], [0, 0, 1, 1], [], []>} : vector<2x32xbf16>, vector<32x128xbf16>, vector<2x128xf32> -> vector<2x128xf32>
    %1061 = arith.addf %1058, %1060 : vector<2x128xf32>
    %1062 = vector.extract_strided_slice %1057 {offsets = [0, 0], sizes = [2, 32], strides = [1, 1]} : vector<2x128xf32> to vector<2x32xf32>
    %1063 = arith.negf %1062 : vector<2x32xf32>
    %1064 = math.exp %1063 : vector<2x32xf32>
    %cst_177 = arith.constant 1.000000e+00 : f32
    %1065 = vector.broadcast %cst_177 : f32 to vector<2x32xf32>
    %1066 = arith.addf %1065, %1064 : vector<2x32xf32>
    %1067 = arith.divf %1065, %1066 : vector<2x32xf32>
    %1068 = vector.extract_strided_slice %1057 {offsets = [0, 32], sizes = [2, 32], strides = [1, 1]} : vector<2x128xf32> to vector<2x32xf32>
    %1069 = arith.negf %1068 : vector<2x32xf32>
    %1070 = math.exp %1069 : vector<2x32xf32>
    %cst_178 = arith.constant 1.000000e+00 : f32
    %1071 = vector.broadcast %cst_178 : f32 to vector<2x32xf32>
    %1072 = arith.addf %1071, %1070 : vector<2x32xf32>
    %1073 = arith.divf %1071, %1072 : vector<2x32xf32>
    %1074 = vector.extract_strided_slice %1057 {offsets = [0, 64], sizes = [2, 32], strides = [1, 1]} : vector<2x128xf32> to vector<2x32xf32>
    %1075 = math.tanh %1074 : vector<2x32xf32>
    %1076 = vector.extract_strided_slice %1057 {offsets = [0, 96], sizes = [2, 32], strides = [1, 1]} : vector<2x128xf32> to vector<2x32xf32>
    %1077 = arith.negf %1076 : vector<2x32xf32>
    %1078 = math.exp %1077 : vector<2x32xf32>
    %cst_179 = arith.constant 1.000000e+00 : f32
    %1079 = vector.broadcast %cst_179 : f32 to vector<2x32xf32>
    %1080 = arith.addf %1079, %1078 : vector<2x32xf32>
    %1081 = arith.divf %1079, %1080 : vector<2x32xf32>
    %1082 = arith.mulf %1073, %1039 : vector<2x32xf32>
    %1083 = arith.mulf %1067, %1075 : vector<2x32xf32>
    %1084 = arith.addf %1082, %1083 : vector<2x32xf32>
    %1085 = math.tanh %1084 : vector<2x32xf32>
    %1086 = arith.mulf %1081, %1085 : vector<2x32xf32>
    %1087 = vector.extract_strided_slice %1061 {offsets = [0, 0], sizes = [2, 32], strides = [1, 1]} : vector<2x128xf32> to vector<2x32xf32>
    %1088 = arith.negf %1087 : vector<2x32xf32>
    %1089 = math.exp %1088 : vector<2x32xf32>
    %cst_180 = arith.constant 1.000000e+00 : f32
    %1090 = vector.broadcast %cst_180 : f32 to vector<2x32xf32>
    %1091 = arith.addf %1090, %1089 : vector<2x32xf32>
    %1092 = arith.divf %1090, %1091 : vector<2x32xf32>
    %1093 = vector.extract_strided_slice %1061 {offsets = [0, 32], sizes = [2, 32], strides = [1, 1]} : vector<2x128xf32> to vector<2x32xf32>
    %1094 = arith.negf %1093 : vector<2x32xf32>
    %1095 = math.exp %1094 : vector<2x32xf32>
    %cst_181 = arith.constant 1.000000e+00 : f32
    %1096 = vector.broadcast %cst_181 : f32 to vector<2x32xf32>
    %1097 = arith.addf %1096, %1095 : vector<2x32xf32>
    %1098 = arith.divf %1096, %1097 : vector<2x32xf32>
    %1099 = vector.extract_strided_slice %1061 {offsets = [0, 64], sizes = [2, 32], strides = [1, 1]} : vector<2x128xf32> to vector<2x32xf32>
    %1100 = math.tanh %1099 : vector<2x32xf32>
    %1101 = vector.extract_strided_slice %1061 {offsets = [0, 96], sizes = [2, 32], strides = [1, 1]} : vector<2x128xf32> to vector<2x32xf32>
    %1102 = arith.negf %1101 : vector<2x32xf32>
    %1103 = math.exp %1102 : vector<2x32xf32>
    %cst_182 = arith.constant 1.000000e+00 : f32
    %1104 = vector.broadcast %cst_182 : f32 to vector<2x32xf32>
    %1105 = arith.addf %1104, %1103 : vector<2x32xf32>
    %1106 = arith.divf %1104, %1105 : vector<2x32xf32>
    %1107 = arith.mulf %1098, %1045 : vector<2x32xf32>
    %1108 = arith.mulf %1092, %1100 : vector<2x32xf32>
    %1109 = arith.addf %1107, %1108 : vector<2x32xf32>
    %1110 = math.tanh %1109 : vector<2x32xf32>
    %1111 = arith.mulf %1106, %1110 : vector<2x32xf32>
    %1112 = vector.shape_cast %12 : vector<2x1xi1> to vector<2x1xi1>
    %1113 = vector.broadcast %1112 : vector<2x1xi1> to vector<2x32xi1>
    %1114 = arith.select %1113, %1086, %1036 : vector<2x32xi1>, vector<2x32xf32>
    %1115 = vector.shape_cast %12 : vector<2x1xi1> to vector<2x1xi1>
    %1116 = vector.broadcast %1115 : vector<2x1xi1> to vector<2x32xi1>
    %1117 = arith.select %1116, %1084, %1039 : vector<2x32xi1>, vector<2x32xf32>
    %1118 = vector.shape_cast %6 : vector<2x1xi1> to vector<2x1xi1>
    %1119 = vector.broadcast %1118 : vector<2x1xi1> to vector<2x32xi1>
    %1120 = arith.select %1119, %1111, %1042 : vector<2x32xi1>, vector<2x32xf32>
    %1121 = vector.shape_cast %6 : vector<2x1xi1> to vector<2x1xi1>
    %1122 = vector.broadcast %1121 : vector<2x1xi1> to vector<2x32xi1>
    %1123 = arith.select %1122, %1109, %1045 : vector<2x32xi1>, vector<2x32xf32>
    %1124 = vector.shape_cast %12 : vector<2x1xi1> to vector<2x1xi1>
    %1125 = vector.broadcast %1124 : vector<2x1xi1> to vector<2x32xi1>
    %1126 = arith.select %1125, %1114, %17 : vector<2x32xi1>, vector<2x32xf32>
    %c10_183 = arith.constant 10 : index
    %c0_184 = arith.constant 0 : index
    %1127 = vector.load %arg13[%c10_183, %c0_184] : memref<16x64xf32, #tpu.memory_space<vmem>>, vector<2x32xf32>
    tpu.vector_store %arg13[%c10_183, %c0_184], %1126 {strides = array<i32>} : memref<16x64xf32, #tpu.memory_space<vmem>>, vector<2x32xf32>,
    %1128 = vector.shape_cast %6 : vector<2x1xi1> to vector<2x1xi1>
    %1129 = vector.broadcast %1128 : vector<2x1xi1> to vector<2x32xi1>
    %1130 = arith.select %1129, %1120, %17 : vector<2x32xi1>, vector<2x32xf32>
    %c4_185 = arith.constant 4 : index
    %c32_186 = arith.constant 32 : index
    %1131 = vector.load %arg13[%c4_185, %c32_186] : memref<16x64xf32, #tpu.memory_space<vmem>>, vector<2x32xf32>
    tpu.vector_store %arg13[%c4_185, %c32_186], %1130 {strides = array<i32>} : memref<16x64xf32, #tpu.memory_space<vmem>>, vector<2x32xf32>,
    %1132 = vector.extract_strided_slice %657 {offsets = [12, 0], sizes = [2, 128], strides = [1, 1]} : vector<16x256xf32> to vector<2x128xf32>
    %1133 = arith.truncf %1114 : vector<2x32xf32> to vector<2x32xbf16>
    %cst_187 = arith.constant dense<0.000000e+00> : vector<2x128xf32>
    %1134 = tpu.matmul %1133, %658, %cst_187 {dimension_numbers = #tpu.dot_dimension_numbers<[1], [0], [0], [1], [0, 0, 1, 1], [], []>} : vector<2x32xbf16>, vector<32x128xbf16>, vector<2x128xf32> -> vector<2x128xf32>
    %1135 = arith.addf %1132, %1134 : vector<2x128xf32>
    %1136 = vector.extract_strided_slice %657 {offsets = [2, 128], sizes = [2, 128], strides = [1, 1]} : vector<16x256xf32> to vector<2x128xf32>
    %1137 = arith.truncf %1120 : vector<2x32xf32> to vector<2x32xbf16>
    %cst_188 = arith.constant dense<0.000000e+00> : vector<2x128xf32>
    %1138 = tpu.matmul %1137, %659, %cst_188 {dimension_numbers = #tpu.dot_dimension_numbers<[1], [0], [0], [1], [0, 0, 1, 1], [], []>} : vector<2x32xbf16>, vector<32x128xbf16>, vector<2x128xf32> -> vector<2x128xf32>
    %1139 = arith.addf %1136, %1138 : vector<2x128xf32>
    %1140 = vector.extract_strided_slice %1135 {offsets = [0, 0], sizes = [2, 32], strides = [1, 1]} : vector<2x128xf32> to vector<2x32xf32>
    %1141 = arith.negf %1140 : vector<2x32xf32>
    %1142 = math.exp %1141 : vector<2x32xf32>
    %cst_189 = arith.constant 1.000000e+00 : f32
    %1143 = vector.broadcast %cst_189 : f32 to vector<2x32xf32>
    %1144 = arith.addf %1143, %1142 : vector<2x32xf32>
    %1145 = arith.divf %1143, %1144 : vector<2x32xf32>
    %1146 = vector.extract_strided_slice %1135 {offsets = [0, 32], sizes = [2, 32], strides = [1, 1]} : vector<2x128xf32> to vector<2x32xf32>
    %1147 = arith.negf %1146 : vector<2x32xf32>
    %1148 = math.exp %1147 : vector<2x32xf32>
    %cst_190 = arith.constant 1.000000e+00 : f32
    %1149 = vector.broadcast %cst_190 : f32 to vector<2x32xf32>
    %1150 = arith.addf %1149, %1148 : vector<2x32xf32>
    %1151 = arith.divf %1149, %1150 : vector<2x32xf32>
    %1152 = vector.extract_strided_slice %1135 {offsets = [0, 64], sizes = [2, 32], strides = [1, 1]} : vector<2x128xf32> to vector<2x32xf32>
    %1153 = math.tanh %1152 : vector<2x32xf32>
    %1154 = vector.extract_strided_slice %1135 {offsets = [0, 96], sizes = [2, 32], strides = [1, 1]} : vector<2x128xf32> to vector<2x32xf32>
    %1155 = arith.negf %1154 : vector<2x32xf32>
    %1156 = math.exp %1155 : vector<2x32xf32>
    %cst_191 = arith.constant 1.000000e+00 : f32
    %1157 = vector.broadcast %cst_191 : f32 to vector<2x32xf32>
    %1158 = arith.addf %1157, %1156 : vector<2x32xf32>
    %1159 = arith.divf %1157, %1158 : vector<2x32xf32>
    %1160 = arith.mulf %1151, %1117 : vector<2x32xf32>
    %1161 = arith.mulf %1145, %1153 : vector<2x32xf32>
    %1162 = arith.addf %1160, %1161 : vector<2x32xf32>
    %1163 = math.tanh %1162 : vector<2x32xf32>
    %1164 = arith.mulf %1159, %1163 : vector<2x32xf32>
    %1165 = vector.extract_strided_slice %1139 {offsets = [0, 0], sizes = [2, 32], strides = [1, 1]} : vector<2x128xf32> to vector<2x32xf32>
    %1166 = arith.negf %1165 : vector<2x32xf32>
    %1167 = math.exp %1166 : vector<2x32xf32>
    %cst_192 = arith.constant 1.000000e+00 : f32
    %1168 = vector.broadcast %cst_192 : f32 to vector<2x32xf32>
    %1169 = arith.addf %1168, %1167 : vector<2x32xf32>
    %1170 = arith.divf %1168, %1169 : vector<2x32xf32>
    %1171 = vector.extract_strided_slice %1139 {offsets = [0, 32], sizes = [2, 32], strides = [1, 1]} : vector<2x128xf32> to vector<2x32xf32>
    %1172 = arith.negf %1171 : vector<2x32xf32>
    %1173 = math.exp %1172 : vector<2x32xf32>
    %cst_193 = arith.constant 1.000000e+00 : f32
    %1174 = vector.broadcast %cst_193 : f32 to vector<2x32xf32>
    %1175 = arith.addf %1174, %1173 : vector<2x32xf32>
    %1176 = arith.divf %1174, %1175 : vector<2x32xf32>
    %1177 = vector.extract_strided_slice %1139 {offsets = [0, 64], sizes = [2, 32], strides = [1, 1]} : vector<2x128xf32> to vector<2x32xf32>
    %1178 = math.tanh %1177 : vector<2x32xf32>
    %1179 = vector.extract_strided_slice %1139 {offsets = [0, 96], sizes = [2, 32], strides = [1, 1]} : vector<2x128xf32> to vector<2x32xf32>
    %1180 = arith.negf %1179 : vector<2x32xf32>
    %1181 = math.exp %1180 : vector<2x32xf32>
    %cst_194 = arith.constant 1.000000e+00 : f32
    %1182 = vector.broadcast %cst_194 : f32 to vector<2x32xf32>
    %1183 = arith.addf %1182, %1181 : vector<2x32xf32>
    %1184 = arith.divf %1182, %1183 : vector<2x32xf32>
    %1185 = arith.mulf %1176, %1123 : vector<2x32xf32>
    %1186 = arith.mulf %1170, %1178 : vector<2x32xf32>
    %1187 = arith.addf %1185, %1186 : vector<2x32xf32>
    %1188 = math.tanh %1187 : vector<2x32xf32>
    %1189 = arith.mulf %1184, %1188 : vector<2x32xf32>
    %1190 = vector.shape_cast %14 : vector<2x1xi1> to vector<2x1xi1>
    %1191 = vector.broadcast %1190 : vector<2x1xi1> to vector<2x32xi1>
    %1192 = arith.select %1191, %1164, %1114 : vector<2x32xi1>, vector<2x32xf32>
    %1193 = vector.shape_cast %14 : vector<2x1xi1> to vector<2x1xi1>
    %1194 = vector.broadcast %1193 : vector<2x1xi1> to vector<2x32xi1>
    %1195 = arith.select %1194, %1162, %1117 : vector<2x32xi1>, vector<2x32xf32>
    %1196 = vector.shape_cast %4 : vector<2x1xi1> to vector<2x1xi1>
    %1197 = vector.broadcast %1196 : vector<2x1xi1> to vector<2x32xi1>
    %1198 = arith.select %1197, %1189, %1120 : vector<2x32xi1>, vector<2x32xf32>
    %1199 = vector.shape_cast %4 : vector<2x1xi1> to vector<2x1xi1>
    %1200 = vector.broadcast %1199 : vector<2x1xi1> to vector<2x32xi1>
    %1201 = arith.select %1200, %1187, %1123 : vector<2x32xi1>, vector<2x32xf32>
    %1202 = vector.shape_cast %14 : vector<2x1xi1> to vector<2x1xi1>
    %1203 = vector.broadcast %1202 : vector<2x1xi1> to vector<2x32xi1>
    %1204 = arith.select %1203, %1192, %17 : vector<2x32xi1>, vector<2x32xf32>
    %c12_195 = arith.constant 12 : index
    %c0_196 = arith.constant 0 : index
    %1205 = vector.load %arg13[%c12_195, %c0_196] : memref<16x64xf32, #tpu.memory_space<vmem>>, vector<2x32xf32>
    tpu.vector_store %arg13[%c12_195, %c0_196], %1204 {strides = array<i32>} : memref<16x64xf32, #tpu.memory_space<vmem>>, vector<2x32xf32>,
    %1206 = vector.shape_cast %4 : vector<2x1xi1> to vector<2x1xi1>
    %1207 = vector.broadcast %1206 : vector<2x1xi1> to vector<2x32xi1>
    %1208 = arith.select %1207, %1198, %17 : vector<2x32xi1>, vector<2x32xf32>
    %c2_197 = arith.constant 2 : index
    %c32_198 = arith.constant 32 : index
    %1209 = vector.load %arg13[%c2_197, %c32_198] : memref<16x64xf32, #tpu.memory_space<vmem>>, vector<2x32xf32>
    tpu.vector_store %arg13[%c2_197, %c32_198], %1208 {strides = array<i32>} : memref<16x64xf32, #tpu.memory_space<vmem>>, vector<2x32xf32>,
    %1210 = vector.extract_strided_slice %657 {offsets = [14, 0], sizes = [2, 128], strides = [1, 1]} : vector<16x256xf32> to vector<2x128xf32>
    %1211 = arith.truncf %1192 : vector<2x32xf32> to vector<2x32xbf16>
    %cst_199 = arith.constant dense<0.000000e+00> : vector<2x128xf32>
    %1212 = tpu.matmul %1211, %658, %cst_199 {dimension_numbers = #tpu.dot_dimension_numbers<[1], [0], [0], [1], [0, 0, 1, 1], [], []>} : vector<2x32xbf16>, vector<32x128xbf16>, vector<2x128xf32> -> vector<2x128xf32>
    %1213 = arith.addf %1210, %1212 : vector<2x128xf32>
    %1214 = vector.extract_strided_slice %657 {offsets = [0, 128], sizes = [2, 128], strides = [1, 1]} : vector<16x256xf32> to vector<2x128xf32>
    %1215 = arith.truncf %1198 : vector<2x32xf32> to vector<2x32xbf16>
    %cst_200 = arith.constant dense<0.000000e+00> : vector<2x128xf32>
    %1216 = tpu.matmul %1215, %659, %cst_200 {dimension_numbers = #tpu.dot_dimension_numbers<[1], [0], [0], [1], [0, 0, 1, 1], [], []>} : vector<2x32xbf16>, vector<32x128xbf16>, vector<2x128xf32> -> vector<2x128xf32>
    %1217 = arith.addf %1214, %1216 : vector<2x128xf32>
    %1218 = vector.extract_strided_slice %1213 {offsets = [0, 0], sizes = [2, 32], strides = [1, 1]} : vector<2x128xf32> to vector<2x32xf32>
    %1219 = arith.negf %1218 : vector<2x32xf32>
    %1220 = math.exp %1219 : vector<2x32xf32>
    %cst_201 = arith.constant 1.000000e+00 : f32
    %1221 = vector.broadcast %cst_201 : f32 to vector<2x32xf32>
    %1222 = arith.addf %1221, %1220 : vector<2x32xf32>
    %1223 = arith.divf %1221, %1222 : vector<2x32xf32>
    %1224 = vector.extract_strided_slice %1213 {offsets = [0, 32], sizes = [2, 32], strides = [1, 1]} : vector<2x128xf32> to vector<2x32xf32>
    %1225 = arith.negf %1224 : vector<2x32xf32>
    %1226 = math.exp %1225 : vector<2x32xf32>
    %cst_202 = arith.constant 1.000000e+00 : f32
    %1227 = vector.broadcast %cst_202 : f32 to vector<2x32xf32>
    %1228 = arith.addf %1227, %1226 : vector<2x32xf32>
    %1229 = arith.divf %1227, %1228 : vector<2x32xf32>
    %1230 = vector.extract_strided_slice %1213 {offsets = [0, 64], sizes = [2, 32], strides = [1, 1]} : vector<2x128xf32> to vector<2x32xf32>
    %1231 = math.tanh %1230 : vector<2x32xf32>
    %1232 = vector.extract_strided_slice %1213 {offsets = [0, 96], sizes = [2, 32], strides = [1, 1]} : vector<2x128xf32> to vector<2x32xf32>
    %1233 = arith.negf %1232 : vector<2x32xf32>
    %1234 = math.exp %1233 : vector<2x32xf32>
    %cst_203 = arith.constant 1.000000e+00 : f32
    %1235 = vector.broadcast %cst_203 : f32 to vector<2x32xf32>
    %1236 = arith.addf %1235, %1234 : vector<2x32xf32>
    %1237 = arith.divf %1235, %1236 : vector<2x32xf32>
    %1238 = arith.mulf %1229, %1195 : vector<2x32xf32>
    %1239 = arith.mulf %1223, %1231 : vector<2x32xf32>
    %1240 = arith.addf %1238, %1239 : vector<2x32xf32>
    %1241 = math.tanh %1240 : vector<2x32xf32>
    %1242 = arith.mulf %1237, %1241 : vector<2x32xf32>
    %1243 = vector.extract_strided_slice %1217 {offsets = [0, 0], sizes = [2, 32], strides = [1, 1]} : vector<2x128xf32> to vector<2x32xf32>
    %1244 = arith.negf %1243 : vector<2x32xf32>
    %1245 = math.exp %1244 : vector<2x32xf32>
    %cst_204 = arith.constant 1.000000e+00 : f32
    %1246 = vector.broadcast %cst_204 : f32 to vector<2x32xf32>
    %1247 = arith.addf %1246, %1245 : vector<2x32xf32>
    %1248 = arith.divf %1246, %1247 : vector<2x32xf32>
    %1249 = vector.extract_strided_slice %1217 {offsets = [0, 32], sizes = [2, 32], strides = [1, 1]} : vector<2x128xf32> to vector<2x32xf32>
    %1250 = arith.negf %1249 : vector<2x32xf32>
    %1251 = math.exp %1250 : vector<2x32xf32>
    %cst_205 = arith.constant 1.000000e+00 : f32
    %1252 = vector.broadcast %cst_205 : f32 to vector<2x32xf32>
    %1253 = arith.addf %1252, %1251 : vector<2x32xf32>
    %1254 = arith.divf %1252, %1253 : vector<2x32xf32>
    %1255 = vector.extract_strided_slice %1217 {offsets = [0, 64], sizes = [2, 32], strides = [1, 1]} : vector<2x128xf32> to vector<2x32xf32>
    %1256 = math.tanh %1255 : vector<2x32xf32>
    %1257 = vector.extract_strided_slice %1217 {offsets = [0, 96], sizes = [2, 32], strides = [1, 1]} : vector<2x128xf32> to vector<2x32xf32>
    %1258 = arith.negf %1257 : vector<2x32xf32>
    %1259 = math.exp %1258 : vector<2x32xf32>
    %cst_206 = arith.constant 1.000000e+00 : f32
    %1260 = vector.broadcast %cst_206 : f32 to vector<2x32xf32>
    %1261 = arith.addf %1260, %1259 : vector<2x32xf32>
    %1262 = arith.divf %1260, %1261 : vector<2x32xf32>
    %1263 = arith.mulf %1254, %1201 : vector<2x32xf32>
    %1264 = arith.mulf %1248, %1256 : vector<2x32xf32>
    %1265 = arith.addf %1263, %1264 : vector<2x32xf32>
    %1266 = math.tanh %1265 : vector<2x32xf32>
    %1267 = arith.mulf %1262, %1266 : vector<2x32xf32>
    %1268 = vector.shape_cast %16 : vector<2x1xi1> to vector<2x1xi1>
    %1269 = vector.broadcast %1268 : vector<2x1xi1> to vector<2x32xi1>
    %1270 = arith.select %1269, %1242, %1192 : vector<2x32xi1>, vector<2x32xf32>
    %1271 = vector.shape_cast %2 : vector<2x1xi1> to vector<2x1xi1>
    %1272 = vector.broadcast %1271 : vector<2x1xi1> to vector<2x32xi1>
    %1273 = arith.select %1272, %1267, %1198 : vector<2x32xi1>, vector<2x32xf32>
    %1274 = vector.shape_cast %16 : vector<2x1xi1> to vector<2x1xi1>
    %1275 = vector.broadcast %1274 : vector<2x1xi1> to vector<2x32xi1>
    %1276 = arith.select %1275, %1270, %17 : vector<2x32xi1>, vector<2x32xf32>
    %c14_207 = arith.constant 14 : index
    %c0_208 = arith.constant 0 : index
    %1277 = vector.load %arg13[%c14_207, %c0_208] : memref<16x64xf32, #tpu.memory_space<vmem>>, vector<2x32xf32>
    tpu.vector_store %arg13[%c14_207, %c0_208], %1276 {strides = array<i32>} : memref<16x64xf32, #tpu.memory_space<vmem>>, vector<2x32xf32>,
    %1278 = vector.shape_cast %2 : vector<2x1xi1> to vector<2x1xi1>
    %1279 = vector.broadcast %1278 : vector<2x1xi1> to vector<2x32xi1>
    %1280 = arith.select %1279, %1273, %17 : vector<2x32xi1>, vector<2x32xf32>
    %c0_209 = arith.constant 0 : index
    %c32_210 = arith.constant 32 : index
    %1281 = vector.load %arg13[%c0_209, %c32_210] : memref<16x64xf32, #tpu.memory_space<vmem>>, vector<2x32xf32>
    tpu.vector_store %arg13[%c0_209, %c32_210], %1280 {strides = array<i32>} : memref<16x64xf32, #tpu.memory_space<vmem>>, vector<2x32xf32>,
    %c0_211 = arith.constant 0 : index
    %1282 = memref.load %arg1[%c0_211] : memref<1xi32, #tpu.memory_space<smem>>
    %c2_i32_212 = arith.constant 2 : i32
    %1283 = arith.muli %1282, %c2_i32_212 : i32
    %1284 = tpu.assume_multiple %1283, 2 : i32
    %1285 = arith.index_cast %1284 : i32 to index
    %c0_213 = arith.constant 0 : index
    %1286 = vector.load %arg13[%1285, %c0_213] : memref<16x64xf32, #tpu.memory_space<vmem>>, vector<2x64xf32>
    %1287 = arith.truncf %1286 : vector<2x64xf32> to vector<2x64xbf16>
    %c0_214 = arith.constant 0 : index
    %c0_215 = arith.constant 0 : index
    %1288 = vector.load %arg10[%c0_214, %c0_215] : memref<64x128xbf16, #tpu.memory_space<vmem>>, vector<64x128xbf16>
    %cst_216 = arith.constant dense<0.000000e+00> : vector<2x128xf32>
    %1289 = tpu.matmul %1287, %1288, %cst_216 {dimension_numbers = #tpu.dot_dimension_numbers<[1], [0], [0], [1], [0, 0, 1, 1], [], []>} : vector<2x64xbf16>, vector<64x128xbf16>, vector<2x128xf32> -> vector<2x128xf32>
    %c0_217 = arith.constant 0 : index
    %c0_218 = arith.constant 0 : index
    %1290 = vector.load %arg11[%c0_217, %c0_218] : memref<1x128xf32, #tpu.memory_space<vmem>>, vector<1x128xf32>
    %1291 = vector.broadcast %1290 : vector<1x128xf32> to vector<2x128xf32>
    %1292 = arith.addf %1289, %1291 : vector<2x128xf32>
    %c0_219 = arith.constant 0 : index
    %c0_220 = arith.constant 0 : index
    %1293 = vector.load %arg12[%c0_219, %c0_220] : memref<2x128xf32, #tpu.memory_space<vmem>>, vector<2x128xf32>
    tpu.vector_store %arg12[%c0_219, %c0_220], %1292 {strides = array<i32>} : memref<2x128xf32, #tpu.memory_space<vmem>>, vector<2x128xf32>,
    return
  }
  func.func @transform_0(%arg0: i32, %arg1: memref<1xi32, #tpu.memory_space<smem>>) -> (i32, i32) {
    %c0_i32 = arith.constant 0 : i32
    %c0_i32_0 = arith.constant 0 : i32
    %c0_i32_1 = arith.constant 0 : i32
    return %c0_i32, %c0_i32_0 : i32, i32
  }
  func.func @transform_1(%arg0: i32, %arg1: memref<1xi32, #tpu.memory_space<smem>>) -> (i32, i32) {
    %c0_i32 = arith.constant 0 : i32
    %c0_i32_0 = arith.constant 0 : i32
    %c0_i32_1 = arith.constant 0 : i32
    return %c0_i32, %c0_i32_0 : i32, i32
  }
  func.func @transform_2(%arg0: i32, %arg1: memref<1xi32, #tpu.memory_space<smem>>) -> (i32, i32) {
    %c0_i32 = arith.constant 0 : i32
    %c0_i32_0 = arith.constant 0 : i32
    %c0_i32_1 = arith.constant 0 : i32
    return %c0_i32, %c0_i32_0 : i32, i32
  }
  func.func @transform_3(%arg0: i32, %arg1: memref<1xi32, #tpu.memory_space<smem>>) -> (i32, i32) {
    %c0_i32 = arith.constant 0 : i32
    %c0_i32_0 = arith.constant 0 : i32
    %c0_i32_1 = arith.constant 0 : i32
    return %c0_i32, %c0_i32_0 : i32, i32
  }
  func.func @transform_4(%arg0: i32, %arg1: memref<1xi32, #tpu.memory_space<smem>>) -> (i32, i32) {
    %c0_i32 = arith.constant 0 : i32
    %c0_i32_0 = arith.constant 0 : i32
    %c0_i32_1 = arith.constant 0 : i32
    return %c0_i32, %c0_i32_0 : i32, i32
  }
  func.func @transform_5(%arg0: i32, %arg1: memref<1xi32, #tpu.memory_space<smem>>) -> (i32, i32) {
    %c0_i32 = arith.constant 0 : i32
    %c0_i32_0 = arith.constant 0 : i32
    %c0_i32_1 = arith.constant 0 : i32
    return %c0_i32, %c0_i32_0 : i32, i32
  }
  func.func @transform_6(%arg0: i32, %arg1: memref<1xi32, #tpu.memory_space<smem>>) -> (i32, i32) {
    %c0_i32 = arith.constant 0 : i32
    %c0_i32_0 = arith.constant 0 : i32
    %c0_i32_1 = arith.constant 0 : i32
    return %c0_i32, %c0_i32_0 : i32, i32
  }
  func.func @transform_7(%arg0: i32, %arg1: memref<1xi32, #tpu.memory_space<smem>>) -> (i32, i32) {
    %c0_i32 = arith.constant 0 : i32
    %c0_i32_0 = arith.constant 0 : i32
    %c0_i32_1 = arith.constant 0 : i32
    return %c0_i32, %c0_i32_0 : i32, i32
  }
  func.func @transform_8(%arg0: i32, %arg1: memref<1xi32, #tpu.memory_space<smem>>) -> (i32, i32) {
    %c0_i32 = arith.constant 0 : i32
    %c0_i32_0 = arith.constant 0 : i32
    %c0_i32_1 = arith.constant 0 : i32
    return %c0_i32, %c0_i32_0 : i32, i32
  }
  func.func @transform_9(%arg0: i32, %arg1: memref<1xi32, #tpu.memory_space<smem>>) -> (i32, i32) {
    %c0_i32 = arith.constant 0 : i32
    %c0_i32_0 = arith.constant 0 : i32
    %c0_i32_1 = arith.constant 0 : i32
    return %c0_i32, %c0_i32_0 : i32, i32
  }
  func.func @transform_10(%arg0: i32, %arg1: memref<1xi32, #tpu.memory_space<smem>>) -> (i32, i32) {
    %c0_i32 = arith.constant 0 : i32
    %c0_i32_0 = arith.constant 0 : i32
    %c0_i32_1 = arith.constant 0 : i32
    return %c0_i32, %c0_i32_0 : i32, i32
  }
}

</mosaic_0001>

<bundles_post_ra>
// kernel: tpu_custom_call.1
= control target key start
LH: loop header
LB: loop body
LE: loop exit
PB: predicated region body
PF: predicated region fallthrough
CT: control target
= control target key end

     0   :  { %17 = vsyncpa [#allocation6], 0  ;;  %s4561_s0 = inlined_call_operand.<no memory space> [shape: s32[1], index: 0, kind: input, shape index: {}]   ;;  %s4562_s1 = inlined_call_operand.vmem [shape: s32[2,1], index: 1, kind: input, shape index: {}]   ;;  %s4563_s2 = inlined_call_operand.hbm [shape: f32[16,16], index: 2, kind: input, shape index: {}]   ;;  %s4564_s3 = inlined_call_operand.hbm [shape: bf16[16,256], index: 3, kind: input, shape index: {}]   ;;  %s4565_s4 = inlined_call_operand.hbm [shape: bf16[32,256], index: 4, kind: input, shape index: {}]   ;;  %s4566_s5 = inlined_call_operand.vmem [shape: f32[1,256], index: 5, kind: input, shape index: {}]   ;;  %s4567_s6 = inlined_call_operand.hbm [shape: bf16[64,256], index: 6, kind: input, shape index: {}]   ;;  %s4568_s7 = inlined_call_operand.hbm [shape: bf16[32,256], index: 7, kind: input, shape index: {}]   ;;  %s4569_s8 = inlined_call_operand.vmem [shape: f32[1,256], index: 8, kind: input, shape index: {}]   ;;  %s4570_s9 = inlined_call_operand.hbm [shape: bf16[64,128], index: 9, kind: input, shape index: {}]   ;;  %s4571_s10 = inlined_call_operand.vmem [shape: f32[1,128], index: 10, kind: input, shape index: {}]   ;;  %s4572_s11 = inlined_call_operand.hbm [shape: f32[2,128], index: 11, kind: output, shape index: {}]  }
   0x1   :  { %18 = vsyncpa [#allocation9], 0 }
   0x2   :  { %19 = vsyncpa [#allocation12], 0 }
   0x3   :  { %20 = vsyncpa [#allocation15], 0 }
   0x4   :  { %21 = vsyncpa [#allocation7], 0  ;;  %s41_s19 = sshll.u32 %s4564_s3, 4  ;;  %s3518_s20 = smov [#allocation8]   ;;  %s42_s19 = int_to_ptr.hbm [resolvable:$true] %s41_s19 }
   0x5   :  { %s43_s21 = sshll.u32 %s3518_s20, 4  ;;  %s69_s24 = sshll.u32 %s4567_s6, 4  ;;  %s44_s21 = int_to_ptr.vmem [resolvable:$true] %s43_s21  ;;  %s70_s24 = int_to_ptr.hbm [resolvable:$true] %s69_s24 }
   0x6   :  { %s3519_s25 = smov 128   ;;  %s3520_s26 = smov 8  }
   0x7   :  { %49 = dma.hbm_to_vmem [thread:$0]  %s42_s19, 256, %s44_s21, [#allocation9], %s3519_s25, %s3519_s25, %s3520_s26  }
   0x8   :  { %s3521_s27 = smov [#allocation11]   ;;  %s28_s3 = sshll.u32 %s4563_s2, 4  ;;  %s29_s3 = int_to_ptr.hbm [resolvable:$true] %s28_s3 }
   0x9   :  { %s71_s28 = sshll.u32 %s3521_s27, 4  ;;  %s54_s13 = sshll.u32 %s4565_s4, 4  ;;  %s72_s28 = int_to_ptr.vmem [resolvable:$true] %s71_s28  ;;  %s55_s13 = int_to_ptr.hbm [resolvable:$true] %s54_s13 }
   0xa   :  { %77 = dma.hbm_to_vmem [thread:$0]  %s70_s24, 1024, %s72_s28, [#allocation12], %s3519_s25, %s3519_s25, %s3520_s26  }
   0xb   :  { %s3522_s14 = smov [#allocation5]   ;;  %s3523_s16 = smov [#allocation10]  }
   0xc   :  { %s30_s15 = sshll.u32 %s3522_s14, 4  ;;  %s56_s2 = sshll.u32 %s3523_s16, 4  ;;  %s31_s15 = int_to_ptr.vmem [resolvable:$true] %s30_s15  ;;  %s57_s2 = int_to_ptr.vmem [resolvable:$true] %s56_s2 }
   0xd   :  { %36 = dma.hbm_to_vmem [thread:$0]  %s29_s3, 256, %s31_s15, [#allocation6], %s3519_s25, %s3519_s25, %s3520_s26  }
   0xe   :  { %s82_s19 = sshll.u32 %s4568_s7, 4  ;;  %s97_s21 = sshll.u32 %s4570_s9, 4  ;;  %s83_s19 = int_to_ptr.hbm [resolvable:$true] %s82_s19  ;;  %s98_s21 = int_to_ptr.hbm [resolvable:$true] %s97_s21 }
   0xf   :  { %62 = dma.hbm_to_vmem [thread:$0]  %s55_s13, 512, %s57_s2, [#allocation9], %s3519_s25, %s3519_s25, %s3520_s26  }
  0x10   :  { %s3524_s22 = smov [#allocation13]   ;;  %s3525_s24 = smov [#allocation14]  }
  0x11   :  { %s84_s23 = sshll.u32 %s3524_s22, 4  ;;  %s99_s7 = sshll.u32 %s3525_s24, 4  ;;  %s85_s23 = int_to_ptr.vmem [resolvable:$true] %s84_s23  ;;  %s100_s7 = int_to_ptr.vmem [resolvable:$true] %s99_s7 }
  0x12   :  { %90 = dma.hbm_to_vmem [thread:$0]  %s83_s19, 512, %s85_s23, [#allocation12], %s3519_s25, %s3519_s25, %s3520_s26  }
  0x13   :  { %s3526_s27 = smov 64   ;;  %s3527_s28 = smov 4  }
  0x14   :  { %105 = dma.hbm_to_vmem [thread:$0]  %s98_s21, 512, %s100_s7, [#allocation15], %s3526_s27, %s3526_s27, %s3527_s28  }
  0x15   :  { %3508 = dma.done.wait [#allocation6], 256  }
  0x16   :  { %3509 = vsyncadd [#allocation6], 4294967040 }
  0x17   :  { %3510 = dma.done.wait [#allocation9], 768  }
  0x18   :  { %3511 = vsyncadd [#allocation9], 4294966528 }
  0x19   :  { %3512 = dma.done.wait [#allocation12], 1536  }
  0x1a   :  { %3513 = vsyncadd [#allocation12], 4294965760 }
  0x1b   :  { %3514 = dma.done.wait [#allocation15], 512  }
  0x1c   :  { %3515 = vsyncadd [#allocation15], 4294966784  ;;  %v3528_v0 = vmov 0   ;;  %v2892_v1 = vld [vmem:[#allocation8] sm:$0xf]  ;;  %v142_v6 = vld [vmem:[#allocation5] sm:$0xff] }
  0x1d   :  { %3080 = vset.pattern.permute.xlu2 %v3528_v0  ;;  %3081 = vset.pattern.permute.xlu1 %v3528_v0  ;;  %v3045_v2 = vld [vmem:[#allocation8 + $0x4] sm:$0xf0]  ;;  %v2906_v3 = vld [vmem:[#allocation10 + $0x10] sm:$0xf]  ;;  %v143_v7 = vld [vmem:[#allocation5 + $0x8] sm:$0xff]  ;;  %vm167_vm0 = vcmask 130048  }
  0x1e   :  { %3082 = vset.pattern.permute.xlu0 %v3528_v0  ;;  %v2893_v4 = vor.u32 %v3045_v2, %v2892_v1  ;;  %v3049_v5 = vld [vmem:[#allocation10 + $0x14] sm:$0xf0]  ;;  %v151_v9 = vpack.c.bf16 %v143_v7, %v142_v6  ;;  %v2902_v10 = vld [vmem:[#allocation10] sm:$0xf]  ;;  %v3047_v11 = vld [vmem:[#allocation10 + $0x4] sm:$0xf0] }
  0x1f   :  { %v3630_v8 = vor.u32 %v3049_v5, %v2906_v3  ;;  %v3048_v12 = vld [vmem:[#allocation10 + $0x14] sm:$0xf]  ;;  %v2912_v13 = vld [vmem:[#allocation10 + $0x18] sm:$0xf0]  ;;  %v3633_v16 = vor.u32 %v3047_v11, %v2902_v10  ;;  %v3046_v19 = vld [vmem:[#allocation10 + $0x4] sm:$0xf] }
  0x20   :  { %178 = vmatpush.bf16.msra.mxu0 %v2893_v4  ;;  %v3044_v14 = vld [vmem:[#allocation8 + $0x4] sm:$0xf]  ;;  %v2894_v15 = vld [vmem:[#allocation8 + $0x8] sm:$0xf0]  ;;  %v3635_v17 = vor.u32 %v3048_v12, %v2912_v13  ;;  %v2908_v20 = vld [vmem:[#allocation10 + $0x8] sm:$0xf0] }
  0x21   :  { %221 = vmatpush.bf16.msra.mxu2 %v3630_v8  ;;  %v2897_v18 = vor.u32 %v3044_v14, %v2894_v15  ;;  %v3640_v21 = vor.u32 %v3046_v19, %v2908_v20  ;;  %v3665_v22 = vld [vmem:[%s4566_s5] sm:$0x3]  ;;  %s3529_s5 = smov 32   ;;  %vm211_vm12 = vcmask 261120   ;;  %s3026_s12 = sshll.u32 %s4561_s0, 1 }
  0x22   :  { %243 = vmatpush.bf16.msra.mxu3 %v3635_v17  ;;  %v154_v23 = vperm.slane %v3665_v22, 1  ;;  %v153_v24 = vperm.slane %v3665_v22, 0  ;;  %v3686_v7 = vld [vmem:[%s4562_s1] sm:$0x3]  ;;  %s3530_s1 = smov 96   ;;  %s2812_s13 = scalar_lea.vmem [#allocation2], %s3026_s12 }
  0x23   :  { %2898 = vmatmul.msk.bf16.vlgmr.msra.gmra.mxu0 %vm167_vm0, %v151_v9  ;;  %192 = vmatpush.bf16.msra.mxu1 %v2897_v18  ;;  %vm141_vm9 = vcmp.gt.s32.totalorder %v3686_v7, 7  ;;  %vm134_vm10 = vcmp.gt.s32.totalorder %v3686_v7, 0  ;;  %s3531_s16 = smov [#allocation16]   ;;  %s2875_s19 = sshll.u32 %s4572_s11, 4  ;;  %s2876_s19 = int_to_ptr.hbm [resolvable:$true] %s2875_s19 }
  0x24   :  { %377 = vmatpush.bf16.msrb.mxu0 %v3630_v8  ;;  %v328_v19 = vsel %vm134_vm10, 1, %v3528_v0  ;;  %s2873_s2 = sshll.u32 %s3531_s16, 4  ;;  %s2874_s2 = int_to_ptr.vmem [resolvable:$true] %s2873_s2 }
  0x25   :  { %222 = vmatpush.bf16.msra.mxu2 %v3633_v16 }
  0x26   :  { %244 = vmatpush.bf16.msra.mxu3 %v3640_v21  ;;  %2899 = vmatmul.msk.bf16.vlgmr.msra.gmra.mxu1 %vm167_vm0, %v151_v9  ;;  %v335_v9 = vsel %vm141_vm9, 1, %v3528_v0 }
  0x27   :  { %398 = vmatpush.bf16.msrb.mxu1 %v3635_v17 }
  0x28   :  { %378 = vmatpush.bf16.msrb.mxu0 %v3633_v16  ;;  %223 = vmatmul.bf16.vlgmr.msra.gmra.mxu2 %v3528_v0 }
  0x29   :  { %546 = vmatpush.bf16.msrb.mxu2 %v3630_v8  ;;  %245 = vmatmul.bf16.vlgmr.msra.gmra.mxu3 %v3528_v0 }
  0x2a   :  { %567 = vmatpush.bf16.msrb.mxu3 %v3635_v17 }
  0x2b   :  { %399 = vmatpush.bf16.msrb.mxu1 %v3640_v21 }
  0x2c   :  { %714 = vmatpush.bf16.msra.mxu0 %v3630_v8 }
  0x2d   :  { %547 = vmatpush.bf16.msrb.mxu2 %v3633_v16 }
  0x2e   :  { %568 = vmatpush.bf16.msrb.mxu3 %v3640_v21 }
  0x2f   :  { %735 = vmatpush.bf16.msra.mxu1 %v3635_v17 }
  0x30   :  { %715 = vmatpush.bf16.msra.mxu0 %v3633_v16 }
  0x31   :  { %872 = vmatpush.bf16.msra.mxu2 %v3630_v8 }
  0x32   :  { %893 = vmatpush.bf16.msra.mxu3 %v3635_v17 }
  0x33   :  { %736 = vmatpush.bf16.msra.mxu1 %v3640_v21 }
  0x35   :  { %873 = vmatpush.bf16.msra.mxu2 %v3633_v16 }
  0x36   :  { %894 = vmatpush.bf16.msra.mxu3 %v3640_v21 }
  0xa0   :  { %v180_v27 = vpop.f32.mrf.mxu0 }
  0xa1   :  { %v3673_v28 = vadd.f32 %v180_v27, %v153_v24 }
  0xa3   :  { %v194_v25 = vpop.f32.mrf.mxu1 }
  0xa4   :  { %v3669_v26 = vadd.f32 %v194_v25, %v154_v23 }
  0xab   :  { %v224_v29 = vpop.f32.mrf.mxu2  ;;  %v196_v31 = vpop.f32.mrf.mxu1 }
  0xac   :  { %v228_v30 = vadd.f32 %v224_v29, %v3673_v28  ;;  %v3676_v32 = vadd.f32 %v196_v31, %v154_v23  ;;  %v246_v33 = vpop.f32.mrf.mxu3 }
  0xad   :  { %v251_v34 = vrot.slane %v246_v33, 2 }
  0xae   :  { %3084 = vtanh.f32 %v228_v30  ;;  %v2916_v40 = vmul.f32 -1.442695, %v228_v30 }
  0xaf   :  { %v253_v35 = vadd.f32 %v251_v34, %v3676_v32 }
  0xb1   :  { %3086 = vtanh.f32 %v253_v35  ;;  %v2917_v41 = vmul.f32 -1.442695, %v253_v35 }
  0xb2   :  { %3088 = vpow2.f32 %v2916_v40 }
  0xb3   :  { %v226_v36 = vpop.f32.mrf.mxu2  ;;  %3090 = vpow2.f32 %v2917_v41 }
  0xb4   :  { %v3085_v37 = vpop.eup %3084  ;;  %v248_v38 = vpop.f32.mrf.mxu3 }
  0xb5   :  { %276 = vrot.lane.b32.xlu0 %v3085_v37, %s3526_s27 }
  0xb7   :  { %v3087_v39 = vpop.eup %3086 }
  0xb8   :  { %v3089_v42 = vpop.eup %3088 }
  0xb9   :  { %v257_v43 = vadd.f32 1.0, %v3089_v42  ;;  %v3091_v44 = vpop.eup %3090 }
  0xba   :  { %v294_v45 = vadd.f32 1.0, %v3091_v44  ;;  %v3730_v44 = vpop.f32.mrf.mxu0 }
  0xbb   :  { %3092 = vrcp.f32 %v257_v43  ;;  %v269_v54 = vand.u32 2147483648, %v257_v43  ;;  %vm263_vm2 = vweird.f32 %v257_v43  ;;  %v267_v55 = vand.u32 2147483647, %v257_v43 }
  0xbc   :  { %3094 = vrcp.f32 %v294_v45  ;;  %vm300_vm5 = vweird.f32 %v294_v45  ;;  %v306_v61 = vand.u32 2147483648, %v294_v45  ;;  %v304_v1 = vand.u32 2147483647, %v294_v45 }
  0xbd   :  { %313 = vrot.lane.b32.xlu0 %v3087_v39, %s3526_s27  ;;  %v270_v58 = vor.u32 1.1754944e-38, %v269_v54  ;;  %vm268_vm4 = vcmp.eq.f32.partialorder %v267_v55, 8.507059e+37 }
  0xbe   :  { %v307_v2 = vor.u32 1.1754944e-38, %v306_v61  ;;  %vm305_vm8 = vcmp.eq.f32.partialorder %v304_v1, 8.507059e+37 }
  0xc1   :  { %v3093_v46 = vpop.eup %3092 }
  0xc2   :  { %v259_v47 = vmul.f32 %v3093_v46, %v257_v43  ;;  %v3095_v49 = vpop.eup %3094  ;;  %vm264_vm1 = vweird.f32 %v3093_v46 }
  0xc3   :  { %v296_v51 = vmul.f32 %v3095_v49, %v294_v45  ;;  %vm265_vm3 = vmor %vm263_vm2, %vm264_vm1  ;;  %vm301_vm6 = vweird.f32 %v3095_v49 }
  0xc4   :  { %v260_v48 = vsub.f32 1.0, %v259_v47  ;;  %vm302_vm7 = vmor %vm300_vm5, %vm301_vm6  ;;  %vm135_vm6 = vcmp.gt.s32.totalorder %v3686_v7, 1 }
  0xc5   :  { %v297_v53 = vsub.f32 1.0, %v296_v51 }
  0xc6   :  { %v261_v50 = vmul.f32 %v3093_v46, %v260_v48 }
  0xc7   :  { %v298_v57 = vmul.f32 %v3095_v49, %v297_v53 }
  0xc8   :  { %v262_v52 = vadd.f32 %v3093_v46, %v261_v50 }
  0xc9   :  { %v299_v63 = vadd.f32 %v3095_v49, %v298_v57 }
  0xca   :  { %v266_v56 = vsel %vm265_vm3, %v3093_v46, %v262_v52 }
  0xcb   :  { %v271_v60 = vsel %vm268_vm4, %v270_v58, %v266_v56  ;;  %v303_v3 = vsel %vm302_vm7, %v3095_v49, %v299_v63  ;;  %vm140_vm7 = vcmp.gt.s32.totalorder %v3686_v7, 6 }
  0xcc   :  { %v308_v4 = vsel %vm305_vm8, %v307_v2, %v303_v3  ;;  %v274_v10 = vmul.f32 0.0, %v271_v60  ;;  %vm4574_vm8 = vcmask 254976  }
  0xcd   :  { %v311_v13 = vmul.f32 0.0, %v308_v4 }
 0x127   :  { %v277_v59 = vpop.permute.xlu0 %276 }
 0x128   :  { %v279_v62 = vmul.f32 %v277_v59, %v271_v60 }
 0x12a   :  { %281 = vrot.lane.b32.xlu1 %v279_v62, %s3529_s5 }
 0x12f   :  { %v314_v5 = vpop.permute.xlu0 %313 }
 0x130   :  { %v316_v6 = vmul.f32 %v314_v5, %v308_v4 }
 0x132   :  { %318 = vrot.lane.b32.xlu1 %v316_v6, %s3529_s5 }
 0x13a   :  { %337 = vperm.xlu1 %3081, %v335_v9  }
 0x19c   :  { %v282_v11 = vpop.permute.xlu1 %281 }
 0x19d   :  { %v3690_v12 = vadd.f32 %v282_v11, %v274_v10 }
 0x19f   :  { %3096 = vtanh.f32 %v3690_v12 }
 0x1a4   :  { %v319_v14 = vpop.permute.xlu1 %318 }
 0x1a5   :  { %v3097_v15 = vpop.eup %3096  ;;  %v321_v18 = vadd.f32 %v319_v14, %v311_v13 }
 0x1a6   :  { %287 = vrot.lane.b32.xlu2 %v3097_v15, %s3526_s27 }
 0x1a7   :  { %3098 = vtanh.f32 %v321_v18  ;;  %v347_v31 = vrot.slane %v321_v18, 6 }
 0x1ac   :  { %v3711_v37 = vpop.permute.xlu1 %337 }
 0x1ad   :  { %v3099_v20 = vpop.eup %3098  ;;  %vm4573_vm13 = vcmp.eq.s32.totalorder %v3711_v37, 1 }
 0x1ae   :  { %324 = vrot.lane.b32.xlu0 %v3099_v20, %s3526_s27  ;;  %330 = vperm.xlu2 %3080, %v328_v19  }
 0x200   :  { %v288_v23 = vpop.permute.xlu2 %287 }
 0x201   :  { %v290_v25 = vmul.f32 %v288_v23, %v271_v60 }
 0x208   :  { %v3697_v27 = vpop.permute.xlu2 %330 }
 0x209   :  { %vm332_vm11 = vcmp.eq.s32.totalorder %v3697_v27, 1 }
 0x20a   :  { %v3702_v29 = vsel %vm332_vm11, %v290_v25, 0.0 }
 0x20b   :  { %v364_v30 = vpack.c.bf16 %v3702_v29, %v3702_v29 }
 0x20d   :  { %366 = vrot.lane.b32.xlu2 %v364_v30, %s3529_s5 }
 0x215   :  { %348 = vrot.lane.b32.xlu2 %v347_v31, %s3530_s1 }
 0x220   :  { %v325_v33 = vpop.permute.xlu0 %324 }
 0x221   :  { %v327_v34 = vmul.f32 %v325_v33, %v308_v4 }
 0x223   :  { %v341_v35 = vrot.slane %v327_v34, 6 }
 0x225   :  { %342 = vrot.lane.b32.xlu0 %v341_v35, %s3529_s5  ;;  %v491_v35 = vsel %vm135_vm6, 1, %v3528_v0  ;;  %vm136_vm6 = vcmp.gt.s32.totalorder %v3686_v7, 2 }
 0x267   :  { %v367_v36 = vpop.permute.xlu2 %366 }
 0x268   :  { %2918 = vmatmul.msk.bf16.vlgmr.msrb.gmra.mxu0 %vm211_vm12, %v367_v36  ;;  %v334_v36 = vsel %vm332_vm11, %v3690_v12, 0.0 }
 0x269   :  { %1035 = vmatpush.bf16.msrb.mxu0 %v3630_v8 }
 0x26d   :  { %1036 = vmatpush.bf16.msrb.mxu0 %v3633_v16 }
 0x26f   :  { %v349_v38 = vpop.permute.xlu2 %348 }
 0x270   :  { %v3717_v39 = vsel %vm4573_vm13, %v349_v38, 0.0  ;;  %v430_v38 = vrot.slane %v334_v36, 6 }
 0x271   :  { %v470_v40 = vrot.slane %v3717_v39, 4 }
 0x273   :  { %471 = vrot.lane.b32.xlu2 %v470_v40, %s3529_s5 }
 0x297   :  { %v343_v41 = vpop.permute.xlu0 %342 }
 0x298   :  { %v3723_v42 = vsel %vm4573_vm13, %v343_v41, 0.0 }
 0x299   :  { %v388_v43 = vpack.c.bf16 %v3723_v42, %v3723_v42 }
 0x29b   :  { %2919 = vmatmul.msk.bf16.vlgmr.msrb.gmra.mxu1 %vm211_vm12, %v388_v43 }
 0x29c   :  { %1056 = vmatpush.bf16.msrb.mxu1 %v3635_v17 }
 0x2a0   :  { %1057 = vmatpush.bf16.msrb.mxu1 %v3640_v21 }
 0x2cd   :  { %v472_v12 = vpop.permute.xlu2 %471 }
 0x2e5   :  { %v380_v45 = vpop.f32.mrf.mxu0 }
 0x2e6   :  { %v385_v46 = vrot.slane %v380_v45, 6 }
 0x2e8   :  { %v387_v47 = vadd.f32 %v385_v46, %v3673_v28 }
 0x2ea   :  { %3100 = vtanh.f32 %v387_v47  ;;  %v2920_v55 = vmul.f32 -1.442695, %v387_v47  ;;  %v511_v47 = vsel %vm140_vm7, 1, %v3528_v0  ;;  %vm139_vm7 = vcmp.gt.s32.totalorder %v3686_v7, 5 }
 0x2ed   :  { %v382_v48 = vpop.f32.mrf.mxu0 }
 0x2f0   :  { %v3101_v49 = vpop.eup %3100 }
 0x2f1   :  { %434 = vrot.lane.b32.xlu1 %v3101_v49, %s3526_s27 }
 0x318   :  { %v401_v50 = vpop.f32.mrf.mxu1 }
 0x319   :  { %v406_v51 = vrot.slane %v401_v50, 4 }
 0x31b   :  { %v408_v52 = vadd.f32 %v406_v51, %v3676_v32 }
 0x31d   :  { %3102 = vtanh.f32 %v408_v52  ;;  %v2921_v9 = vmul.f32 -1.442695, %v408_v52 }
 0x31e   :  { %3104 = vpow2.f32 %v2920_v55 }
 0x320   :  { %v403_v53 = vpop.f32.mrf.mxu1 }
 0x323   :  { %v3103_v54 = vpop.eup %3102 }
 0x324   :  { %476 = vrot.lane.b32.xlu0 %v3103_v54, %s3526_s27  ;;  %v3105_v56 = vpop.eup %3104 }
 0x325   :  { %v412_v57 = vadd.f32 1.0, %v3105_v56 }
 0x327   :  { %3106 = vrcp.f32 %v412_v57  ;;  %v424_v63 = vand.u32 2147483648, %v412_v57  ;;  %vm418_vm15 = vweird.f32 %v412_v57  ;;  %v422_v1 = vand.u32 2147483647, %v412_v57 }
 0x328   :  { %3108 = vpow2.f32 %v2921_v9 }
 0x329   :  { %v425_v3 = vor.u32 1.1754944e-38, %v424_v63  ;;  %vm423_vm1 = vcmp.eq.f32.partialorder %v422_v1, 8.507059e+37 }
 0x32d   :  { %v3107_v58 = vpop.eup %3106 }
 0x32e   :  { %v414_v59 = vmul.f32 %v3107_v58, %v412_v57  ;;  %vm419_vm14 = vweird.f32 %v3107_v58  ;;  %v3109_v10 = vpop.eup %3108 }
 0x32f   :  { %vm420_vm0 = vmor %vm418_vm15, %vm419_vm14  ;;  %v452_v11 = vadd.f32 1.0, %v3109_v10 }
 0x330   :  { %v415_v60 = vsub.f32 1.0, %v414_v59 }
 0x331   :  { %3110 = vrcp.f32 %v452_v11  ;;  %v464_v20 = vand.u32 2147483648, %v452_v11  ;;  %vm458_vm3 = vweird.f32 %v452_v11  ;;  %v462_v23 = vand.u32 2147483647, %v452_v11 }
 0x332   :  { %v416_v61 = vmul.f32 %v3107_v58, %v415_v60 }
 0x333   :  { %v465_v30 = vor.u32 1.1754944e-38, %v464_v20  ;;  %vm463_vm5 = vcmp.eq.f32.partialorder %v462_v23, 8.507059e+37 }
 0x334   :  { %v417_v62 = vadd.f32 %v3107_v58, %v416_v61 }
 0x336   :  { %v421_v2 = vsel %vm420_vm0, %v3107_v58, %v417_v62 }
 0x337   :  { %v426_v5 = vsel %vm423_vm1, %v425_v3, %v421_v2  ;;  %v3111_v13 = vpop.eup %3110 }
 0x338   :  { %v454_v14 = vmul.f32 %v3111_v13, %v452_v11  ;;  %vm459_vm2 = vweird.f32 %v3111_v13  ;;  %v432_v40 = vmul.f32 %v430_v38, %v426_v5 }
 0x339   :  { %vm460_vm4 = vmor %vm458_vm3, %vm459_vm2 }
 0x33a   :  { %v455_v15 = vsub.f32 1.0, %v454_v14 }
 0x33c   :  { %v456_v18 = vmul.f32 %v3111_v13, %v455_v15 }
 0x33e   :  { %v457_v19 = vadd.f32 %v3111_v13, %v456_v18 }
 0x340   :  { %v461_v25 = vsel %vm460_vm4, %v3111_v13, %v457_v19 }
 0x341   :  { %v466_v33 = vsel %vm463_vm5, %v465_v30, %v461_v25 }
 0x342   :  { %v474_v48 = vmul.f32 %v472_v12, %v466_v33 }
 0x363   :  { %v435_v4 = vpop.permute.xlu1 %434 }
 0x364   :  { %v437_v6 = vmul.f32 %v435_v4, %v426_v5 }
 0x366   :  { %439 = vrot.lane.b32.xlu1 %v437_v6, %s3529_s5 }
 0x396   :  { %v477_v31 = vpop.permute.xlu0 %476 }
 0x397   :  { %v479_v34 = vmul.f32 %v477_v31, %v466_v33 }
 0x399   :  { %481 = vrot.lane.b32.xlu0 %v479_v34, %s3529_s5 }
 0x3a1   :  { %493 = vperm.xlu0 %3082, %v491_v35  }
 0x3d8   :  { %v440_v41 = vpop.permute.xlu1 %439 }
 0x3d9   :  { %v442_v43 = vadd.f32 %v440_v41, %v432_v40 }
 0x3db   :  { %3112 = vtanh.f32 %v442_v43  ;;  %v503_v45 = vrot.slane %v442_v43, 2 }
 0x3dd   :  { %504 = vrot.lane.b32.xlu0 %v503_v45, %s3530_s1 }
 0x3e1   :  { %v3113_v46 = vpop.eup %3112 }
 0x3e2   :  { %445 = vrot.lane.b32.xlu1 %v3113_v46, %s3526_s27 }
 0x3ea   :  { %353 = vrot.lane.b32.xlu1 %v3702_v29, %s3529_s5 }
 0x3f2   :  { %513 = vperm.xlu1 %3081, %v511_v47  }
 0x3fa   :  { %507 = vrot.lane.b32.xlu1 %v334_v36, %s3530_s1 }
 0x40b   :  { %v482_v49 = vpop.permute.xlu0 %481 }
 0x40c   :  { %v484_v50 = vadd.f32 %v482_v49, %v474_v48 }
 0x40e   :  { %3114 = vtanh.f32 %v484_v50  ;;  %v523_v51 = vrot.slane %v484_v50, 4 }
 0x410   :  { %524 = vrot.lane.b32.xlu0 %v523_v51, %s3530_s1 }
 0x413   :  { %v3755_v59 = vpop.permute.xlu0 %493 }
 0x414   :  { %v3115_v52 = vpop.eup %3114  ;;  %vm495_vm9 = vcmp.eq.s32.totalorder %v3755_v59, 1 }
 0x415   :  { %487 = vrot.lane.b32.xlu2 %v3115_v52, %s3526_s27 }
 0x44f   :  { %v505_v14 = vpop.permute.xlu0 %504 }
 0x454   :  { %v446_v53 = vpop.permute.xlu1 %445 }
 0x455   :  { %v448_v29 = vmul.f32 %v446_v53, %v426_v5 }
 0x457   :  { %v497_v54 = vrot.slane %v448_v29, 2 }
 0x459   :  { %498 = vrot.lane.b32.xlu2 %v497_v54, %s3529_s5 }
 0x45c   :  { %v354_v55 = vpop.permute.xlu1 %353 }
 0x45d   :  { %357 = vst.msk [vmem:[#allocation2] sm:$0x3] %vm4574_vm8, %v354_v55 }
 0x464   :  { %v3770_v1 = vpop.permute.xlu1 %513 }
 0x465   :  { %vm515_vm10 = vcmp.eq.s32.totalorder %v3770_v1, 1  ;;  %v3062_v1 = vld [vmem:[#allocation14] sm:$0xff] }
 0x46c   :  { %v508_v13 = vpop.permute.xlu1 %507 }
 0x46d   :  { %v3790_v15 = vsel %vm495_vm9, %v505_v14, %v508_v13 }
 0x46e   :  { %v599_v18 = vrot.slane %v3790_v15, 4 }
 0x46f   :  { %v488_v56 = vpop.permute.xlu2 %487 }
 0x470   :  { %v490_v57 = vmul.f32 %v488_v56, %v466_v33 }
 0x472   :  { %v517_v58 = vrot.slane %v490_v57, 4 }
 0x474   :  { %518 = vrot.lane.b32.xlu2 %v517_v58, %s3529_s5 }
 0x482   :  { %v525_v31 = vpop.permute.xlu0 %524 }
 0x483   :  { %v3799_v33 = vsel %vm515_vm10, %v525_v31, %v3717_v39 }
 0x484   :  { %v641_v34 = vrot.slane %v3799_v33, 6 }
 0x4b3   :  { %v499_v60 = vpop.permute.xlu2 %498 }
 0x4b4   :  { %v3760_v61 = vsel %vm495_vm9, %v499_v60, %v354_v55  ;;  %v528_v62 = vsel %vm495_vm9, %v499_v60, 0.0 }
 0x4b5   :  { %529 = vst.msk [vmem:[#allocation2 + $0x2] sm:$0x3] %vm4574_vm8, %v528_v62  ;;  %v536_v63 = vpack.c.bf16 %v3760_v61, %v3760_v61 }
 0x4b7   :  { %2922 = vmatmul.msk.bf16.vlgmr.msrb.gmra.mxu2 %vm211_vm12, %v536_v63 }
 0x4b8   :  { %1198 = vmatpush.bf16.msrb.mxu2 %v3630_v8 }
 0x4bc   :  { %1199 = vmatpush.bf16.msrb.mxu2 %v3633_v16 }
 0x4ce   :  { %v3773_v2 = vpop.permute.xlu2 %518 }
 0x4cf   :  { %v3779_v3 = vsel %vm515_vm10, %v3773_v2, %v3723_v42 }
 0x4d0   :  { %v557_v4 = vpack.c.bf16 %v3779_v3, %v3779_v3 }
 0x4d2   :  { %2923 = vmatmul.msk.bf16.vlgmr.msrb.gmra.mxu3 %vm211_vm12, %v557_v4 }
 0x4d3   :  { %1219 = vmatpush.bf16.msrb.mxu3 %v3635_v17 }
 0x4d7   :  { %1220 = vmatpush.bf16.msrb.mxu3 %v3640_v21 }
 0x53a   :  { %v549_v5 = vpop.f32.mrf.mxu2 }
 0x53b   :  { %v554_v6 = vrot.slane %v549_v5, 4 }
 0x53d   :  { %v556_v9 = vadd.f32 %v554_v6, %v3673_v28 }
 0x53f   :  { %3116 = vtanh.f32 %v556_v9  ;;  %v2924_v35 = vmul.f32 -1.442695, %v556_v9 }
 0x542   :  { %v551_v10 = vpop.f32.mrf.mxu2 }
 0x543   :  { %v662_v10 = vsel %vm136_vm6, 1, %v3528_v0 }
 0x545   :  { %v3117_v11 = vpop.eup %3116 }
 0x546   :  { %605 = vrot.lane.b32.xlu2 %v3117_v11, %s3526_s27 }
 0x54e   :  { %600 = vrot.lane.b32.xlu2 %v599_v18, %s3529_s5 }
 0x555   :  { %v570_v19 = vpop.f32.mrf.mxu3 }
 0x556   :  { %v575_v20 = vrot.slane %v570_v19, 6 }
 0x558   :  { %v577_v23 = vadd.f32 %v575_v20, %v3676_v32 }
 0x55a   :  { %3118 = vtanh.f32 %v577_v23  ;;  %v2925_v52 = vmul.f32 -1.442695, %v577_v23 }
 0x55b   :  { %3120 = vpow2.f32 %v2924_v35 }
 0x55d   :  { %v572_v25 = vpop.f32.mrf.mxu3 }
 0x560   :  { %v3119_v30 = vpop.eup %3118 }
 0x561   :  { %647 = vrot.lane.b32.xlu1 %v3119_v30, %s3526_s27  ;;  %v3121_v36 = vpop.eup %3120 }
 0x562   :  { %v581_v38 = vadd.f32 1.0, %v3121_v36 }
 0x564   :  { %3122 = vrcp.f32 %v581_v38  ;;  %v593_v47 = vand.u32 2147483648, %v581_v38  ;;  %vm587_vm15 = vweird.f32 %v581_v38  ;;  %v591_v12 = vand.u32 2147483647, %v581_v38 }
 0x565   :  { %3124 = vpow2.f32 %v2925_v52 }
 0x566   :  { %v594_v48 = vor.u32 1.1754944e-38, %v593_v47  ;;  %vm592_vm1 = vcmp.eq.f32.partialorder %v591_v12, 8.507059e+37 }
 0x569   :  { %642 = vrot.lane.b32.xlu1 %v641_v34, %s3529_s5  ;;  %v679_v34 = vsel %vm139_vm7, 1, %v3528_v0 }
 0x56a   :  { %v3123_v40 = vpop.eup %3122 }
 0x56b   :  { %v583_v41 = vmul.f32 %v3123_v40, %v581_v38  ;;  %vm588_vm14 = vweird.f32 %v3123_v40  ;;  %v3125_v53 = vpop.eup %3124 }
 0x56c   :  { %vm589_vm0 = vmor %vm587_vm15, %vm588_vm14  ;;  %v623_v29 = vadd.f32 1.0, %v3125_v53 }
 0x56d   :  { %v584_v43 = vsub.f32 1.0, %v583_v41 }
 0x56e   :  { %3126 = vrcp.f32 %v623_v29  ;;  %v635_v60 = vand.u32 2147483648, %v623_v29  ;;  %vm629_vm3 = vweird.f32 %v623_v29  ;;  %v633_v62 = vand.u32 2147483647, %v623_v29 }
 0x56f   :  { %v585_v45 = vmul.f32 %v3123_v40, %v584_v43 }
 0x570   :  { %v636_v4 = vor.u32 1.1754944e-38, %v635_v60  ;;  %vm634_vm5 = vcmp.eq.f32.partialorder %v633_v62, 8.507059e+37 }
 0x571   :  { %v586_v46 = vadd.f32 %v3123_v40, %v585_v45 }
 0x573   :  { %v590_v39 = vsel %vm589_vm0, %v3123_v40, %v586_v46 }
 0x574   :  { %v595_v49 = vsel %vm592_vm1, %v594_v48, %v590_v39  ;;  %v3127_v54 = vpop.eup %3126 }
 0x575   :  { %v625_v55 = vmul.f32 %v3127_v54, %v623_v29  ;;  %vm630_vm2 = vweird.f32 %v3127_v54 }
 0x576   :  { %vm631_vm4 = vmor %vm629_vm3, %vm630_vm2 }
 0x577   :  { %v626_v56 = vsub.f32 1.0, %v625_v55 }
 0x579   :  { %v627_v57 = vmul.f32 %v3127_v54, %v626_v56 }
 0x57b   :  { %v628_v58 = vadd.f32 %v3127_v54, %v627_v57 }
 0x57d   :  { %v632_v63 = vsel %vm631_vm4, %v3127_v54, %v628_v58 }
 0x57e   :  { %v637_v6 = vsel %vm634_vm5, %v636_v4, %v632_v63 }
 0x5a0   :  { %v606_v50 = vpop.permute.xlu2 %605 }
 0x5a1   :  { %v608_v51 = vmul.f32 %v606_v50, %v595_v49 }
 0x5a3   :  { %610 = vrot.lane.b32.xlu0 %v608_v51, %s3529_s5 }
 0x5a8   :  { %v601_v11 = vpop.permute.xlu2 %600 }
 0x5a9   :  { %v603_v13 = vmul.f32 %v601_v11, %v595_v49 }
 0x5d3   :  { %v648_v5 = vpop.permute.xlu1 %647 }
 0x5d4   :  { %v650_v9 = vmul.f32 %v648_v5, %v637_v6 }
 0x5d6   :  { %652 = vrot.lane.b32.xlu2 %v650_v9, %s3529_s5 }
 0x5db   :  { %v643_v20 = vpop.permute.xlu1 %642 }
 0x5dc   :  { %v645_v23 = vmul.f32 %v643_v20, %v637_v6 }
 0x5de   :  { %664 = vperm.xlu2 %3080, %v662_v10  }
 0x615   :  { %v611_v14 = vpop.permute.xlu0 %610 }
 0x616   :  { %v613_v18 = vadd.f32 %v611_v14, %v603_v13 }
 0x618   :  { %3128 = vtanh.f32 %v613_v18  ;;  %v674_v40 = vrot.slane %v613_v18, 4 }
 0x61e   :  { %v3129_v19 = vpop.eup %3128 }
 0x61f   :  { %616 = vrot.lane.b32.xlu0 %v3129_v19, %s3526_s27 }
 0x630   :  { %v653_v25 = vpop.permute.xlu2 %652 }
 0x631   :  { %v655_v30 = vadd.f32 %v653_v25, %v645_v23 }
 0x633   :  { %3130 = vtanh.f32 %v655_v30  ;;  %v691_v46 = vrot.slane %v655_v30, 2 }
 0x638   :  { %v3815_v47 = vpop.permute.xlu2 %664 }
 0x639   :  { %v3131_v31 = vpop.eup %3130  ;;  %vm666_vm14 = vcmp.eq.s32.totalorder %v3815_v47, 1 }
 0x63a   :  { %658 = vrot.lane.b32.xlu1 %v3131_v31, %s3526_s27 }
 0x642   :  { %681 = vperm.xlu1 %3081, %v679_v34  }
 0x691   :  { %v617_v35 = vpop.permute.xlu0 %616 }
 0x692   :  { %v619_v36 = vmul.f32 %v617_v35, %v595_v49 }
 0x694   :  { %v668_v38 = vrot.slane %v619_v36, 4 }
 0x696   :  { %669 = vrot.lane.b32.xlu0 %v668_v38, %s3529_s5 }
 0x69e   :  { %675 = vrot.lane.b32.xlu0 %v674_v40, %s3530_s1 }
 0x6ac   :  { %v659_v41 = vpop.permute.xlu1 %658 }
 0x6ad   :  { %v661_v43 = vmul.f32 %v659_v41, %v637_v6 }
 0x6af   :  { %v685_v45 = vrot.slane %v661_v43, 2 }
 0x6b1   :  { %686 = vrot.lane.b32.xlu2 %v685_v45, %s3529_s5 }
 0x6b4   :  { %v3818_v12 = vpop.permute.xlu1 %681 }
 0x6b5   :  { %vm683_vm15 = vcmp.eq.s32.totalorder %v3818_v12, 1 }
 0x6b9   :  { %692 = vrot.lane.b32.xlu2 %v691_v46, %s3530_s1 }
 0x708   :  { %v670_v39 = vpop.permute.xlu0 %669 }
 0x709   :  { %v3823_v48 = vsel %vm666_vm14, %v670_v39, %v3760_v61  ;;  %v696_v49 = vsel %vm666_vm14, %v670_v39, 0.0 }
 0x70a   :  { %697 = vst.msk [vmem:[#allocation2 + $0x4] sm:$0x3] %vm4574_vm8, %v696_v49  ;;  %v704_v50 = vpack.c.bf16 %v3823_v48, %v3823_v48 }
 0x70b   :  { %v3831_v51 = vpop.permute.xlu2 %686 }
 0x70c   :  { %v3837_v52 = vsel %vm683_vm15, %v3831_v51, %v3779_v3  ;;  %2926 = vmatmul.msk.bf16.vlgmr.msra.gmra.mxu0 %vm211_vm12, %v704_v50 }
 0x70d   :  { %v725_v61 = vpack.c.bf16 %v3837_v52, %v3837_v52  ;;  %1356 = vmatpush.bf16.msra.mxu0 %v3630_v8 }
 0x70f   :  { %2927 = vmatmul.msk.bf16.vlgmr.msra.gmra.mxu1 %vm211_vm12, %v725_v61 }
 0x710   :  { %1377 = vmatpush.bf16.msra.mxu1 %v3635_v17  ;;  %v676_v60 = vpop.permute.xlu0 %675 }
 0x711   :  { %1357 = vmatpush.bf16.msra.mxu0 %v3633_v16  ;;  %v3854_v16 = vsel %vm666_vm14, %v676_v60, %v3790_v15 }
 0x713   :  { %v693_v17 = vpop.permute.xlu2 %692 }
 0x714   :  { %1378 = vmatpush.bf16.msra.mxu1 %v3640_v21  ;;  %v764_v21 = vrot.slane %v3854_v16, 2 }
 0x789   :  { %v717_v53 = vpop.f32.mrf.mxu0 }
 0x78a   :  { %v722_v29 = vrot.slane %v717_v53, 2 }
 0x78c   :  { %v724_v3 = vadd.f32 %v722_v29, %v3673_v28  ;;  %v738_v54 = vpop.f32.mrf.mxu1  ;;  %v695_v28 = vsel %vm683_vm15, %v693_v17, %v3799_v33 }
 0x78d   :  { %v742_v55 = vadd.f32 %v738_v54, %v3676_v32 }
 0x78e   :  { %3132 = vtanh.f32 %v724_v3  ;;  %v2928_v32 = vmul.f32 -1.442695, %v724_v3 }
 0x78f   :  { %3134 = vtanh.f32 %v742_v55  ;;  %v2929_v62 = vmul.f32 -1.442695, %v742_v55 }
 0x790   :  { %3136 = vpow2.f32 %v2928_v32 }
 0x791   :  { %v719_v56 = vpop.f32.mrf.mxu0  ;;  %3138 = vpow2.f32 %v2929_v62 }
 0x794   :  { %v3133_v57 = vpop.eup %3132  ;;  %v740_v8 = vpop.f32.mrf.mxu1 }
 0x795   :  { %v3135_v58 = vpop.eup %3134  ;;  %770 = vrot.lane.b32.xlu1 %v3133_v57, %s3526_s27 }
 0x796   :  { %811 = vrot.lane.b32.xlu0 %v3135_v58, %s3526_s27  ;;  %v3137_v63 = vpop.eup %3136 }
 0x797   :  { %v3139_v4 = vpop.eup %3138  ;;  %v746_v5 = vadd.f32 1.0, %v3137_v63 }
 0x798   :  { %v788_v15 = vadd.f32 1.0, %v3139_v4 }
 0x799   :  { %3140 = vrcp.f32 %v746_v5  ;;  %v758_v20 = vand.u32 2147483648, %v746_v5  ;;  %vm752_vm2 = vweird.f32 %v746_v5  ;;  %v756_v25 = vand.u32 2147483647, %v746_v5 }
 0x79a   :  { %3142 = vrcp.f32 %v788_v15  ;;  %v800_v30 = vand.u32 2147483648, %v788_v15  ;;  %vm794_vm4 = vweird.f32 %v788_v15  ;;  %v798_v31 = vand.u32 2147483647, %v788_v15 }
 0x79b   :  { %v759_v35 = vor.u32 1.1754944e-38, %v758_v20  ;;  %vm757_vm6 = vcmp.eq.f32.partialorder %v756_v25, 8.507059e+37 }
 0x79c   :  { %v801_v38 = vor.u32 1.1754944e-38, %v800_v30  ;;  %vm799_vm7 = vcmp.eq.f32.partialorder %v798_v31, 8.507059e+37 }
 0x79d   :  { %765 = vrot.lane.b32.xlu1 %v764_v21, %s3529_s5 }
 0x79e   :  { %806 = vrot.lane.b32.xlu0 %v695_v28, %s3529_s5 }
 0x79f   :  { %v3141_v6 = vpop.eup %3140 }
 0x7a0   :  { %v3143_v9 = vpop.eup %3142  ;;  %v748_v10 = vmul.f32 %v3141_v6, %v746_v5  ;;  %vm753_vm0 = vweird.f32 %v3141_v6 }
 0x7a1   :  { %v790_v11 = vmul.f32 %v3143_v9, %v788_v15  ;;  %vm795_vm1 = vweird.f32 %v3143_v9  ;;  %vm754_vm3 = vmor %vm752_vm2, %vm753_vm0  ;;  %vm138_vm0 = vcmp.gt.s32.totalorder %v3686_v7, 4 }
 0x7a2   :  { %v749_v13 = vsub.f32 1.0, %v748_v10  ;;  %vm796_vm5 = vmor %vm794_vm4, %vm795_vm1  ;;  %v843_v49 = vsel %vm138_vm0, 1, %v3528_v0  ;;  %vm137_vm1 = vcmp.gt.s32.totalorder %v3686_v7, 3 }
 0x7a3   :  { %v791_v14 = vsub.f32 1.0, %v790_v11  ;;  %v826_v58 = vsel %vm137_vm1, 1, %v3528_v0 }
 0x7a4   :  { %v750_v18 = vmul.f32 %v3141_v6, %v749_v13 }
 0x7a5   :  { %v792_v33 = vmul.f32 %v3143_v9, %v791_v14 }
 0x7a6   :  { %v751_v19 = vadd.f32 %v3141_v6, %v750_v18 }
 0x7a7   :  { %v793_v23 = vadd.f32 %v3143_v9, %v792_v33 }
 0x7a8   :  { %v755_v34 = vsel %vm754_vm3, %v3141_v6, %v751_v19 }
 0x7a9   :  { %v797_v36 = vsel %vm796_vm5, %v3143_v9, %v793_v23  ;;  %v760_v41 = vsel %vm757_vm6, %v759_v35, %v755_v34 }
 0x7aa   :  { %v802_v46 = vsel %vm799_vm7, %v801_v38, %v797_v36 }
 0x807   :  { %v771_v40 = vpop.permute.xlu1 %770 }
 0x808   :  { %v773_v43 = vmul.f32 %v771_v40, %v760_v41  ;;  %v812_v45 = vpop.permute.xlu0 %811 }
 0x809   :  { %v814_v39 = vmul.f32 %v812_v45, %v802_v46 }
 0x80a   :  { %775 = vrot.lane.b32.xlu2 %v773_v43, %s3529_s5 }
 0x80b   :  { %816 = vrot.lane.b32.xlu1 %v814_v39, %s3529_s5 }
 0x80f   :  { %v766_v50 = vpop.permute.xlu1 %765 }
 0x810   :  { %v768_v61 = vmul.f32 %v766_v50, %v760_v41  ;;  %v3869_v54 = vpop.permute.xlu0 %806 }
 0x811   :  { %v809_v55 = vmul.f32 %v3869_v54, %v802_v46 }
 0x813   :  { %845 = vperm.xlu1 %3081, %v843_v49  }
 0x864   :  { %v776_v53 = vpop.permute.xlu2 %775 }
 0x865   :  { %v778_v29 = vadd.f32 %v776_v53, %v768_v61 }
 0x867   :  { %3144 = vtanh.f32 %v778_v29  ;;  %v838_v60 = vrot.slane %v778_v29, 6 }
 0x86d   :  { %v3145_v3 = vpop.eup %3144 }
 0x86e   :  { %781 = vrot.lane.b32.xlu2 %v3145_v3, %s3526_s27 }
 0x876   :  { %849 = vrot.lane.b32.xlu2 %v3837_v52, %s3530_s1 }
 0x87d   :  { %v817_v56 = vpop.permute.xlu1 %816 }
 0x87e   :  { %v3872_v57 = vadd.f32 %v817_v56, %v809_v55 }
 0x880   :  { %3146 = vtanh.f32 %v3872_v57 }
 0x885   :  { %v3880_v28 = vpop.permute.xlu1 %845 }
 0x886   :  { %v3147_v8 = vpop.eup %3146  ;;  %vm847_vm2 = vcmp.eq.s32.totalorder %v3880_v28, 1 }
 0x887   :  { %822 = vrot.lane.b32.xlu0 %v3147_v8, %s3526_s27 }
 0x88f   :  { %828 = vperm.xlu0 %3082, %v826_v58  }
 0x897   :  { %839 = vrot.lane.b32.xlu0 %v838_v60, %s3530_s1 }
 0x8c8   :  { %v782_v52 = vpop.permute.xlu2 %781 }
 0x8c9   :  { %v784_v17 = vmul.f32 %v782_v52, %v760_v41 }
 0x8cb   :  { %v832_v21 = vrot.slane %v784_v17, 6 }
 0x8cd   :  { %833 = vrot.lane.b32.xlu1 %v832_v21, %s3529_s5 }
 0x8d0   :  { %v850_v63 = vpop.permute.xlu2 %849 }
 0x8f9   :  { %v823_v32 = vpop.permute.xlu0 %822 }
 0x8fa   :  { %v3882_v62 = vmul.f32 %v823_v32, %v802_v46 }
 0x8fc   :  { %v3888_v7 = vsel %vm847_vm2, %v3882_v62, %v850_v63 }
 0x8fd   :  { %v880_v4 = vpack.c.bf16 %v3888_v7, %v3888_v7 }
 0x8ff   :  { %882 = vrot.lane.b32.xlu2 %v880_v4, %s3529_s5 }
 0x901   :  { %v3893_v5 = vpop.permute.xlu0 %828 }
 0x902   :  { %vm830_vm3 = vcmp.eq.s32.totalorder %v3893_v5, 1 }
 0x909   :  { %v840_v15 = vpop.permute.xlu0 %839 }
 0x90a   :  { %v842_v6 = vsel %vm830_vm3, %v840_v15, %v3854_v16  ;;  %v3915_v16 = vadd.f32 %v3730_v44, %v153_v24  ;;  %v853_v15 = vsel %vm847_vm2, %v3872_v57, %v3869_v54 }
 0x90b   :  { %925 = vrot.lane.b32.xlu0 %v842_v6, %s3529_s5  ;;  %v966_v6 = vrot.slane %v853_v15, 2 }
 0x93f   :  { %v834_v9 = vpop.permute.xlu1 %833 }
 0x940   :  { %v3903_v10 = vsel %vm830_vm3, %v834_v9, %v3823_v48  ;;  %v854_v11 = vsel %vm830_vm3, %v834_v9, 0.0 }
 0x941   :  { %855 = vst.msk [vmem:[#allocation2 + $0x6] sm:$0x3] %vm4574_vm8, %v854_v11  ;;  %v862_v13 = vpack.c.bf16 %v3903_v10, %v3903_v10 }
 0x943   :  { %2930 = vmatmul.msk.bf16.vlgmr.msra.gmra.mxu2 %vm211_vm12, %v862_v13 }
 0x959   :  { %v883_v14 = vpop.permute.xlu2 %882 }
 0x95a   :  { %2931 = vmatmul.msk.bf16.vlgmr.msra.gmra.mxu3 %vm211_vm12, %v883_v14 }
 0x9c6   :  { %v875_v48 = vpop.f32.mrf.mxu2 }
 0x9c7   :  { %v879_v18 = vadd.f32 %v875_v48, %v3915_v16  ;;  %v3933_v48 = vpop.permute.xlu0 %925 }
 0x9c9   :  { %3148 = vtanh.f32 %v879_v18  ;;  %v2932_v22 = vmul.f32 -1.442695, %v879_v18 }
 0x9ce   :  { %v877_v33 = vpop.f32.mrf.mxu2 }
 0x9cf   :  { %v3149_v19 = vpop.eup %3148 }
 0x9d0   :  { %930 = vrot.lane.b32.xlu1 %v3149_v19, %s3526_s27 }
 0x9dd   :  { %v896_v20 = vpop.f32.mrf.mxu3 }
 0x9de   :  { %v901_v23 = vrot.slane %v896_v20, 2 }
 0x9e0   :  { %v903_v25 = vadd.f32 %v901_v23, %v3669_v26 }
 0x9e2   :  { %3150 = vtanh.f32 %v903_v25  ;;  %v2933_v24 = vmul.f32 -1.442695, %v903_v25 }
 0x9e3   :  { %3152 = vpow2.f32 %v2932_v22 }
 0x9e4   :  { %3154 = vpow2.f32 %v2933_v24 }
 0x9e5   :  { %v898_v30 = vpop.f32.mrf.mxu3 }
 0x9e8   :  { %v3151_v31 = vpop.eup %3150 }
 0x9e9   :  { %970 = vrot.lane.b32.xlu2 %v3151_v31, %s3526_s27  ;;  %v3153_v44 = vpop.eup %3152 }
 0x9ea   :  { %v3155_v34 = vpop.eup %3154  ;;  %v907_v35 = vadd.f32 1.0, %v3153_v44 }
 0x9eb   :  { %v948_v36 = vadd.f32 1.0, %v3155_v34 }
 0x9ec   :  { %3156 = vrcp.f32 %v907_v35  ;;  %v919_v61 = vand.u32 2147483648, %v907_v35  ;;  %vm913_vm6 = vweird.f32 %v907_v35  ;;  %v917_v29 = vand.u32 2147483647, %v907_v35 }
 0x9ed   :  { %3158 = vrcp.f32 %v948_v36  ;;  %v960_v3 = vand.u32 2147483648, %v948_v36  ;;  %vm954_vm0 = vweird.f32 %v948_v36  ;;  %v958_v55 = vand.u32 2147483647, %v948_v36 }
 0x9ee   :  { %v920_v8 = vor.u32 1.1754944e-38, %v919_v61  ;;  %vm918_vm13 = vcmp.eq.f32.partialorder %v917_v29, 8.507059e+37 }
 0x9ef   :  { %v961_v60 = vor.u32 1.1754944e-38, %v960_v3  ;;  %vm959_vm8 = vcmp.eq.f32.partialorder %v958_v55, 8.507059e+37 }
 0x9f2   :  { %v3157_v38 = vpop.eup %3156 }
 0x9f3   :  { %v3159_v40 = vpop.eup %3158  ;;  %v909_v41 = vmul.f32 %v3157_v38, %v907_v35  ;;  %vm914_vm4 = vweird.f32 %v3157_v38 }
 0x9f4   :  { %v950_v43 = vmul.f32 %v3159_v40, %v948_v36  ;;  %vm955_vm5 = vweird.f32 %v3159_v40  ;;  %vm915_vm7 = vmor %vm913_vm6, %vm914_vm4 }
 0x9f5   :  { %v910_v45 = vsub.f32 1.0, %v909_v41  ;;  %vm956_vm1 = vmor %vm954_vm0, %vm955_vm5 }
 0x9f6   :  { %v951_v46 = vsub.f32 1.0, %v950_v43 }
 0x9f7   :  { %v911_v39 = vmul.f32 %v3157_v38, %v910_v45 }
 0x9f8   :  { %v952_v49 = vmul.f32 %v3159_v40, %v951_v46 }
 0x9f9   :  { %v912_v50 = vadd.f32 %v3157_v38, %v911_v39 }
 0x9fa   :  { %v953_v53 = vadd.f32 %v3159_v40, %v952_v49 }
 0x9fb   :  { %v916_v56 = vsel %vm915_vm7, %v3157_v38, %v912_v50 }
 0x9fc   :  { %v957_v58 = vsel %vm956_vm1, %v3159_v40, %v953_v53  ;;  %v921_v17 = vsel %vm918_vm13, %v920_v8, %v916_v56 }
 0x9fd   :  { %v962_v63 = vsel %vm959_vm8, %v961_v60, %v957_v58 }
 0x9fe   :  { %v968_v9 = vmul.f32 %v966_v6, %v962_v63 }
 0xa42   :  { %v931_v52 = vpop.permute.xlu1 %930 }
 0xa43   :  { %v933_v21 = vmul.f32 %v931_v52, %v921_v17  ;;  %v971_v32 = vpop.permute.xlu2 %970 }
 0xa44   :  { %v973_v4 = vmul.f32 %v971_v32, %v962_v63 }
 0xa45   :  { %935 = vrot.lane.b32.xlu1 %v933_v21, %s3529_s5 }
 0xa46   :  { %975 = vrot.lane.b32.xlu2 %v973_v4, %s3529_s5 }
 0xa4e   :  { %986 = vrot.lane.b32.xlu2 %v3903_v10, %s3530_s1  ;;  %v928_v10 = vmul.f32 %v3933_v48, %v921_v17 }
 0xa56   :  { %997 = vrot.lane.b32.xlu2 %v3888_v7, %s3529_s5 }
 0xa5e   :  { %1006 = vrot.lane.b32.xlu2 %v853_v15, %s3530_s1 }
 0xaa0   :  { %v976_v11 = vpop.permute.xlu2 %975 }
 0xaa1   :  { %v978_v13 = vadd.f32 %v976_v11, %v968_v9 }
 0xaa3   :  { %3160 = vtanh.f32 %v978_v13  ;;  %v1002_v20 = vrot.slane %v978_v13, 6 }
 0xaa8   :  { %v987_v30 = vpop.permute.xlu2 %986 }
 0xaa9   :  { %v3161_v14 = vpop.eup %3160 }
 0xaaa   :  { %981 = vrot.lane.b32.xlu1 %v3161_v14, %s3526_s27 }
 0xab0   :  { %v998_v24 = vpop.permute.xlu2 %997 }
 0xab7   :  { %v936_v7 = vpop.permute.xlu1 %935 }
 0xab8   :  { %v3936_v18 = vadd.f32 %v936_v7, %v928_v10  ;;  %v1007_v36 = vpop.permute.xlu2 %1006 }
 0xaba   :  { %3162 = vtanh.f32 %v3936_v18 }
 0xac0   :  { %v3163_v54 = vpop.eup %3162 }
 0xac1   :  { %941 = vrot.lane.b32.xlu0 %v3163_v54, %s3526_s27 }
 0xb1c   :  { %v982_v57 = vpop.permute.xlu1 %981 }
 0xb1d   :  { %v984_v33 = vmul.f32 %v982_v57, %v962_v63 }
 0xb1f   :  { %v992_v19 = vrot.slane %v984_v33, 6 }
 0xb21   :  { %993 = vrot.lane.b32.xlu1 %v992_v19, %s3529_s5 }
 0xb29   :  { %1003 = vrot.lane.b32.xlu1 %v1002_v20, %s3530_s1 }
 0xb33   :  { %v942_v23 = vpop.permute.xlu0 %941 }
 0xb34   :  { %v3942_v25 = vmul.f32 %v942_v23, %v921_v17 }
 0xb36   :  { %v3947_v31 = vsel %vm847_vm2, %v3942_v25, %v987_v30 }
 0xb37   :  { %v1022_v22 = vpack.c.bf16 %v3947_v31, %v3947_v31 }
 0xb39   :  { %1024 = vrot.lane.b32.xlu0 %v1022_v22, %s3529_s5 }
 0xb93   :  { %v3952_v44 = vpop.permute.xlu1 %993 }
 0xb94   :  { %v3957_v34 = vsel %vm830_vm3, %v3952_v44, %v998_v24 }
 0xb95   :  { %v1046_v35 = vpack.c.bf16 %v3957_v34, %v3957_v34 }
 0xb97   :  { %2935 = vmatmul.msk.bf16.vlgmr.msrb.gmra.mxu1 %vm211_vm12, %v1046_v35 }
 0xb9b   :  { %v1004_v38 = vpop.permute.xlu1 %1003 }
 0xb9c   :  { %v3964_v40 = vsel %vm830_vm3, %v1004_v38, %v1007_v36 }
 0xb9d   :  { %v1128_v41 = vrot.slane %v3964_v40, 4 }
 0xb9f   :  { %1129 = vrot.lane.b32.xlu2 %v1128_v41, %s3529_s5  ;;  %v990_v41 = vsel %vm847_vm2, %v3936_v18, %v3933_v48 }
 0xbab   :  { %v1025_v43 = vpop.permute.xlu0 %1024 }
 0xbac   :  { %2934 = vmatmul.msk.bf16.vlgmr.msrb.gmra.mxu0 %vm211_vm12, %v1025_v43  ;;  %v1088_v43 = vrot.slane %v990_v41, 6 }
 0xc14   :  { %v1059_v45 = vpop.f32.mrf.mxu1 }
 0xc15   :  { %v1064_v61 = vrot.slane %v1059_v45, 4 }
 0xc17   :  { %v1066_v29 = vadd.f32 %v1064_v61, %v3669_v26 }
 0xc19   :  { %v2937_v8 = vmul.f32 -1.442695, %v1066_v29 }
 0xc1c   :  { %v1061_v46 = vpop.f32.mrf.mxu1 }
 0xc29   :  { %v1038_v39 = vpop.f32.mrf.mxu0 }
 0xc2a   :  { %v1043_v49 = vrot.slane %v1038_v39, 6 }
 0xc2c   :  { %v1045_v50 = vadd.f32 %v1043_v49, %v3915_v16  ;;  %v1130_v49 = vpop.permute.xlu2 %1129 }
 0xc2e   :  { %3164 = vtanh.f32 %v1045_v50  ;;  %v2936_v56 = vmul.f32 -1.442695, %v1045_v50 }
 0xc2f   :  { %3166 = vtanh.f32 %v1066_v29 }
 0xc30   :  { %3168 = vpow2.f32 %v2936_v56 }
 0xc31   :  { %v1040_v53 = vpop.f32.mrf.mxu0  ;;  %3170 = vpow2.f32 %v2937_v8 }
 0xc34   :  { %v3165_v3 = vpop.eup %3164 }
 0xc35   :  { %1092 = vrot.lane.b32.xlu0 %v3165_v3, %s3526_s27  ;;  %v3167_v55 = vpop.eup %3166 }
 0xc36   :  { %v3169_v58 = vpop.eup %3168 }
 0xc37   :  { %v1070_v60 = vadd.f32 1.0, %v3169_v58  ;;  %v3171_v52 = vpop.eup %3170 }
 0xc38   :  { %v1110_v17 = vadd.f32 1.0, %v3171_v52 }
 0xc39   :  { %3172 = vrcp.f32 %v1070_v60  ;;  %v1082_v13 = vand.u32 2147483648, %v1070_v60  ;;  %vm1076_vm8 = vweird.f32 %v1070_v60  ;;  %v1080_v14 = vand.u32 2147483647, %v1070_v60 }
 0xc3a   :  { %3174 = vrcp.f32 %v1110_v17  ;;  %v1122_v23 = vand.u32 2147483648, %v1110_v17  ;;  %vm1116_vm7 = vweird.f32 %v1110_v17  ;;  %v1120_v30 = vand.u32 2147483647, %v1110_v17 }
 0xc3b   :  { %v1083_v54 = vor.u32 1.1754944e-38, %v1082_v13  ;;  %vm1081_vm5 = vcmp.eq.f32.partialorder %v1080_v14, 8.507059e+37 }
 0xc3c   :  { %v1123_v24 = vor.u32 1.1754944e-38, %v1122_v23  ;;  %vm1121_vm1 = vcmp.eq.f32.partialorder %v1120_v30, 8.507059e+37 }
 0xc3d   :  { %1134 = vrot.lane.b32.xlu0 %v3167_v55, %s3526_s27 }
 0xc3f   :  { %v3173_v21 = vpop.eup %3172 }
 0xc40   :  { %v1072_v32 = vmul.f32 %v3173_v21, %v1070_v60  ;;  %v3175_v4 = vpop.eup %3174  ;;  %vm1077_vm13 = vweird.f32 %v3173_v21 }
 0xc41   :  { %v1112_v6 = vmul.f32 %v3175_v4, %v1110_v17  ;;  %vm1078_vm4 = vmor %vm1076_vm8, %vm1077_vm13  ;;  %vm1117_vm6 = vweird.f32 %v3175_v4 }
 0xc42   :  { %v1073_v63 = vsub.f32 1.0, %v1072_v32  ;;  %vm1118_vm0 = vmor %vm1116_vm7, %vm1117_vm6 }
 0xc43   :  { %v1113_v11 = vsub.f32 1.0, %v1112_v6 }
 0xc44   :  { %v1074_v15 = vmul.f32 %v3173_v21, %v1073_v63 }
 0xc45   :  { %v1114_v7 = vmul.f32 %v3175_v4, %v1113_v11 }
 0xc46   :  { %v1075_v9 = vadd.f32 %v3173_v21, %v1074_v15 }
 0xc47   :  { %v1115_v20 = vadd.f32 %v3175_v4, %v1114_v7 }
 0xc48   :  { %v1079_v10 = vsel %vm1078_vm4, %v3173_v21, %v1075_v9 }
 0xc49   :  { %v1084_v33 = vsel %vm1081_vm5, %v1083_v54, %v1079_v10  ;;  %v1119_v22 = vsel %vm1118_vm0, %v3175_v4, %v1115_v20 }
 0xc4a   :  { %v1124_v36 = vsel %vm1121_vm1, %v1123_v24, %v1119_v22  ;;  %v1090_v45 = vmul.f32 %v1088_v43, %v1084_v33 }
 0xc4b   :  { %v1132_v50 = vmul.f32 %v1130_v49, %v1124_v36 }
 0xca7   :  { %v1093_v57 = vpop.permute.xlu0 %1092 }
 0xca8   :  { %v1095_v19 = vmul.f32 %v1093_v57, %v1084_v33 }
 0xcaa   :  { %1097 = vrot.lane.b32.xlu1 %v1095_v19, %s3529_s5 }
 0xcaf   :  { %v1135_v35 = vpop.permute.xlu0 %1134 }
 0xcb0   :  { %v1137_v38 = vmul.f32 %v1135_v35, %v1124_v36 }
 0xcb2   :  { %1139 = vrot.lane.b32.xlu0 %v1137_v38, %s3529_s5 }
 0xd1c   :  { %v1098_v46 = vpop.permute.xlu1 %1097 }
 0xd1d   :  { %v1100_v39 = vadd.f32 %v1098_v46, %v1090_v45 }
 0xd1f   :  { %3176 = vtanh.f32 %v1100_v39  ;;  %v1160_v60 = vrot.slane %v1100_v39, 2 }
 0xd24   :  { %v1140_v61 = vpop.permute.xlu0 %1139 }
 0xd25   :  { %v3177_v53 = vpop.eup %3176  ;;  %v1142_v29 = vadd.f32 %v1140_v61, %v1132_v50 }
 0xd26   :  { %1103 = vrot.lane.b32.xlu1 %v3177_v53, %s3526_s27 }
 0xd27   :  { %3178 = vtanh.f32 %v1142_v29  ;;  %v1175_v52 = vrot.slane %v1142_v29, 4 }
 0xd2d   :  { %v3179_v3 = vpop.eup %3178 }
 0xd2e   :  { %1145 = vrot.lane.b32.xlu2 %v3179_v3, %s3526_s27  ;;  %1155 = vrot.lane.b32.xlu1 %v3947_v31, %s3529_s5 }
 0xd36   :  { %1164 = vrot.lane.b32.xlu1 %v990_v41, %s3530_s1 }
 0xd88   :  { %v1146_v48 = vpop.permute.xlu2 %1145 }
 0xd89   :  { %v1148_v18 = vmul.f32 %v1146_v48, %v1124_v36 }
 0xd8b   :  { %v1169_v55 = vrot.slane %v1148_v18, 4 }
 0xd8d   :  { %1170 = vrot.lane.b32.xlu2 %v1169_v55, %s3529_s5 }
 0xd98   :  { %v1104_v56 = vpop.permute.xlu1 %1103 }
 0xd99   :  { %v1106_v8 = vmul.f32 %v1104_v56, %v1084_v33 }
 0xd9b   :  { %v1150_v58 = vrot.slane %v1106_v8, 2 }
 0xd9d   :  { %1151 = vrot.lane.b32.xlu0 %v1150_v58, %s3529_s5 }
 0xda0   :  { %v1156_v32 = vpop.permute.xlu1 %1155 }
 0xda5   :  { %1161 = vrot.lane.b32.xlu0 %v1160_v60, %s3530_s1 }
 0xda8   :  { %v1165_v30 = vpop.permute.xlu1 %1164 }
 0xdad   :  { %1176 = vrot.lane.b32.xlu0 %v1175_v52, %s3530_s1 }
 0xde7   :  { %v3988_v17 = vpop.permute.xlu2 %1170 }
 0xde8   :  { %v3994_v31 = vsel %vm666_vm14, %v3988_v17, %v3957_v34 }
 0xde9   :  { %v1209_v21 = vpack.c.bf16 %v3994_v31, %v3994_v31 }
 0xdeb   :  { %2939 = vmatmul.msk.bf16.vlgmr.msrb.gmra.mxu3 %vm211_vm12, %v1209_v21 }
 0xe0f   :  { %v3999_v63 = vpop.permute.xlu0 %1151 }
 0xe10   :  { %v4004_v4 = vsel %vm683_vm15, %v3999_v63, %v1156_v32 }
 0xe11   :  { %v1188_v15 = vpack.c.bf16 %v4004_v4, %v4004_v4 }
 0xe13   :  { %2938 = vmatmul.msk.bf16.vlgmr.msrb.gmra.mxu2 %vm211_vm12, %v1188_v15 }
 0xe17   :  { %v1162_v9 = vpop.permute.xlu0 %1161 }
 0xe18   :  { %v4022_v22 = vsel %vm683_vm15, %v1162_v9, %v1165_v30 }
 0xe1f   :  { %v1177_v10 = vpop.permute.xlu0 %1176 }
 0xe20   :  { %v4014_v7 = vsel %vm666_vm14, %v1177_v10, %v3964_v40  ;;  %v1251_v40 = vrot.slane %v4022_v22, 4 }
 0xe21   :  { %v1293_v54 = vrot.slane %v4014_v7, 6 }
 0xe6e   :  { %v1222_v34 = vpop.f32.mrf.mxu3 }
 0xe6f   :  { %v1227_v6 = vrot.slane %v1222_v34, 6 }
 0xe71   :  { %v1229_v11 = vadd.f32 %v1227_v6, %v3669_v26 }
 0xe73   :  { %3180 = vtanh.f32 %v1229_v11  ;;  %v2941_v24 = vmul.f32 -1.442695, %v1229_v11 }
 0xe76   :  { %v1224_v13 = vpop.f32.mrf.mxu3 }
 0xe79   :  { %v3181_v14 = vpop.eup %3180 }
 0xe7a   :  { %1299 = vrot.lane.b32.xlu1 %v3181_v14, %s3526_s27 }
 0xe82   :  { %1294 = vrot.lane.b32.xlu1 %v1293_v54, %s3529_s5 }
 0xe96   :  { %v1201_v57 = vpop.f32.mrf.mxu2 }
 0xe97   :  { %v1206_v33 = vrot.slane %v1201_v57, 4 }
 0xe99   :  { %v1208_v19 = vadd.f32 %v1206_v33, %v3915_v16 }
 0xe9b   :  { %3182 = vtanh.f32 %v1208_v19  ;;  %v2940_v38 = vmul.f32 -1.442695, %v1208_v19 }
 0xe9c   :  { %3184 = vpow2.f32 %v2941_v24 }
 0xe9e   :  { %v1203_v20 = vpop.f32.mrf.mxu2 }
 0xea1   :  { %v3183_v23 = vpop.eup %3182 }
 0xea2   :  { %1257 = vrot.lane.b32.xlu2 %v3183_v23, %s3526_s27  ;;  %v3185_v35 = vpop.eup %3184 }
 0xea3   :  { %v1275_v36 = vadd.f32 1.0, %v3185_v35 }
 0xea5   :  { %3186 = vrcp.f32 %v1275_v36  ;;  %v1287_v53 = vand.u32 2147483648, %v1275_v36  ;;  %vm1281_vm8 = vweird.f32 %v1275_v36  ;;  %v1285_v29 = vand.u32 2147483647, %v1275_v36 }
 0xea6   :  { %3188 = vpow2.f32 %v2940_v38 }
 0xea7   :  { %v1288_v18 = vor.u32 1.1754944e-38, %v1287_v53  ;;  %vm1286_vm5 = vcmp.eq.f32.partialorder %v1285_v29, 8.507059e+37 }
 0xeaa   :  { %1252 = vrot.lane.b32.xlu2 %v1251_v40, %s3529_s5 }
 0xeab   :  { %v3187_v41 = vpop.eup %3186 }
 0xeac   :  { %v3189_v43 = vpop.eup %3188  ;;  %v1277_v45 = vmul.f32 %v3187_v41, %v1275_v36  ;;  %vm1282_vm13 = vweird.f32 %v3187_v41 }
 0xead   :  { %v1233_v46 = vadd.f32 1.0, %v3189_v43  ;;  %vm1283_vm4 = vmor %vm1281_vm8, %vm1282_vm13 }
 0xeae   :  { %v1278_v39 = vsub.f32 1.0, %v1277_v45 }
 0xeaf   :  { %3190 = vrcp.f32 %v1233_v46  ;;  %v1245_v21 = vand.u32 2147483648, %v1233_v46  ;;  %vm1239_vm7 = vweird.f32 %v1233_v46  ;;  %v1243_v32 = vand.u32 2147483647, %v1233_v46 }
 0xeb0   :  { %v1279_v49 = vmul.f32 %v3187_v41, %v1278_v39 }
 0xeb1   :  { %v1246_v34 = vor.u32 1.1754944e-38, %v1245_v21  ;;  %vm1244_vm1 = vcmp.eq.f32.partialorder %v1243_v32, 8.507059e+37 }
 0xeb2   :  { %v1280_v50 = vadd.f32 %v3187_v41, %v1279_v49 }
 0xeb4   :  { %v1284_v3 = vsel %vm1283_vm4, %v3187_v41, %v1280_v50 }
 0xeb5   :  { %v3191_v61 = vpop.eup %3190  ;;  %v1289_v56 = vsel %vm1286_vm5, %v1288_v18, %v1284_v3 }
 0xeb6   :  { %v1235_v48 = vmul.f32 %v3191_v61, %v1233_v46  ;;  %vm1240_vm6 = vweird.f32 %v3191_v61 }
 0xeb7   :  { %vm1241_vm0 = vmor %vm1239_vm7, %vm1240_vm6 }
 0xeb8   :  { %v1236_v58 = vsub.f32 1.0, %v1235_v48 }
 0xeba   :  { %v1237_v60 = vmul.f32 %v3191_v61, %v1236_v58 }
 0xebc   :  { %v1238_v52 = vadd.f32 %v3191_v61, %v1237_v60 }
 0xebe   :  { %v1242_v15 = vsel %vm1241_vm0, %v3191_v61, %v1238_v52 }
 0xebf   :  { %v1247_v9 = vsel %vm1244_vm1, %v1246_v34, %v1242_v15 }
 0xeec   :  { %v1300_v55 = vpop.permute.xlu1 %1299 }
 0xeed   :  { %v1302_v8 = vmul.f32 %v1300_v55, %v1289_v56 }
 0xeef   :  { %1304 = vrot.lane.b32.xlu2 %v1302_v8, %s3529_s5 }
 0xef4   :  { %v1295_v14 = vpop.permute.xlu1 %1294 }
 0xef5   :  { %v1297_v10 = vmul.f32 %v1295_v14, %v1289_v56 }
 0xefc   :  { %v1258_v6 = vpop.permute.xlu2 %1257 }
 0xefd   :  { %v1260_v11 = vmul.f32 %v1258_v6, %v1247_v9 }
 0xeff   :  { %1262 = vrot.lane.b32.xlu0 %v1260_v11, %s3529_s5 }
 0xf04   :  { %v1253_v13 = vpop.permute.xlu2 %1252 }
 0xf05   :  { %v1255_v19 = vmul.f32 %v1253_v13, %v1247_v9 }
 0xf49   :  { %v1305_v54 = vpop.permute.xlu2 %1304 }
 0xf4a   :  { %v1307_v57 = vadd.f32 %v1305_v54, %v1297_v10 }
 0xf4c   :  { %3192 = vtanh.f32 %v1307_v57  ;;  %v1333_v38 = vrot.slane %v1307_v57, 2 }
 0xf52   :  { %v3193_v33 = vpop.eup %3192 }
 0xf53   :  { %1310 = vrot.lane.b32.xlu1 %v3193_v33, %s3526_s27 }
 0xf71   :  { %v1263_v20 = vpop.permute.xlu0 %1262 }
 0xf72   :  { %v1265_v23 = vadd.f32 %v1263_v20, %v1255_v19 }
 0xf74   :  { %3194 = vtanh.f32 %v1265_v23  ;;  %v1321_v30 = vrot.slane %v1265_v23, 4 }
 0xf76   :  { %1322 = vrot.lane.b32.xlu1 %v1321_v30, %s3530_s1 }
 0xf7a   :  { %v3195_v40 = vpop.eup %3194 }
 0xf7b   :  { %1268 = vrot.lane.b32.xlu0 %v3195_v40, %s3526_s27 }
 0xfc5   :  { %v1311_v24 = vpop.permute.xlu1 %1310 }
 0xfc6   :  { %v1313_v35 = vmul.f32 %v1311_v24, %v1289_v56 }
 0xfc8   :  { %v1327_v36 = vrot.slane %v1313_v35, 2 }
 0xfca   :  { %1328 = vrot.lane.b32.xlu0 %v1327_v36, %s3529_s5 }
 0xfd2   :  { %1334 = vrot.lane.b32.xlu0 %v1333_v38, %s3530_s1 }
 0xfed   :  { %v1269_v41 = vpop.permute.xlu0 %1268 }
 0xfee   :  { %v1271_v43 = vmul.f32 %v1269_v41, %v1247_v9 }
 0xff0   :  { %v1315_v45 = vrot.slane %v1271_v43, 4 }
 0xff2   :  { %1316 = vrot.lane.b32.xlu2 %v1315_v45, %s3529_s5 }
0x103c   :  { %v4034_v46 = vpop.permute.xlu0 %1328 }
0x103d   :  { %v1331_v39 = vsel %vm495_vm9, %v4034_v46, %v3994_v31 }
0x103e   :  { %v1367_v49 = vpack.c.bf16 %v1331_v39, %v1331_v39 }
0x1040   :  { %2943 = vmatmul.msk.bf16.vlgmr.msra.gmra.mxu1 %vm211_vm12, %v1367_v49 }
0x1044   :  { %v1335_v31 = vpop.permute.xlu0 %1334 }
0x1045   :  { %v1337_v8 = vsel %vm495_vm9, %v1335_v31, %v4014_v7 }
0x104c   :  { %v4041_v50 = vpop.permute.xlu2 %1316 }
0x104d   :  { %v1319_v61 = vsel %vm515_vm10, %v4041_v50, %v4004_v4 }
0x104e   :  { %v1346_v53 = vpack.c.bf16 %v1319_v61, %v1319_v61 }
0x1050   :  { %2942 = vmatmul.msk.bf16.vlgmr.msra.gmra.mxu0 %vm211_vm12, %v1346_v53  ;;  %v856_v53 = vsel %vm847_vm2, %v3882_v62, 0.0 }
0x10bd   :  { %v1380_v29 = vpop.f32.mrf.mxu1 }
0x10be   :  { %v1384_v3 = vadd.f32 %v1380_v29, %v3669_v26  ;;  %v1323_v26 = vpop.permute.xlu1 %1322  ;;  %v1016_v29 = vsel %vm830_vm3, %v3952_v44, 0.0  ;;  %v698_v44 = vsel %vm683_vm15, %v3831_v51, 0.0  ;;  %v1340_v51 = vsel %vm495_vm9, %v4034_v46, 0.0 }
0x10bf   :  { %v1325_v52 = vsel %vm515_vm10, %v1323_v26, %v4022_v22  ;;  %v1010_v26 = vsel %vm847_vm2, %v3942_v25, 0.0  ;;  %v1180_v46 = vsel %vm683_vm15, %v3999_v63, 0.0  ;;  %v1338_v63 = vsel %vm515_vm10, %v4041_v50, 0.0  ;;  %v3055_v50 = vld [vmem:[#allocation11 + $0x24] sm:$0xf0] }
0x10c0   :  { %3196 = vtanh.f32 %v1384_v3  ;;  %v1406_v21 = vrot.slane %v1325_v52, 2  ;;  %v2945_v7 = vmul.f32 -1.442695, %v1384_v3 }
0x10c5   :  { %v1382_v48 = vpop.f32.mrf.mxu1 }
0x10c6   :  { %v3197_v18 = vpop.eup %3196 }
0x10c7   :  { %1453 = vrot.lane.b32.xlu1 %v3197_v18, %s3526_s27 }
0x10cd   :  { %v1359_v55 = vpop.f32.mrf.mxu0 }
0x10ce   :  { %v1364_v56 = vrot.slane %v1359_v55, 2 }
0x10cf   :  { %1448 = vrot.lane.b32.xlu1 %v1337_v8, %s3529_s5 }
0x10d0   :  { %v1366_v4 = vadd.f32 %v1364_v56, %v3915_v16 }
0x10d2   :  { %3198 = vtanh.f32 %v1366_v4  ;;  %v2944_v32 = vmul.f32 -1.442695, %v1366_v4 }
0x10d4   :  { %3200 = vpow2.f32 %v2944_v32 }
0x10d5   :  { %v1361_v58 = vpop.f32.mrf.mxu0  ;;  %3202 = vpow2.f32 %v2945_v7 }
0x10d8   :  { %v3199_v60 = vpop.eup %3198 }
0x10d9   :  { %1412 = vrot.lane.b32.xlu2 %v3199_v60, %s3526_s27 }
0x10da   :  { %v3201_v15 = vpop.eup %3200 }
0x10db   :  { %v1388_v34 = vadd.f32 1.0, %v3201_v15  ;;  %v3203_v16 = vpop.eup %3202 }
0x10dc   :  { %v1430_v6 = vadd.f32 1.0, %v3203_v16 }
0x10dd   :  { %3204 = vrcp.f32 %v1388_v34  ;;  %v1400_v33 = vand.u32 2147483648, %v1388_v34  ;;  %vm1394_vm8 = vweird.f32 %v1388_v34  ;;  %v1398_v19 = vand.u32 2147483647, %v1388_v34 }
0x10de   :  { %3206 = vrcp.f32 %v1430_v6  ;;  %v1442_v36 = vand.u32 2147483648, %v1430_v6  ;;  %vm1436_vm7 = vweird.f32 %v1430_v6  ;;  %v1440_v41 = vand.u32 2147483647, %v1430_v6 }
0x10df   :  { %v1401_v30 = vor.u32 1.1754944e-38, %v1400_v33  ;;  %vm1399_vm5 = vcmp.eq.f32.partialorder %v1398_v19, 8.507059e+37  ;;  %v2974_v33 = vld [vmem:[#allocation11 + $0x38] sm:$0xf0]  ;;  %v2964_v19 = vld [vmem:[#allocation11 + $0x20] sm:$0xf] }
0x10e0   :  { %v1443_v45 = vor.u32 1.1754944e-38, %v1442_v36  ;;  %vm1441_vm1 = vcmp.eq.f32.partialorder %v1440_v41, 8.507059e+37  ;;  %v2986_v36 = vld [vmem:[#allocation13 + $0x10] sm:$0xf]  ;;  %v3061_v41 = vld [vmem:[#allocation13 + $0x14] sm:$0xf0] }
0x10e1   :  { %1407 = vrot.lane.b32.xlu2 %v1406_v21, %s3529_s5  ;;  %v530_v21 = vsel %vm515_vm10, %v3773_v2, 0.0 }
0x10e3   :  { %v3205_v9 = vpop.eup %3204 }
0x10e4   :  { %v1390_v11 = vmul.f32 %v3205_v9, %v1388_v34  ;;  %v3207_v13 = vpop.eup %3206  ;;  %vm1395_vm13 = vweird.f32 %v3205_v9 }
0x10e5   :  { %v1432_v10 = vmul.f32 %v3207_v13, %v1430_v6  ;;  %vm1396_vm4 = vmor %vm1394_vm8, %vm1395_vm13  ;;  %vm1437_vm6 = vweird.f32 %v3207_v13  ;;  %vm4576_vm13 = vcmask 517376   ;;  %vm4577_vm8 = vcmask 254976  }
0x10e6   :  { %v1391_v14 = vsub.f32 1.0, %v1390_v11  ;;  %vm1438_vm0 = vmor %vm1436_vm7, %vm1437_vm6  ;;  %vm4580_vm6 = vcmp.eq.s32.totalorder %v3711_v37, 1 }
0x10e7   :  { %v1433_v22 = vsub.f32 1.0, %v1432_v10  ;;  %v2972_v10 = vld [vmem:[#allocation11 + $0x30] sm:$0xf] }
0x10e8   :  { %v1392_v54 = vmul.f32 %v3205_v9, %v1391_v14 }
0x10e9   :  { %v1434_v20 = vmul.f32 %v3207_v13, %v1433_v22  ;;  %v3056_v22 = vld [vmem:[#allocation11 + $0x34] sm:$0xf] }
0x10ea   :  { %v1393_v57 = vadd.f32 %v3205_v9, %v1392_v54  ;;  %v3057_v54 = vld [vmem:[#allocation11 + $0x34] sm:$0xf0] }
0x10eb   :  { %v1435_v40 = vadd.f32 %v3207_v13, %v1434_v20  ;;  %v2977_v20 = vor.u32 %v3056_v22, %v2974_v33 }
0x10ec   :  { %v1397_v23 = vsel %vm1396_vm4, %v3205_v9, %v1393_v57  ;;  %vm4578_vm4 = vmmov %vm4577_vm8  ;;  %v2973_v57 = vor.u32 %v3057_v54, %v2972_v10 }
0x10ed   :  { %v1402_v35 = vsel %vm1399_vm5, %v1401_v30, %v1397_v23  ;;  %v1439_v43 = vsel %vm1438_vm0, %v3207_v13, %v1435_v40  ;;  %vm4579_vm5 = vmmov %vm4578_vm4  ;;  %v1182_v13 = vsel %vm666_vm14, %v3988_v17, 0.0  ;;  %v3054_v23 = vld [vmem:[#allocation11 + $0x24] sm:$0xf]  ;;  %v2966_v30 = vld [vmem:[#allocation11 + $0x28] sm:$0xf0]  ;;  %v2965_v40 = vor.u32 %v3055_v50, %v2964_v19  ;;  %1564 = vmatpush.bf16.msra.mxu3 %v2977_v20 }
0x10ee   :  { %v1444_v39 = vsel %vm1441_vm1, %v1443_v45, %v1439_v43  ;;  %1550 = vmatpush.bf16.msra.mxu2 %v2973_v57  ;;  %v2956_v17 = vld [vmem:[#allocation11 + $0x10] sm:$0xf]  ;;  %v3052_v43 = vld [vmem:[#allocation11 + $0x14] sm:$0xf]  ;;  %v2958_v45 = vld [vmem:[#allocation11 + $0x18] sm:$0xf0] }
0x10ef   :  { %vm4581_vm7 = vmmov %vm4578_vm4  ;;  %vm4575_vm0 = vcmask 523264  }
0x10f2   :  { %1551 = vmatpush.bf16.msra.mxu2 %v2965_v40 }
0x1133   :  { %v1413_v24 = vpop.permute.xlu2 %1412 }
0x1134   :  { %v1415_v38 = vmul.f32 %v1413_v24, %v1402_v35  ;;  %v2969_v24 = vor.u32 %v3054_v23, %v2966_v30 }
0x1136   :  { %1417 = vrot.lane.b32.xlu0 %v1415_v38, %s3529_s5  ;;  %1565 = vmatpush.bf16.msra.mxu3 %v2969_v24 }
0x1139   :  { %v1454_v49 = vpop.permute.xlu1 %1453 }
0x113a   :  { %v1456_v61 = vmul.f32 %v1454_v49, %v1444_v39  ;;  %v2961_v49 = vor.u32 %v3052_v43, %v2958_v45 }
0x113b   :  { %v1408_v3 = vpop.permute.xlu2 %1407 }
0x113c   :  { %1458 = vrot.lane.b32.xlu2 %v1456_v61, %s3529_s5  ;;  %v1410_v8 = vmul.f32 %v1408_v3, %v1402_v35  ;;  %v2948_v61 = vld [vmem:[#allocation11] sm:$0xf]  ;;  %1566 = vmatpush.bf16.msra.mxu3 %v2961_v49 }
0x1141   :  { %v1449_v48 = vpop.permute.xlu1 %1448 }
0x1142   :  { %v1451_v18 = vmul.f32 %v1449_v48, %v1444_v39  ;;  %v2950_v48 = vld [vmem:[#allocation11 + $0x8] sm:$0xf0] }
0x1144   :  { %359 = vrot.lane.b32.xlu2 %v3723_v42, %s3529_s5 }
0x114c   :  { %858 = vrot.lane.b32.xlu2 %v856_v53, %s3526_s27  ;;  %v3051_v53 = vld [vmem:[#allocation11 + $0x4] sm:$0xf0] }
0x114d   :  { %v2949_v3 = vor.u32 %v3051_v53, %v2948_v61 }
0x1154   :  { %1018 = vrot.lane.b32.xlu2 %v1016_v29, %s3529_s5  ;;  %v3050_v29 = vld [vmem:[#allocation11 + $0x4] sm:$0xf] }
0x1196   :  { %v1459_v31 = vpop.permute.xlu2 %1458 }
0x1197   :  { %v1461_v55 = vadd.f32 %v1459_v31, %v1451_v18  ;;  %v2982_v18 = vld [vmem:[#allocation13] sm:$0xf]  ;;  %v3059_v31 = vld [vmem:[#allocation13 + $0x4] sm:$0xf0] }
0x1199   :  { %3208 = vtanh.f32 %v1461_v55  ;;  %v2953_v55 = vor.u32 %v3050_v29, %v2950_v48 }
0x119b   :  { %1567 = vmatpush.bf16.msra.mxu3 %v2953_v55 }
0x119e   :  { %v360_v42 = vpop.permute.xlu2 %359 }
0x119f   :  { %v3209_v56 = vpop.eup %3208  ;;  %363 = vst.msk [vmem:[#allocation2 + $0xe] sm:$0x3] %vm4576_vm13, %v360_v42  ;;  %v4117_v42 = vor.u32 %v3059_v31, %v2982_v18 }
0x11a0   :  { %1464 = vrot.lane.b32.xlu1 %v3209_v56, %s3526_s27  ;;  %v3060_v56 = vld [vmem:[#allocation13 + $0x14] sm:$0xf] }
0x11a6   :  { %v859_v62 = vpop.permute.xlu2 %858 }
0x11a7   :  { %861 = vst.msk [vmem:[#allocation2 + $0x8] sm:$0x3] %vm4576_vm13, %v859_v62  ;;  %v2992_v62 = vld [vmem:[#allocation13 + $0x18] sm:$0xf0] }
0x11a8   :  { %v1418_v4 = vpop.permute.xlu0 %1417  ;;  %700 = vrot.lane.b32.xlu1 %v698_v44, %s3529_s5  ;;  %v4123_v44 = vor.u32 %v3060_v56, %v2992_v62 }
0x11a9   :  { %v1420_v58 = vadd.f32 %v1418_v4, %v1410_v8  ;;  %v3058_v8 = vld [vmem:[#allocation13 + $0x4] sm:$0xf]  ;;  %v2988_v4 = vld [vmem:[#allocation13 + $0x8] sm:$0xf0] }
0x11aa   :  { %1614 = vmatpush.bf16.msrb.mxu1 %v4123_v44  ;;  %1757 = vmatpush.bf16.msrb.mxu3 %v4123_v44 }
0x11ab   :  { %3210 = vtanh.f32 %v1420_v58  ;;  %v4126_v58 = vor.u32 %v3058_v8, %v2988_v4 }
0x11ae   :  { %v1019_v60 = vpop.permute.xlu2 %1018  ;;  %1615 = vmatpush.bf16.msrb.mxu1 %v4126_v58  ;;  %1758 = vmatpush.bf16.msrb.mxu3 %v4126_v58 }
0x11af   :  { %1021 = vst.msk [vmem:[#allocation2 + $0x6] sm:$0x3] %vm4576_vm13, %v1019_v60 }
0x11b0   :  { %1012 = vrot.lane.b32.xlu1 %v1010_v26, %s3529_s5 }
0x11b1   :  { %v3211_v52 = vpop.eup %3210  ;;  %1616 = vmatmul.bf16.vlgmr.msrb.gmra.mxu1 %v3528_v0 }
0x11b2   :  { %1423 = vrot.lane.b32.xlu0 %v3211_v52, %s3526_s27  ;;  %1916 = vmatpush.bf16.msra.mxu1 %v4123_v44 }
0x11b6   :  { %1917 = vmatpush.bf16.msra.mxu1 %v4126_v58 }
0x11b8   :  { %1342 = vrot.lane.b32.xlu1 %v1340_v51, %s3529_s5 }
0x11ba   :  { %532 = vrot.lane.b32.xlu0 %v530_v21, %s3529_s5  ;;  %2222 = vmatpush.bf16.msrb.mxu1 %v4123_v44 }
0x11be   :  { %2223 = vmatpush.bf16.msrb.mxu1 %v4126_v58 }
0x1212   :  { %v1465_v32 = vpop.permute.xlu1 %1464 }
0x1213   :  { %v1467_v7 = vmul.f32 %v1465_v32, %v1444_v39  ;;  %v4114_v39 = vor.u32 %v3061_v41, %v2986_v36 }
0x1215   :  { %v1475_v25 = vsel %vm332_vm11, %v1467_v7, 0.0  ;;  %1592 = vmatpush.bf16.msrb.mxu0 %v4114_v39 }
0x1216   :  { %1477 = vrot.lane.b32.xlu2 %v1475_v25, %s3526_s27 }
0x1219   :  { %1593 = vmatpush.bf16.msrb.mxu0 %v4117_v42 }
0x121a   :  { %v701_v15 = vpop.permute.xlu1 %700 }
0x121b   :  { %703 = vst.msk [vmem:[#allocation2 + $0xa] sm:$0x3] %vm4576_vm13, %v701_v15 }
0x121c   :  { %1181 = vst.msk [vmem:[#allocation2 + $0xa] sm:$0x3] %vm4577_vm8, %v1180_v46  ;;  %1594 = vmatmul.bf16.vlgmr.msrb.gmra.mxu0 %v3528_v0  ;;  %v4153_v46 = vld [vmem:[%s4569_s8] sm:$0x3] }
0x121d   :  { %1895 = vmatpush.bf16.msra.mxu0 %v4114_v39 }
0x1221   :  { %1896 = vmatpush.bf16.msra.mxu0 %v4117_v42 }
0x1222   :  { %v1013_v34 = vpop.permute.xlu1 %1012 }
0x1223   :  { %1015 = vst.msk [vmem:[#allocation2 + $0x8] sm:$0x3] %vm4578_vm4, %v1013_v34  ;;  %v1498_v34 = vperm.slane %v4153_v46, 0 }
0x1224   :  { %v1424_v2 = vpop.permute.xlu0 %1423 }
0x1225   :  { %v1426_v16 = vmul.f32 %v1424_v2, %v1402_v35  ;;  %v3053_v35 = vld [vmem:[#allocation11 + $0x14] sm:$0xf0]  ;;  %2201 = vmatpush.bf16.msrb.mxu0 %v4114_v39  ;;  %v1499_v2 = vperm.slane %v4153_v46, 1 }
0x1226   :  { %v2957_v38 = vor.u32 %v3053_v35, %v2956_v17 }
0x1227   :  { %v1469_v6 = vrot.slane %v1426_v16, 6 }
0x1228   :  { %1552 = vmatpush.bf16.msra.mxu2 %v2957_v38 }
0x1229   :  { %1470 = vrot.lane.b32.xlu0 %v1469_v6, %s3529_s5  ;;  %2202 = vmatpush.bf16.msrb.mxu0 %v4117_v42 }
0x122a   :  { %v1343_v9 = vpop.permute.xlu1 %1342 }
0x122b   :  { %1345 = vst.msk [vmem:[#allocation2 + $0x2] sm:$0x3] %vm4576_vm13, %v1343_v9 }
0x122c   :  { %v533_v11 = vpop.permute.xlu0 %532  ;;  %1553 = vmatpush.bf16.msra.mxu2 %v2949_v3 }
0x122d   :  { %535 = vst.msk [vmem:[#allocation2 + $0xc] sm:$0x3] %vm4576_vm13, %v533_v11 }
0x122e   :  { %1339 = vst.msk [vmem:[#allocation2 + $0xc] sm:$0x3] %vm4579_vm5, %v1338_v63  ;;  %v1617_v25 = vpop.f32.mrf.mxu1 }
0x1230   :  { %1736 = vmatpush.bf16.msrb.mxu2 %v4114_v39 }
0x1231   :  { %1184 = vrot.lane.b32.xlu0 %v1182_v13, %s3529_s5  ;;  %v1622_v13 = vrot.slane %v1617_v25, 2 }
0x1234   :  { %1737 = vmatpush.bf16.msrb.mxu2 %v4117_v42 }
0x1236   :  { %v1619_v15 = vpop.f32.mrf.mxu1 }
0x1270   :  { %v1478_v14 = vpop.permute.xlu2 %1477 }
0x1271   :  { %1480 = vst.msk [vmem:[#allocation2] sm:$0x3] %vm4576_vm13, %v1478_v14 }
0x1299   :  { %v1595_v0 = vpop.f32.mrf.mxu0 }
0x129b   :  { %v1471_v60 = vpop.permute.xlu0 %1470 }
0x129c   :  { %v1473_v26 = vsel %vm4580_vm6, %v1471_v60, 0.0 }
0x129d   :  { %1474 = vst.msk [vmem:[#allocation2 + $0xe] sm:$0x3] %vm4581_vm7, %v1473_v26 }
0x12a1   :  { %v1597_v7 = vpop.f32.mrf.mxu0 }
0x12a3   :  { %v1185_v52 = vpop.permute.xlu0 %1184 }
0x12a4   :  { %1187 = vst.msk [vmem:[#allocation2 + $0x4] sm:$0x3] %vm4576_vm13, %v1185_v52  ;;  %v1482_v21 = vld [vmem:[#allocation2 + $0x8] sm:$0xff] }
0x12ab   :  { %v1481_v51 = vld [vmem:[#allocation2] sm:$0xff] }
0x12ac   :  { %v1496_v32 = vpack.c.bf16 %v1482_v21, %v1481_v51 }
0x12ae   :  { %2978 = vmatmul.msk.bf16.vlgmr.msra.gmra.mxu2 %vm4575_vm0, %v1496_v32  ;;  %2979 = vmatmul.msk.bf16.vlgmr.msra.gmra.mxu3 %vm4575_vm0, %v1496_v32 }
0x12af   :  { %2053 = vmatpush.bf16.msra.mxu2 %v4114_v39  ;;  %2074 = vmatpush.bf16.msra.mxu3 %v4123_v44 }
0x12b3   :  { %2054 = vmatpush.bf16.msra.mxu2 %v4117_v42  ;;  %2075 = vmatpush.bf16.msra.mxu3 %v4126_v58 }
0x1331   :  { %v1555_v16 = vpop.f32.mrf.mxu2  ;;  %v1569_v6 = vpop.f32.mrf.mxu3 }
0x1332   :  { %v4159_v9 = vadd.f32 %v1555_v16, %v1498_v34  ;;  %v4161_v11 = vadd.f32 %v1569_v6, %v1499_v2 }
0x1334   :  { %v1599_v63 = vadd.f32 %v1595_v0, %v4159_v9 }
0x1336   :  { %3212 = vtanh.f32 %v1599_v63  ;;  %v2996_v33 = vmul.f32 -1.442695, %v1599_v63 }
0x1339   :  { %v1571_v14 = vpop.f32.mrf.mxu3 }
0x133a   :  { %v4164_v10 = vadd.f32 %v1571_v14, %v1499_v2 }
0x133c   :  { %v3213_v54 = vpop.eup %3212  ;;  %v1624_v22 = vadd.f32 %v1622_v13, %v4164_v10 }
0x133d   :  { %1647 = vrot.lane.b32.xlu0 %v3213_v54, %s3526_s27 }
0x133e   :  { %3214 = vtanh.f32 %v1624_v22  ;;  %v2997_v19 = vmul.f32 -1.442695, %v1624_v22 }
0x133f   :  { %3216 = vpow2.f32 %v2996_v33 }
0x1340   :  { %3218 = vpow2.f32 %v2997_v19 }
0x1344   :  { %v3215_v57 = vpop.eup %3214 }
0x1345   :  { %1684 = vrot.lane.b32.xlu1 %v3215_v57, %s3526_s27  ;;  %v3217_v50 = vpop.eup %3216 }
0x1346   :  { %v1628_v20 = vadd.f32 1.0, %v3217_v50  ;;  %v3219_v23 = vpop.eup %3218 }
0x1347   :  { %v1665_v30 = vadd.f32 1.0, %v3219_v23 }
0x1348   :  { %3220 = vrcp.f32 %v1628_v20  ;;  %v1640_v45 = vand.u32 2147483648, %v1628_v20  ;;  %vm1634_vm8 = vweird.f32 %v1628_v20  ;;  %v1638_v49 = vand.u32 2147483647, %v1628_v20 }
0x1349   :  { %3222 = vrcp.f32 %v1665_v30  ;;  %v1677_v55 = vand.u32 2147483648, %v1665_v30  ;;  %vm1671_vm7 = vweird.f32 %v1665_v30  ;;  %v1675_v56 = vand.u32 2147483647, %v1665_v30 }
0x134a   :  { %v1641_v29 = vor.u32 1.1754944e-38, %v1640_v45  ;;  %vm1639_vm5 = vcmp.eq.f32.partialorder %v1638_v49, 8.507059e+37 }
0x134b   :  { %v1678_v8 = vor.u32 1.1754944e-38, %v1677_v55  ;;  %vm1676_vm13 = vcmp.eq.f32.partialorder %v1675_v56, 8.507059e+37 }
0x134e   :  { %v3221_v40 = vpop.eup %3220 }
0x134f   :  { %v1630_v24 = vmul.f32 %v3221_v40, %v1628_v20  ;;  %v3223_v35 = vpop.eup %3222  ;;  %vm1635_vm1 = vweird.f32 %v3221_v40 }
0x1350   :  { %v1667_v38 = vmul.f32 %v3223_v35, %v1665_v30  ;;  %vm1636_vm4 = vmor %vm1634_vm8, %vm1635_vm1  ;;  %vm1672_vm6 = vweird.f32 %v3223_v35 }
0x1351   :  { %v1631_v17 = vsub.f32 1.0, %v1630_v24  ;;  %vm1673_vm0 = vmor %vm1671_vm7, %vm1672_vm6 }
0x1352   :  { %v1668_v43 = vsub.f32 1.0, %v1667_v38 }
0x1353   :  { %v1632_v36 = vmul.f32 %v3221_v40, %v1631_v17 }
0x1354   :  { %v1669_v53 = vmul.f32 %v3223_v35, %v1668_v43 }
0x1355   :  { %v1633_v41 = vadd.f32 %v3221_v40, %v1632_v36 }
0x1356   :  { %v1670_v31 = vadd.f32 %v3223_v35, %v1669_v53 }
0x1357   :  { %v1637_v61 = vsel %vm1636_vm4, %v3221_v40, %v1633_v41  ;;  %v4203_v40 = vpop.f32.mrf.mxu2 }
0x1358   :  { %v1642_v48 = vsel %vm1639_vm5, %v1641_v29, %v1637_v61  ;;  %v1674_v62 = vsel %vm1673_vm0, %v3223_v35, %v1670_v31 }
0x1359   :  { %v1679_v60 = vsel %vm1676_vm13, %v1678_v8, %v1674_v62  ;;  %v1645_v52 = vmul.f32 0.0, %v1642_v48  ;;  %vm4582_vm13 = vcmp.eq.s32.totalorder %v3711_v37, 1 }
0x135a   :  { %v1682_v0 = vmul.f32 0.0, %v1679_v60  ;;  %vm4583_vm0 = vmmov %vm4582_vm13 }
0x13af   :  { %v1648_v3 = vpop.permute.xlu0 %1647 }
0x13b0   :  { %v1650_v18 = vmul.f32 %v1648_v3, %v1642_v48 }
0x13b2   :  { %1652 = vrot.lane.b32.xlu2 %v1650_v18, %s3529_s5 }
0x13b7   :  { %v1685_v4 = vpop.permute.xlu1 %1684 }
0x13b8   :  { %v1687_v26 = vmul.f32 %v1685_v4, %v1679_v60 }
0x13ba   :  { %1689 = vrot.lane.b32.xlu0 %v1687_v26, %s3529_s5 }
0x140c   :  { %v1653_v51 = vpop.permute.xlu2 %1652 }
0x140d   :  { %v4171_v21 = vadd.f32 %v1653_v51, %v1645_v52 }
0x140f   :  { %3224 = vtanh.f32 %v4171_v21 }
0x1415   :  { %v3225_v32 = vpop.eup %3224 }
0x1416   :  { %1658 = vrot.lane.b32.xlu1 %v3225_v32, %s3526_s27 }
0x142c   :  { %v1690_v7 = vpop.permute.xlu0 %1689 }
0x142d   :  { %v1692_v25 = vadd.f32 %v1690_v7, %v1682_v0 }
0x142f   :  { %3226 = vtanh.f32 %v1692_v25  ;;  %v1708_v22 = vrot.slane %v1692_v25, 6 }
0x1435   :  { %v3227_v15 = vpop.eup %3226 }
0x1436   :  { %1695 = vrot.lane.b32.xlu2 %v3227_v15, %s3526_s27 }
0x1488   :  { %v1659_v2 = vpop.permute.xlu1 %1658 }
0x1489   :  { %v1661_v16 = vmul.f32 %v1659_v2, %v1642_v48 }
0x148b   :  { %v4178_v6 = vsel %vm332_vm11, %v1661_v16, 0.0 }
0x148c   :  { %v1723_v63 = vpack.c.bf16 %v4178_v6, %v4178_v6 }
0x148e   :  { %1725 = vrot.lane.b32.xlu0 %v1723_v63, %s3529_s5 }
0x1490   :  { %v1696_v13 = vpop.permute.xlu2 %1695 }
0x1491   :  { %v1698_v14 = vmul.f32 %v1696_v13, %v1679_v60 }
0x1493   :  { %v1702_v54 = vrot.slane %v1698_v14, 6 }
0x1495   :  { %1703 = vrot.lane.b32.xlu1 %v1702_v54, %s3529_s5 }
0x1496   :  { %1709 = vrot.lane.b32.xlu0 %v1708_v22, %s3530_s1 }
0x1500   :  { %v1726_v57 = vpop.permute.xlu0 %1725 }
0x1501   :  { %2998 = vmatmul.msk.bf16.vlgmr.msrb.gmra.mxu2 %vm211_vm12, %v1726_v57 }
0x1502   :  { %2364 = vmatpush.bf16.msrb.mxu2 %v4114_v39 }
0x1506   :  { %2365 = vmatpush.bf16.msrb.mxu2 %v4117_v42 }
0x1507   :  { %v1704_v33 = vpop.permute.xlu1 %1703 }
0x1508   :  { %v4190_v19 = vsel %vm4582_vm13, %v1704_v33, 0.0  ;;  %v1710_v50 = vpop.permute.xlu0 %1709 }
0x1509   :  { %v1747_v20 = vpack.c.bf16 %v4190_v19, %v4190_v19  ;;  %v4196_v23 = vsel %vm4583_vm0, %v1710_v50, 0.0 }
0x150a   :  { %v1829_v30 = vrot.slane %v4196_v23, 4 }
0x150b   :  { %2999 = vmatmul.msk.bf16.vlgmr.msrb.gmra.mxu3 %vm211_vm12, %v1747_v20  ;;  %v1700_v20 = vsel %vm332_vm11, %v4171_v21, 0.0 }
0x150c   :  { %1830 = vrot.lane.b32.xlu0 %v1829_v30, %s3529_s5  ;;  %2385 = vmatpush.bf16.msrb.mxu3 %v4123_v44  ;;  %v1789_v30 = vrot.slane %v1700_v20, 6 }
0x1510   :  { %2386 = vmatpush.bf16.msrb.mxu3 %v4126_v58 }
0x1584   :  { %v1739_v24 = vpop.f32.mrf.mxu2 }
0x1585   :  { %v1744_v17 = vrot.slane %v1739_v24, 6 }
0x1587   :  { %v1746_v35 = vadd.f32 %v1744_v17, %v4159_v9 }
0x1589   :  { %3228 = vtanh.f32 %v1746_v35  ;;  %v3000_v53 = vmul.f32 -1.442695, %v1746_v35 }
0x158c   :  { %v1741_v36 = vpop.f32.mrf.mxu2 }
0x158e   :  { %v1760_v38 = vpop.f32.mrf.mxu3 }
0x158f   :  { %v3229_v41 = vpop.eup %3228  ;;  %v1765_v43 = vrot.slane %v1760_v38, 4 }
0x1590   :  { %1793 = vrot.lane.b32.xlu2 %v3229_v41, %s3526_s27  ;;  %v1831_v41 = vpop.permute.xlu0 %1830 }
0x1591   :  { %v1767_v45 = vadd.f32 %v1765_v43, %v4164_v10 }
0x1593   :  { %3230 = vtanh.f32 %v1767_v45  ;;  %v3001_v55 = vmul.f32 -1.442695, %v1767_v45 }
0x1594   :  { %3232 = vpow2.f32 %v3000_v53 }
0x1596   :  { %v1762_v49 = vpop.f32.mrf.mxu3 }
0x1599   :  { %v3231_v61 = vpop.eup %3230 }
0x159a   :  { %1835 = vrot.lane.b32.xlu1 %v3231_v61, %s3526_s27  ;;  %v3233_v29 = vpop.eup %3232 }
0x159b   :  { %v1771_v3 = vadd.f32 1.0, %v3233_v29 }
0x159d   :  { %3234 = vrcp.f32 %v1771_v3  ;;  %v1783_v8 = vand.u32 2147483648, %v1771_v3  ;;  %vm1777_vm8 = vweird.f32 %v1771_v3  ;;  %v1781_v4 = vand.u32 2147483647, %v1771_v3 }
0x159e   :  { %3236 = vpow2.f32 %v3001_v55 }
0x159f   :  { %v1784_v26 = vor.u32 1.1754944e-38, %v1783_v8  ;;  %vm1782_vm5 = vcmp.eq.f32.partialorder %v1781_v4, 8.507059e+37 }
0x15a3   :  { %v3235_v48 = vpop.eup %3234 }
0x15a4   :  { %v1773_v18 = vmul.f32 %v3235_v48, %v1771_v3  ;;  %vm1778_vm1 = vweird.f32 %v3235_v48  ;;  %v3237_v52 = vpop.eup %3236 }
0x15a5   :  { %vm1779_vm4 = vmor %vm1777_vm8, %vm1778_vm1  ;;  %v1811_v7 = vadd.f32 1.0, %v3237_v52  ;;  %vm4584_vm1 = vcmask 254976  }
0x15a6   :  { %v1774_v31 = vsub.f32 1.0, %v1773_v18  ;;  %vm4585_vm8 = vmmov %vm4584_vm1 }
0x15a7   :  { %3238 = vrcp.f32 %v1811_v7  ;;  %v1823_v13 = vand.u32 2147483648, %v1811_v7  ;;  %vm1817_vm7 = vweird.f32 %v1811_v7  ;;  %v1821_v14 = vand.u32 2147483647, %v1811_v7 }
0x15a8   :  { %v1775_v56 = vmul.f32 %v3235_v48, %v1774_v31 }
0x15a9   :  { %v1824_v22 = vor.u32 1.1754944e-38, %v1823_v13  ;;  %vm1822_vm0 = vcmp.eq.f32.partialorder %v1821_v14, 8.507059e+37 }
0x15aa   :  { %v1776_v62 = vadd.f32 %v3235_v48, %v1775_v56 }
0x15ac   :  { %v1780_v60 = vsel %vm1779_vm4, %v3235_v48, %v1776_v62 }
0x15ad   :  { %v1785_v51 = vsel %vm1782_vm5, %v1784_v26, %v1780_v60  ;;  %v3239_v25 = vpop.eup %3238 }
0x15ae   :  { %v1813_v15 = vmul.f32 %v3239_v25, %v1811_v7  ;;  %vm1818_vm6 = vweird.f32 %v3239_v25  ;;  %v1791_v24 = vmul.f32 %v1789_v30, %v1785_v51 }
0x15af   :  { %vm1819_vm13 = vmor %vm1817_vm7, %vm1818_vm6 }
0x15b0   :  { %v1814_v2 = vsub.f32 1.0, %v1813_v15 }
0x15b2   :  { %v1815_v16 = vmul.f32 %v3239_v25, %v1814_v2 }
0x15b4   :  { %v1816_v63 = vadd.f32 %v3239_v25, %v1815_v16 }
0x15b6   :  { %v1820_v54 = vsel %vm1819_vm13, %v3239_v25, %v1816_v63 }
0x15b7   :  { %v1825_v33 = vsel %vm1822_vm0, %v1824_v22, %v1820_v54 }
0x15b8   :  { %v1833_v43 = vmul.f32 %v1831_v41, %v1825_v33 }
0x15ea   :  { %v1794_v32 = vpop.permute.xlu2 %1793 }
0x15eb   :  { %v1796_v0 = vmul.f32 %v1794_v32, %v1785_v51 }
0x15ed   :  { %1798 = vrot.lane.b32.xlu2 %v1796_v0, %s3529_s5 }
0x160c   :  { %v1836_v57 = vpop.permute.xlu1 %1835 }
0x160d   :  { %v1838_v50 = vmul.f32 %v1836_v57, %v1825_v33 }
0x160f   :  { %1840 = vrot.lane.b32.xlu1 %v1838_v50, %s3529_s5 }
0x1617   :  { %1714 = vrot.lane.b32.xlu1 %v4178_v6, %s3529_s5 }
0x1647   :  { %v1799_v17 = vpop.permute.xlu2 %1798 }
0x1648   :  { %v1801_v35 = vadd.f32 %v1799_v17, %v1791_v24 }
0x164a   :  { %3240 = vtanh.f32 %v1801_v35  ;;  %v1857_v36 = vrot.slane %v1801_v35, 2 }
0x164c   :  { %1858 = vrot.lane.b32.xlu1 %v1857_v36, %s3530_s1 }
0x1650   :  { %v3241_v38 = vpop.eup %3240 }
0x1651   :  { %1804 = vrot.lane.b32.xlu2 %v3241_v38, %s3526_s27 }
0x1681   :  { %v1841_v45 = vpop.permute.xlu1 %1840 }
0x1682   :  { %v1843_v49 = vadd.f32 %v1841_v45, %v1833_v43 }
0x1684   :  { %3242 = vtanh.f32 %v1843_v49  ;;  %v1872_v6 = vrot.slane %v1843_v49, 4 }
0x1686   :  { %1873 = vrot.lane.b32.xlu1 %v1872_v6, %s3530_s1 }
0x1689   :  { %v1715_v21 = vpop.permute.xlu1 %1714 }
0x168a   :  { %v3243_v61 = vpop.eup %3242  ;;  %1717 = vst.msk [vmem:[#allocation2] sm:$0x3] %vm4584_vm1, %v1715_v21 }
0x168b   :  { %1846 = vrot.lane.b32.xlu0 %v3243_v61, %s3526_s27 }
0x16ab   :  { %v1805_v53 = vpop.permute.xlu2 %1804 }
0x16ac   :  { %v1807_v29 = vmul.f32 %v1805_v53, %v1785_v51 }
0x16ae   :  { %v1851_v3 = vrot.slane %v1807_v29, 2 }
0x16b0   :  { %1852 = vrot.lane.b32.xlu2 %v1851_v3, %s3529_s5 }
0x16b8   :  { %1861 = vrot.lane.b32.xlu2 %v1700_v20, %s3530_s1 }
0x16be   :  { %v1859_v15 = vpop.permute.xlu1 %1858 }
0x16f8   :  { %v1874_v35 = vpop.permute.xlu1 %1873 }
0x16f9   :  { %v4262_v41 = vsel %vm515_vm10, %v1874_v35, %v4196_v23 }
0x16fa   :  { %v1990_v49 = vrot.slane %v4262_v41, 6 }
0x16fd   :  { %v1847_v48 = vpop.permute.xlu0 %1846 }
0x16fe   :  { %v1849_v18 = vmul.f32 %v1847_v48, %v1825_v33 }
0x1700   :  { %v1866_v31 = vrot.slane %v1849_v18, 4 }
0x1702   :  { %1867 = vrot.lane.b32.xlu0 %v1866_v31, %s3529_s5 }
0x170a   :  { %v1853_v55 = vpop.permute.xlu2 %1852 }
0x170b   :  { %v4226_v56 = vsel %vm495_vm9, %v1853_v55, %v1715_v21  ;;  %v1877_v62 = vsel %vm495_vm9, %v1853_v55, 0.0 }
0x170c   :  { %1878 = vst.msk [vmem:[#allocation2 + $0x2] sm:$0x3] %vm4585_vm8, %v1877_v62  ;;  %v1885_v8 = vpack.c.bf16 %v4226_v56, %v4226_v56 }
0x170e   :  { %3002 = vmatmul.msk.bf16.vlgmr.msra.gmra.mxu0 %vm211_vm12, %v1885_v8 }
0x170f   :  { %2527 = vmatpush.bf16.msra.mxu0 %v4114_v39 }
0x1712   :  { %v1862_v25 = vpop.permute.xlu2 %1861 }
0x1713   :  { %2528 = vmatpush.bf16.msra.mxu0 %v4117_v42  ;;  %v4253_v2 = vsel %vm495_vm9, %v1859_v15, %v1862_v25 }
0x1714   :  { %v1948_v16 = vrot.slane %v4253_v2, 4 }
0x1774   :  { %v4236_v4 = vpop.permute.xlu0 %1867 }
0x1775   :  { %v4242_v60 = vsel %vm515_vm10, %v4236_v4, %v4190_v19 }
0x1776   :  { %v1906_v26 = vpack.c.bf16 %v4242_v60, %v4242_v60 }
0x1778   :  { %3003 = vmatmul.msk.bf16.vlgmr.msra.gmra.mxu1 %vm211_vm12, %v1906_v26 }
0x1779   :  { %2548 = vmatpush.bf16.msra.mxu1 %v4123_v44 }
0x177d   :  { %2549 = vmatpush.bf16.msra.mxu1 %v4126_v58 }
0x178b   :  { %v1898_v52 = vpop.f32.mrf.mxu0 }
0x178c   :  { %v1903_v51 = vrot.slane %v1898_v52, 4 }
0x178e   :  { %v1905_v32 = vadd.f32 %v1903_v51, %v4159_v9 }
0x1790   :  { %3244 = vtanh.f32 %v1905_v32  ;;  %v3004_v63 = vmul.f32 -1.442695, %v1905_v32 }
0x1792   :  { %3246 = vpow2.f32 %v3004_v63 }
0x1793   :  { %v1900_v0 = vpop.f32.mrf.mxu0 }
0x1796   :  { %v3245_v7 = vpop.eup %3244 }
0x1797   :  { %1954 = vrot.lane.b32.xlu0 %v3245_v7, %s3526_s27 }
0x1798   :  { %v3247_v13 = vpop.eup %3246 }
0x1799   :  { %v1930_v14 = vadd.f32 1.0, %v3247_v13 }
0x179b   :  { %3248 = vrcp.f32 %v1930_v14  ;;  %v1942_v38 = vand.u32 2147483648, %v1930_v14  ;;  %vm1936_vm5 = vweird.f32 %v1930_v14  ;;  %v1940_v43 = vand.u32 2147483647, %v1930_v14 }
0x179d   :  { %v1943_v6 = vor.u32 1.1754944e-38, %v1942_v38  ;;  %vm1941_vm7 = vcmp.eq.f32.partialorder %v1940_v43, 8.507059e+37 }
0x179f   :  { %1949 = vrot.lane.b32.xlu0 %v1948_v16, %s3529_s5 }
0x17a1   :  { %v3249_v54 = vpop.eup %3248 }
0x17a2   :  { %v1932_v33 = vmul.f32 %v3249_v54, %v1930_v14  ;;  %vm1937_vm4 = vweird.f32 %v3249_v54 }
0x17a3   :  { %vm1938_vm6 = vmor %vm1936_vm5, %vm1937_vm4  ;;  %vm4586_vm4 = vcmask 254976  }
0x17a4   :  { %v1933_v20 = vsub.f32 1.0, %v1932_v33 }
0x17a6   :  { %v1934_v24 = vmul.f32 %v3249_v54, %v1933_v20 }
0x17a8   :  { %v1935_v36 = vadd.f32 %v3249_v54, %v1934_v24 }
0x17aa   :  { %v1939_v45 = vsel %vm1938_vm6, %v3249_v54, %v1935_v36 }
0x17ab   :  { %v1944_v61 = vsel %vm1941_vm7, %v1943_v6, %v1939_v45 }
0x17f5   :  { %v1919_v22 = vpop.f32.mrf.mxu1 }
0x17f6   :  { %v1924_v57 = vrot.slane %v1919_v22, 6 }
0x17f8   :  { %v1926_v50 = vadd.f32 %v1924_v57, %v4164_v10 }
0x17fa   :  { %3250 = vtanh.f32 %v1926_v50  ;;  %v3005_v29 = vmul.f32 -1.442695, %v1926_v50 }
0x17fc   :  { %3252 = vpow2.f32 %v3005_v29 }
0x17fd   :  { %v1921_v30 = vpop.f32.mrf.mxu1 }
0x1800   :  { %v3251_v17 = vpop.eup %3250 }
0x1801   :  { %1996 = vrot.lane.b32.xlu2 %v3251_v17, %s3526_s27 }
0x1802   :  { %v3253_v3 = vpop.eup %3252 }
0x1803   :  { %v1972_v23 = vadd.f32 1.0, %v3253_v3 }
0x1805   :  { %3254 = vrcp.f32 %v1972_v23  ;;  %v1984_v8 = vand.u32 2147483648, %v1972_v23  ;;  %vm1978_vm0 = vweird.f32 %v1972_v23  ;;  %v1982_v26 = vand.u32 2147483647, %v1972_v23 }
0x1807   :  { %v1985_v51 = vor.u32 1.1754944e-38, %v1984_v8  ;;  %vm1983_vm8 = vcmp.eq.f32.partialorder %v1982_v26, 8.507059e+37 }
0x1809   :  { %1991 = vrot.lane.b32.xlu2 %v1990_v49, %s3529_s5  ;;  %v1955_v21 = vpop.permute.xlu0 %1954 }
0x180a   :  { %v1957_v53 = vmul.f32 %v1955_v21, %v1944_v61 }
0x180b   :  { %v3255_v48 = vpop.eup %3254 }
0x180c   :  { %1959 = vrot.lane.b32.xlu1 %v1957_v53, %s3529_s5  ;;  %v1974_v18 = vmul.f32 %v3255_v48, %v1972_v23  ;;  %vm1979_vm13 = vweird.f32 %v3255_v48 }
0x180d   :  { %vm1980_vm1 = vmor %vm1978_vm0, %vm1979_vm13 }
0x180e   :  { %v1975_v31 = vsub.f32 1.0, %v1974_v18 }
0x1810   :  { %v1976_v55 = vmul.f32 %v3255_v48, %v1975_v31 }
0x1811   :  { %v1950_v25 = vpop.permute.xlu0 %1949 }
0x1812   :  { %v1977_v62 = vadd.f32 %v3255_v48, %v1976_v55  ;;  %v1952_v15 = vmul.f32 %v1950_v25, %v1944_v61 }
0x1814   :  { %v1981_v52 = vsel %vm1980_vm1, %v3255_v48, %v1977_v62 }
0x1815   :  { %v1986_v32 = vsel %vm1983_vm8, %v1985_v51, %v1981_v52 }
0x185b   :  { %v1997_v0 = vpop.permute.xlu2 %1996 }
0x185c   :  { %v1999_v7 = vmul.f32 %v1997_v0, %v1986_v32 }
0x185e   :  { %2001 = vrot.lane.b32.xlu0 %v1999_v7, %s3529_s5 }
0x1863   :  { %v1992_v14 = vpop.permute.xlu2 %1991 }
0x1864   :  { %v1994_v54 = vmul.f32 %v1992_v14, %v1986_v32 }
0x187e   :  { %v1960_v16 = vpop.permute.xlu1 %1959 }
0x187f   :  { %v1962_v63 = vadd.f32 %v1960_v16, %v1952_v15 }
0x1881   :  { %3256 = vtanh.f32 %v1962_v63  ;;  %v2018_v50 = vrot.slane %v1962_v63, 4 }
0x1887   :  { %v3257_v13 = vpop.eup %3256 }
0x1888   :  { %1965 = vrot.lane.b32.xlu1 %v3257_v13, %s3526_s27 }
0x18d0   :  { %v2002_v22 = vpop.permute.xlu0 %2001 }
0x18d1   :  { %v2004_v57 = vadd.f32 %v2002_v22, %v1994_v54 }
0x18d3   :  { %3258 = vtanh.f32 %v2004_v57  ;;  %v2030_v38 = vrot.slane %v2004_v57, 2 }
0x18d9   :  { %v3259_v33 = vpop.eup %3258 }
0x18da   :  { %2007 = vrot.lane.b32.xlu2 %v3259_v33, %s3526_s27 }
0x18e2   :  { %2019 = vrot.lane.b32.xlu2 %v2018_v50, %s3530_s1 }
0x18fa   :  { %v1966_v20 = vpop.permute.xlu1 %1965 }
0x18fb   :  { %v1968_v30 = vmul.f32 %v1966_v20, %v1944_v61 }
0x18fd   :  { %v2012_v24 = vrot.slane %v1968_v30, 4 }
0x18ff   :  { %2013 = vrot.lane.b32.xlu0 %v2012_v24, %s3529_s5 }
0x1934   :  { %v2008_v17 = vpop.permute.xlu2 %2007 }
0x1935   :  { %v2010_v35 = vmul.f32 %v2008_v17, %v1986_v32 }
0x1937   :  { %v2024_v36 = vrot.slane %v2010_v35, 2 }
0x1939   :  { %2025 = vrot.lane.b32.xlu1 %v2024_v36, %s3529_s5 }
0x193c   :  { %v2020_v23 = vpop.permute.xlu2 %2019 }
0x1941   :  { %2031 = vrot.lane.b32.xlu1 %v2030_v38, %s3530_s1 }
0x1971   :  { %v2014_v43 = vpop.permute.xlu0 %2013 }
0x1972   :  { %v4277_v45 = vsel %vm666_vm14, %v2014_v43, %v4226_v56  ;;  %v2035_v49 = vsel %vm666_vm14, %v2014_v43, 0.0 }
0x1973   :  { %2036 = vst.msk [vmem:[#allocation2 + $0x4] sm:$0x3] %vm4586_vm4, %v2035_v49  ;;  %v2043_v6 = vpack.c.bf16 %v4277_v45, %v4277_v45 }
0x1975   :  { %3006 = vmatmul.msk.bf16.vlgmr.msra.gmra.mxu2 %vm211_vm12, %v2043_v6 }
0x1976   :  { %2685 = vmatpush.bf16.msra.mxu2 %v4114_v39 }
0x197a   :  { %2686 = vmatpush.bf16.msra.mxu2 %v4117_v42 }
0x19ab   :  { %v4287_v21 = vpop.permute.xlu1 %2025 }
0x19ac   :  { %v4293_v56 = vsel %vm683_vm15, %v4287_v21, %v4242_v60  ;;  %v4305_v60 = vsel %vm666_vm14, %v2020_v23, %v4253_v2  ;;  %v2037_v5 = vsel %vm683_vm15, %v4287_v21, 0.0 }
0x19ad   :  { %v2064_v61 = vpack.c.bf16 %v4293_v56, %v4293_v56  ;;  %v2103_v48 = vrot.slane %v4305_v60, 2 }
0x19af   :  { %3007 = vmatmul.msk.bf16.vlgmr.msra.gmra.mxu3 %vm211_vm12, %v2064_v61 }
0x19b0   :  { %2706 = vmatpush.bf16.msra.mxu3 %v4123_v44 }
0x19b3   :  { %v2032_v31 = vpop.permute.xlu1 %2031 }
0x19b4   :  { %2707 = vmatpush.bf16.msra.mxu3 %v4126_v58  ;;  %v2034_v55 = vsel %vm683_vm15, %v2032_v31, %v4262_v41 }
0x19f8   :  { %v2056_v39 = vpop.f32.mrf.mxu2 }
0x19f9   :  { %v2061_v53 = vrot.slane %v2056_v39, 2 }
0x19fb   :  { %v2063_v42 = vadd.f32 %v2061_v53, %v4159_v9 }
0x19fd   :  { %3260 = vtanh.f32 %v2063_v42  ;;  %v3008_v2 = vmul.f32 -1.442695, %v2063_v42 }
0x1a00   :  { %v2058_v29 = vpop.f32.mrf.mxu2 }
0x1a03   :  { %v3261_v3 = vpop.eup %3260 }
0x1a04   :  { %2109 = vrot.lane.b32.xlu0 %v3261_v3, %s3526_s27 }
0x1a0c   :  { %2104 = vrot.lane.b32.xlu0 %v2103_v48, %s3529_s5 }
0x1a32   :  { %v2077_v44 = vpop.f32.mrf.mxu3 }
0x1a33   :  { %v2081_v58 = vadd.f32 %v2077_v44, %v4164_v10 }
0x1a35   :  { %3262 = vtanh.f32 %v2081_v58  ;;  %v3009_v51 = vmul.f32 -1.442695, %v2081_v58 }
0x1a36   :  { %3264 = vpow2.f32 %v3008_v2 }
0x1a3a   :  { %v2079_v9 = vpop.f32.mrf.mxu3 }
0x1a3b   :  { %v3263_v18 = vpop.eup %3262 }
0x1a3c   :  { %2150 = vrot.lane.b32.xlu2 %v3263_v18, %s3526_s27  ;;  %v3265_v62 = vpop.eup %3264 }
0x1a3d   :  { %v2085_v8 = vadd.f32 1.0, %v3265_v62 }
0x1a3f   :  { %3266 = vrcp.f32 %v2085_v8  ;;  %v2097_v7 = vand.u32 2147483648, %v2085_v8  ;;  %vm2091_vm6 = vweird.f32 %v2085_v8  ;;  %v2095_v25 = vand.u32 2147483647, %v2085_v8 }
0x1a40   :  { %3268 = vpow2.f32 %v3009_v51 }
0x1a41   :  { %v2098_v16 = vor.u32 1.1754944e-38, %v2097_v7  ;;  %vm2096_vm13 = vcmp.eq.f32.partialorder %v2095_v25, 8.507059e+37 }
0x1a44   :  { %2145 = vrot.lane.b32.xlu2 %v2034_v55, %s3529_s5 }
0x1a45   :  { %v3267_v26 = vpop.eup %3266 }
0x1a46   :  { %v2087_v52 = vmul.f32 %v3267_v26, %v2085_v8  ;;  %vm2092_vm5 = vweird.f32 %v3267_v26  ;;  %v3269_v41 = vpop.eup %3268 }
0x1a47   :  { %vm2093_vm7 = vmor %vm2091_vm6, %vm2092_vm5  ;;  %v2127_v63 = vadd.f32 1.0, %v3269_v41  ;;  %vm4587_vm5 = vcmask 254976  }
0x1a48   :  { %v2088_v10 = vsub.f32 1.0, %v2087_v52 }
0x1a49   :  { %3270 = vrcp.f32 %v2127_v63  ;;  %v2139_v30 = vand.u32 2147483648, %v2127_v63  ;;  %vm2133_vm1 = vweird.f32 %v2127_v63  ;;  %v2137_v24 = vand.u32 2147483647, %v2127_v63 }
0x1a4a   :  { %v2089_v32 = vmul.f32 %v3267_v26, %v2088_v10 }
0x1a4b   :  { %v2140_v35 = vor.u32 1.1754944e-38, %v2139_v30  ;;  %vm2138_vm4 = vcmp.eq.f32.partialorder %v2137_v24, 8.507059e+37 }
0x1a4c   :  { %v2090_v0 = vadd.f32 %v3267_v26, %v2089_v32 }
0x1a4e   :  { %v2094_v15 = vsel %vm2093_vm7, %v3267_v26, %v2090_v0 }
0x1a4f   :  { %v2099_v14 = vsel %vm2096_vm13, %v2098_v16, %v2094_v15  ;;  %v3271_v22 = vpop.eup %3270 }
0x1a50   :  { %v2129_v57 = vmul.f32 %v3271_v22, %v2127_v63  ;;  %vm2134_vm0 = vweird.f32 %v3271_v22 }
0x1a51   :  { %vm2135_vm8 = vmor %vm2133_vm1, %vm2134_vm0 }
0x1a52   :  { %v2130_v33 = vsub.f32 1.0, %v2129_v57 }
0x1a54   :  { %v2131_v50 = vmul.f32 %v3271_v22, %v2130_v33 }
0x1a56   :  { %v2132_v20 = vadd.f32 %v3271_v22, %v2131_v50 }
0x1a58   :  { %v2136_v17 = vsel %vm2135_vm8, %v3271_v22, %v2132_v20 }
0x1a59   :  { %v2141_v36 = vsel %vm2138_vm4, %v2140_v35, %v2136_v17 }
0x1a76   :  { %v2110_v13 = vpop.permute.xlu0 %2109 }
0x1a77   :  { %v2112_v54 = vmul.f32 %v2110_v13, %v2099_v14 }
0x1a79   :  { %2114 = vrot.lane.b32.xlu1 %v2112_v54, %s3529_s5 }
0x1a7e   :  { %v2105_v49 = vpop.permute.xlu0 %2104 }
0x1a7f   :  { %v2107_v6 = vmul.f32 %v2105_v49, %v2099_v14 }
0x1a96   :  { %v2151_v38 = vpop.permute.xlu2 %2150 }
0x1a97   :  { %v2153_v43 = vmul.f32 %v2151_v38, %v2141_v36 }
0x1a99   :  { %2155 = vrot.lane.b32.xlu0 %v2153_v43, %s3529_s5 }
0x1a9e   :  { %v4321_v29 = vpop.permute.xlu2 %2145 }
0x1a9f   :  { %v2148_v3 = vmul.f32 %v4321_v29, %v2141_v36 }
0x1aa1   :  { %2178 = vrot.lane.b32.xlu0 %v4293_v56, %s3530_s1 }
0x1aeb   :  { %v2115_v61 = vpop.permute.xlu1 %2114 }
0x1aec   :  { %v2117_v39 = vadd.f32 %v2115_v61, %v2107_v6 }
0x1aee   :  { %3272 = vtanh.f32 %v2117_v39  ;;  %v2172_v53 = vrot.slane %v2117_v39, 6 }
0x1af0   :  { %2173 = vrot.lane.b32.xlu0 %v2172_v53, %s3530_s1 }
0x1af4   :  { %v3273_v42 = vpop.eup %3272 }
0x1af5   :  { %2120 = vrot.lane.b32.xlu1 %v3273_v42, %s3526_s27 }
0x1b0b   :  { %v2156_v23 = vpop.permute.xlu0 %2155 }
0x1b0c   :  { %v4324_v48 = vadd.f32 %v2156_v23, %v2148_v3 }
0x1b0e   :  { %3274 = vtanh.f32 %v4324_v48  ;;  %v2182_v42 = vsel %vm847_vm2, %v4324_v48, %v4321_v29 }
0x1b13   :  { %v2179_v44 = vpop.permute.xlu0 %2178 }
0x1b14   :  { %v3275_v56 = vpop.eup %3274 }
0x1b15   :  { %2161 = vrot.lane.b32.xlu2 %v3275_v56, %s3526_s27 }
0x1b62   :  { %v2174_v58 = vpop.permute.xlu0 %2173 }
0x1b63   :  { %v2176_v9 = vsel %vm830_vm3, %v2174_v58, %v4305_v60 }
0x1b64   :  { %2254 = vrot.lane.b32.xlu0 %v2176_v9, %s3529_s5 }
0x1b67   :  { %v2121_v18 = vpop.permute.xlu1 %2120 }
0x1b68   :  { %v2123_v31 = vmul.f32 %v2121_v18, %v2099_v14 }
0x1b6a   :  { %v2166_v55 = vrot.slane %v2123_v31, 6 }
0x1b6c   :  { %2167 = vrot.lane.b32.xlu1 %v2166_v55, %s3529_s5 }
0x1b6f   :  { %v2162_v2 = vpop.permute.xlu2 %2161 }
0x1b70   :  { %v4333_v62 = vmul.f32 %v2162_v2, %v2141_v36  ;;  %v2295_v2 = vrot.slane %v2182_v42, 2 }
0x1b72   :  { %v2181_v8 = vsel %vm847_vm2, %v4333_v62, %v2179_v44 }
0x1b73   :  { %v2209_v26 = vpack.c.bf16 %v2181_v8, %v2181_v8 }
0x1b75   :  { %2211 = vrot.lane.b32.xlu2 %v2209_v26, %s3529_s5 }
0x1bcf   :  { %v2212_v52 = vpop.permute.xlu2 %2211 }
0x1bd0   :  { %3011 = vmatmul.msk.bf16.vlgmr.msrb.gmra.mxu1 %vm211_vm12, %v2212_v52 }
0x1bd6   :  { %v4366_v52 = vpop.permute.xlu0 %2254 }
0x1bde   :  { %v2168_v60 = vpop.permute.xlu1 %2167 }
0x1bdf   :  { %v2170_v10 = vsel %vm830_vm3, %v2168_v60, %v4277_v45  ;;  %v2183_v51 = vsel %vm830_vm3, %v2168_v60, 0.0  ;;  %v4352_v45 = vadd.f32 %v4203_v40, %v1498_v34 }
0x1be0   :  { %2184 = vst.msk [vmem:[#allocation2 + $0x6] sm:$0x3] %vm4587_vm5, %v2183_v51  ;;  %v2191_v32 = vpack.c.bf16 %v2170_v10, %v2170_v10 }
0x1be2   :  { %3010 = vmatmul.msk.bf16.vlgmr.msrb.gmra.mxu0 %vm211_vm12, %v2191_v32 }
0x1c4d   :  { %v2225_v0 = vpop.f32.mrf.mxu1 }
0x1c4e   :  { %v2230_v7 = vrot.slane %v2225_v0, 2 }
0x1c50   :  { %v2232_v25 = vadd.f32 %v2230_v7, %v4161_v11 }
0x1c52   :  { %3276 = vtanh.f32 %v2232_v25  ;;  %v3013_v54 = vmul.f32 -1.442695, %v2232_v25 }
0x1c55   :  { %v2227_v41 = vpop.f32.mrf.mxu1 }
0x1c58   :  { %v3277_v15 = vpop.eup %3276 }
0x1c59   :  { %2299 = vrot.lane.b32.xlu2 %v3277_v15, %s3526_s27 }
0x1c5f   :  { %v2204_v16 = vpop.f32.mrf.mxu0 }
0x1c60   :  { %v2208_v63 = vadd.f32 %v2204_v16, %v4352_v45 }
0x1c62   :  { %3278 = vtanh.f32 %v2208_v63  ;;  %v3012_v40 = vmul.f32 -1.442695, %v2208_v63 }
0x1c63   :  { %3280 = vpow2.f32 %v3013_v54 }
0x1c67   :  { %v2206_v13 = vpop.f32.mrf.mxu0 }
0x1c68   :  { %v3279_v14 = vpop.eup %3278 }
0x1c69   :  { %2259 = vrot.lane.b32.xlu1 %v3279_v14, %s3526_s27  ;;  %v3281_v22 = vpop.eup %3280 }
0x1c6a   :  { %v2277_v57 = vadd.f32 1.0, %v3281_v22 }
0x1c6c   :  { %3282 = vrcp.f32 %v2277_v57  ;;  %v2289_v34 = vand.u32 2147483648, %v2277_v57  ;;  %vm2283_vm7 = vweird.f32 %v2277_v57  ;;  %v2287_v24 = vand.u32 2147483647, %v2277_v57 }
0x1c6d   :  { %3284 = vpow2.f32 %v3012_v40 }
0x1c6e   :  { %v2290_v35 = vor.u32 1.1754944e-38, %v2289_v34  ;;  %vm2288_vm0 = vcmp.eq.f32.partialorder %v2287_v24, 8.507059e+37 }
0x1c72   :  { %v3283_v33 = vpop.eup %3282 }
0x1c73   :  { %v2279_v50 = vmul.f32 %v3283_v33, %v2277_v57  ;;  %vm2284_vm6 = vweird.f32 %v3283_v33  ;;  %v3285_v49 = vpop.eup %3284 }
0x1c74   :  { %vm2285_vm13 = vmor %vm2283_vm7, %vm2284_vm6  ;;  %v2236_v6 = vadd.f32 1.0, %v3285_v49 }
0x1c75   :  { %v2280_v20 = vsub.f32 1.0, %v2279_v50 }
0x1c76   :  { %3286 = vrcp.f32 %v2236_v6  ;;  %v2248_v56 = vand.u32 2147483648, %v2236_v6  ;;  %vm2242_vm8 = vweird.f32 %v2236_v6  ;;  %v2246_v44 = vand.u32 2147483647, %v2236_v6 }
0x1c77   :  { %v2281_v46 = vmul.f32 %v3283_v33, %v2280_v20 }
0x1c78   :  { %v2249_v9 = vor.u32 1.1754944e-38, %v2248_v56  ;;  %vm2247_vm5 = vcmp.eq.f32.partialorder %v2246_v44, 8.507059e+37 }
0x1c79   :  { %v2282_v30 = vadd.f32 %v3283_v33, %v2281_v46 }
0x1c7b   :  { %v2286_v17 = vsel %vm2285_vm13, %v3283_v33, %v2282_v30 }
0x1c7c   :  { %v2291_v38 = vsel %vm2288_vm0, %v2290_v35, %v2286_v17  ;;  %v3287_v61 = vpop.eup %3286 }
0x1c7d   :  { %v2238_v39 = vmul.f32 %v3287_v61, %v2236_v6  ;;  %vm2243_vm1 = vweird.f32 %v3287_v61 }
0x1c7e   :  { %vm2244_vm4 = vmor %vm2242_vm8, %vm2243_vm1 }
0x1c7f   :  { %v2239_v53 = vsub.f32 1.0, %v2238_v39 }
0x1c81   :  { %v2240_v3 = vmul.f32 %v3287_v61, %v2239_v53 }
0x1c83   :  { %v2241_v23 = vadd.f32 %v3287_v61, %v2240_v3 }
0x1c85   :  { %v2245_v58 = vsel %vm2244_vm4, %v3287_v61, %v2241_v23 }
0x1c86   :  { %v2250_v31 = vsel %vm2247_vm5, %v2249_v9, %v2245_v58 }
0x1c87   :  { %v2257_v60 = vmul.f32 %v4366_v52, %v2250_v31 }
0x1cb3   :  { %v2300_v36 = vpop.permute.xlu2 %2299 }
0x1cb4   :  { %v2302_v43 = vmul.f32 %v2300_v36, %v2291_v38 }
0x1cb6   :  { %2304 = vrot.lane.b32.xlu2 %v2302_v43, %s3529_s5 }
0x1cbe   :  { %2315 = vrot.lane.b32.xlu2 %v2170_v10, %s3530_s1 }
0x1cc6   :  { %2326 = vrot.lane.b32.xlu2 %v2181_v8, %s3529_s5  ;;  %v2297_v8 = vmul.f32 %v2295_v2, %v2291_v38 }
0x1cce   :  { %2335 = vrot.lane.b32.xlu2 %v2182_v42, %s3530_s1 }
0x1cdb   :  { %v2260_v18 = vpop.permute.xlu1 %2259 }
0x1cdc   :  { %v2262_v55 = vmul.f32 %v2260_v18, %v2250_v31 }
0x1cde   :  { %2264 = vrot.lane.b32.xlu1 %v2262_v55, %s3529_s5 }
0x1d10   :  { %v2305_v29 = vpop.permute.xlu2 %2304 }
0x1d11   :  { %v2307_v48 = vadd.f32 %v2305_v29, %v2297_v8 }
0x1d13   :  { %3288 = vtanh.f32 %v2307_v48  ;;  %v2331_v41 = vrot.slane %v2307_v48, 6 }
0x1d18   :  { %v2316_v63 = vpop.permute.xlu2 %2315 }
0x1d19   :  { %v3289_v26 = vpop.eup %3288 }
0x1d1a   :  { %2310 = vrot.lane.b32.xlu1 %v3289_v26, %s3526_s27 }
0x1d20   :  { %v2327_v54 = vpop.permute.xlu2 %2326 }
0x1d28   :  { %v2336_v50 = vpop.permute.xlu2 %2335 }
0x1d50   :  { %v2265_v10 = vpop.permute.xlu1 %2264 }
0x1d51   :  { %v4369_v51 = vadd.f32 %v2265_v10, %v2257_v60 }
0x1d53   :  { %3290 = vtanh.f32 %v4369_v51 }
0x1d59   :  { %v3291_v32 = vpop.eup %3290 }
0x1d5a   :  { %2270 = vrot.lane.b32.xlu0 %v3291_v32, %s3526_s27 }
0x1d8c   :  { %v2311_v0 = vpop.permute.xlu1 %2310 }
0x1d8d   :  { %v2313_v7 = vmul.f32 %v2311_v0, %v2291_v38 }
0x1d8f   :  { %v2321_v25 = vrot.slane %v2313_v7, 6 }
0x1d91   :  { %2322 = vrot.lane.b32.xlu1 %v2321_v25, %s3529_s5 }
0x1d99   :  { %2332 = vrot.lane.b32.xlu1 %v2331_v41, %s3530_s1 }
0x1dcc   :  { %v2271_v15 = vpop.permute.xlu0 %2270 }
0x1dcd   :  { %v4375_v16 = vmul.f32 %v2271_v15, %v2250_v31 }
0x1dcf   :  { %v4380_v13 = vsel %vm847_vm2, %v4375_v16, %v2316_v63 }
0x1dd0   :  { %v2351_v14 = vpack.c.bf16 %v4380_v13, %v4380_v13 }
0x1dd2   :  { %2353 = vrot.lane.b32.xlu0 %v2351_v14, %s3529_s5 }
0x1e03   :  { %v4385_v22 = vpop.permute.xlu1 %2322 }
0x1e04   :  { %v4390_v57 = vsel %vm830_vm3, %v4385_v22, %v2327_v54 }
0x1e05   :  { %v2375_v33 = vpack.c.bf16 %v4390_v57, %v4390_v57 }
0x1e07   :  { %3015 = vmatmul.msk.bf16.vlgmr.msrb.gmra.mxu3 %vm211_vm12, %v2375_v33 }
0x1e0b   :  { %v2333_v20 = vpop.permute.xlu1 %2332 }
0x1e0c   :  { %v4397_v46 = vsel %vm830_vm3, %v2333_v20, %v2336_v50  ;;  %v2319_v20 = vsel %vm847_vm2, %v4369_v51, %v4366_v52 }
0x1e0d   :  { %v2457_v30 = vrot.slane %v4397_v46, 4 }
0x1e0f   :  { %2458 = vrot.lane.b32.xlu2 %v2457_v30, %s3529_s5  ;;  %v2417_v30 = vrot.slane %v2319_v20, 6 }
0x1e44   :  { %v2354_v34 = vpop.permute.xlu0 %2353 }
0x1e45   :  { %3014 = vmatmul.msk.bf16.vlgmr.msrb.gmra.mxu2 %vm211_vm12, %v2354_v34 }
0x1e8a   :  { %v2388_v40 = vpop.f32.mrf.mxu3 }
0x1e8b   :  { %v2393_v38 = vrot.slane %v2388_v40, 4 }
0x1e8d   :  { %v2395_v49 = vadd.f32 %v2393_v38, %v4161_v11 }
0x1e8f   :  { %v3017_v53 = vmul.f32 -1.442695, %v2395_v49 }
0x1e92   :  { %v2390_v24 = vpop.f32.mrf.mxu3 }
0x1ec8   :  { %v2367_v17 = vpop.f32.mrf.mxu2 }
0x1ec9   :  { %v2372_v35 = vrot.slane %v2367_v17, 6  ;;  %v2459_v17 = vpop.permute.xlu2 %2458 }
0x1ecb   :  { %v2374_v36 = vadd.f32 %v2372_v35, %v4352_v45 }
0x1ecd   :  { %3292 = vtanh.f32 %v2374_v36  ;;  %v3016_v39 = vmul.f32 -1.442695, %v2374_v36 }
0x1ece   :  { %3294 = vtanh.f32 %v2395_v49 }
0x1ecf   :  { %3296 = vpow2.f32 %v3016_v39 }
0x1ed0   :  { %v2369_v43 = vpop.f32.mrf.mxu2  ;;  %3298 = vpow2.f32 %v3017_v53 }
0x1ed3   :  { %v3293_v6 = vpop.eup %3292 }
0x1ed4   :  { %2421 = vrot.lane.b32.xlu0 %v3293_v6, %s3526_s27  ;;  %v3295_v61 = vpop.eup %3294 }
0x1ed5   :  { %v3297_v42 = vpop.eup %3296 }
0x1ed6   :  { %v2399_v3 = vadd.f32 1.0, %v3297_v42  ;;  %v3299_v23 = vpop.eup %3298 }
0x1ed7   :  { %v2439_v56 = vadd.f32 1.0, %v3299_v23 }
0x1ed8   :  { %3300 = vrcp.f32 %v2399_v3  ;;  %v2411_v29 = vand.u32 2147483648, %v2399_v3  ;;  %vm2405_vm7 = vweird.f32 %v2399_v3  ;;  %v2409_v48 = vand.u32 2147483647, %v2399_v3 }
0x1ed9   :  { %3302 = vrcp.f32 %v2439_v56  ;;  %v2451_v41 = vand.u32 2147483648, %v2439_v56  ;;  %vm2445_vm8 = vweird.f32 %v2439_v56  ;;  %v2449_v15 = vand.u32 2147483647, %v2439_v56 }
0x1eda   :  { %v2412_v10 = vor.u32 1.1754944e-38, %v2411_v29  ;;  %vm2410_vm0 = vcmp.eq.f32.partialorder %v2409_v48, 8.507059e+37 }
0x1edb   :  { %v2452_v14 = vor.u32 1.1754944e-38, %v2451_v41  ;;  %vm2450_vm5 = vcmp.eq.f32.partialorder %v2449_v15, 8.507059e+37 }
0x1edc   :  { %2463 = vrot.lane.b32.xlu0 %v3295_v61, %s3526_s27 }
0x1ede   :  { %v3301_v44 = vpop.eup %3300 }
0x1edf   :  { %v2401_v58 = vmul.f32 %v3301_v44, %v2399_v3  ;;  %v3303_v18 = vpop.eup %3302  ;;  %vm2406_vm6 = vweird.f32 %v3301_v44 }
0x1ee0   :  { %v2441_v55 = vmul.f32 %v3303_v18, %v2439_v56  ;;  %vm2407_vm13 = vmor %vm2405_vm7, %vm2406_vm6  ;;  %vm2446_vm1 = vweird.f32 %v3303_v18 }
0x1ee1   :  { %v2402_v9 = vsub.f32 1.0, %v2401_v58  ;;  %vm2447_vm4 = vmor %vm2445_vm8, %vm2446_vm1 }
0x1ee2   :  { %v2442_v8 = vsub.f32 1.0, %v2441_v55 }
0x1ee3   :  { %v2403_v31 = vmul.f32 %v3301_v44, %v2402_v9 }
0x1ee4   :  { %v2443_v60 = vmul.f32 %v3303_v18, %v2442_v8 }
0x1ee5   :  { %v2404_v2 = vadd.f32 %v3301_v44, %v2403_v31 }
0x1ee6   :  { %v2444_v25 = vadd.f32 %v3303_v18, %v2443_v60 }
0x1ee7   :  { %v2408_v26 = vsel %vm2407_vm13, %v3301_v44, %v2404_v2 }
0x1ee8   :  { %v2413_v0 = vsel %vm2410_vm0, %v2412_v10, %v2408_v26  ;;  %v2448_v63 = vsel %vm2447_vm4, %v3303_v18, %v2444_v25 }
0x1ee9   :  { %v2453_v33 = vsel %vm2450_vm5, %v2452_v14, %v2448_v63  ;;  %v2419_v34 = vmul.f32 %v2417_v30, %v2413_v0 }
0x1eea   :  { %v2461_v35 = vmul.f32 %v2459_v17, %v2453_v33 }
0x1f46   :  { %v2422_v32 = vpop.permute.xlu0 %2421 }
0x1f47   :  { %v2424_v7 = vmul.f32 %v2422_v32, %v2413_v0 }
0x1f49   :  { %2426 = vrot.lane.b32.xlu1 %v2424_v7, %s3529_s5 }
0x1f4e   :  { %v2464_v54 = vpop.permute.xlu0 %2463 }
0x1f4f   :  { %v2466_v50 = vmul.f32 %v2464_v54, %v2453_v33 }
0x1f51   :  { %2468 = vrot.lane.b32.xlu0 %v2466_v50, %s3529_s5 }
0x1fbb   :  { %v2427_v40 = vpop.permute.xlu1 %2426 }
0x1fbc   :  { %v2429_v24 = vadd.f32 %v2427_v40, %v2419_v34 }
0x1fbe   :  { %3304 = vtanh.f32 %v2429_v24  ;;  %v2489_v42 = vrot.slane %v2429_v24, 2 }
0x1fc3   :  { %v2469_v36 = vpop.permute.xlu0 %2468 }
0x1fc4   :  { %v3305_v38 = vpop.eup %3304  ;;  %v2471_v43 = vadd.f32 %v2469_v36, %v2461_v35 }
0x1fc5   :  { %2432 = vrot.lane.b32.xlu1 %v3305_v38, %s3526_s27 }
0x1fc6   :  { %3306 = vtanh.f32 %v2471_v43  ;;  %v2504_v3 = vrot.slane %v2471_v43, 4 }
0x1fcc   :  { %v3307_v49 = vpop.eup %3306 }
0x1fcd   :  { %2474 = vrot.lane.b32.xlu2 %v3307_v49, %s3526_s27  ;;  %2484 = vrot.lane.b32.xlu1 %v4380_v13, %s3529_s5 }
0x1fd5   :  { %2493 = vrot.lane.b32.xlu1 %v2319_v20, %s3530_s1 }
0x2027   :  { %v2475_v52 = vpop.permute.xlu2 %2474 }
0x2028   :  { %v2477_v51 = vmul.f32 %v2475_v52, %v2453_v33 }
0x202a   :  { %v2498_v6 = vrot.slane %v2477_v51, 4 }
0x202c   :  { %2499 = vrot.lane.b32.xlu2 %v2498_v6, %s3529_s5 }
0x2037   :  { %v2433_v61 = vpop.permute.xlu1 %2432 }
0x2038   :  { %v2435_v39 = vmul.f32 %v2433_v61, %v2413_v0 }
0x203a   :  { %v2479_v53 = vrot.slane %v2435_v39, 2 }
0x203c   :  { %2480 = vrot.lane.b32.xlu0 %v2479_v53, %s3529_s5 }
0x203f   :  { %v2485_v44 = vpop.permute.xlu1 %2484 }
0x2044   :  { %2490 = vrot.lane.b32.xlu0 %v2489_v42, %s3530_s1 }
0x2047   :  { %v2494_v41 = vpop.permute.xlu1 %2493 }
0x204c   :  { %2505 = vrot.lane.b32.xlu0 %v2504_v3, %s3530_s1 }
0x2086   :  { %v4421_v23 = vpop.permute.xlu2 %2499 }
0x2087   :  { %v4427_v13 = vsel %vm666_vm14, %v4421_v23, %v4390_v57 }
0x2088   :  { %v2538_v56 = vpack.c.bf16 %v4427_v13, %v4427_v13 }
0x208a   :  { %3019 = vmatmul.msk.bf16.vlgmr.msra.gmra.mxu1 %vm211_vm12, %v2538_v56 }
0x20ae   :  { %v4432_v58 = vpop.permute.xlu0 %2480 }
0x20af   :  { %v4437_v9 = vsel %vm683_vm15, %v4432_v58, %v2485_v44  ;;  %v2509_v59 = vsel %vm683_vm15, %v4432_v58, 0.0  ;;  %v2511_v58 = vsel %vm666_vm14, %v4421_v23, 0.0 }
0x20b0   :  { %v2517_v18 = vpack.c.bf16 %v4437_v9, %v4437_v9 }
0x20b2   :  { %3018 = vmatmul.msk.bf16.vlgmr.msra.gmra.mxu0 %vm211_vm12, %v2517_v18 }
0x20b6   :  { %v2491_v55 = vpop.permute.xlu0 %2490 }
0x20b7   :  { %v4455_v15 = vsel %vm683_vm15, %v2491_v55, %v2494_v41 }
0x20be   :  { %v2506_v48 = vpop.permute.xlu0 %2505 }
0x20bf   :  { %v4447_v26 = vsel %vm666_vm14, %v2506_v48, %v4397_v46  ;;  %v2580_v46 = vrot.slane %v4455_v15, 4 }
0x20c0   :  { %v2622_v60 = vrot.slane %v4447_v26, 6 }
0x2107   :  { %v2551_v57 = vpop.f32.mrf.mxu1 }
0x2108   :  { %v2556_v31 = vrot.slane %v2551_v57, 6 }
0x210a   :  { %v2558_v2 = vadd.f32 %v2556_v31, %v4161_v11 }
0x210c   :  { %3308 = vtanh.f32 %v2558_v2  ;;  %v3021_v63 = vmul.f32 -1.442695, %v2558_v2 }
0x210f   :  { %v2553_v8 = vpop.f32.mrf.mxu1 }
0x2112   :  { %v3309_v29 = vpop.eup %3308 }
0x2113   :  { %2628 = vrot.lane.b32.xlu1 %v3309_v29, %s3526_s27 }
0x211b   :  { %2623 = vrot.lane.b32.xlu1 %v2622_v60, %s3529_s5 }
0x212f   :  { %v2530_v10 = vpop.f32.mrf.mxu0 }
0x2130   :  { %v2535_v32 = vrot.slane %v2530_v10, 4 }
0x2132   :  { %v2537_v0 = vadd.f32 %v2535_v32, %v4352_v45 }
0x2134   :  { %3310 = vtanh.f32 %v2537_v0  ;;  %v3020_v33 = vmul.f32 -1.442695, %v2537_v0 }
0x2135   :  { %3312 = vpow2.f32 %v3021_v63 }
0x2137   :  { %v2532_v7 = vpop.f32.mrf.mxu0 }
0x213a   :  { %v3311_v25 = vpop.eup %3310 }
0x213b   :  { %2586 = vrot.lane.b32.xlu2 %v3311_v25, %s3526_s27  ;;  %v3313_v14 = vpop.eup %3312 }
0x213c   :  { %v2604_v54 = vadd.f32 1.0, %v3313_v14 }
0x213e   :  { %3314 = vrcp.f32 %v2604_v54  ;;  %v2616_v36 = vand.u32 2147483648, %v2604_v54  ;;  %vm2610_vm7 = vweird.f32 %v2604_v54  ;;  %v2614_v38 = vand.u32 2147483647, %v2604_v54 }
0x213f   :  { %3316 = vpow2.f32 %v3020_v33 }
0x2140   :  { %v2617_v52 = vor.u32 1.1754944e-38, %v2616_v36  ;;  %vm2615_vm0 = vcmp.eq.f32.partialorder %v2614_v38, 8.507059e+37 }
0x2143   :  { %2581 = vrot.lane.b32.xlu2 %v2580_v46, %s3529_s5 }
0x2144   :  { %v3315_v50 = vpop.eup %3314 }
0x2145   :  { %v3317_v20 = vpop.eup %3316  ;;  %v2606_v30 = vmul.f32 %v3315_v50, %v2604_v54  ;;  %vm2611_vm6 = vweird.f32 %v3315_v50 }
0x2146   :  { %v2562_v34 = vadd.f32 1.0, %v3317_v20  ;;  %vm2612_vm13 = vmor %vm2610_vm7, %vm2611_vm6 }
0x2147   :  { %v2607_v40 = vsub.f32 1.0, %v2606_v30 }
0x2148   :  { %3318 = vrcp.f32 %v2562_v34  ;;  %v2574_v3 = vand.u32 2147483648, %v2562_v34  ;;  %vm2568_vm8 = vweird.f32 %v2562_v34  ;;  %v2572_v56 = vand.u32 2147483647, %v2562_v34 }
0x2149   :  { %v2608_v24 = vmul.f32 %v3315_v50, %v2607_v40 }
0x214a   :  { %v2575_v18 = vor.u32 1.1754944e-38, %v2574_v3  ;;  %vm2573_vm5 = vcmp.eq.f32.partialorder %v2572_v56, 8.507059e+37 }
0x214b   :  { %v2609_v17 = vadd.f32 %v3315_v50, %v2608_v24 }
0x214d   :  { %v2613_v43 = vsel %vm2612_vm13, %v3315_v50, %v2609_v17 }
0x214e   :  { %v3319_v35 = vpop.eup %3318  ;;  %v2618_v51 = vsel %vm2615_vm0, %v2617_v52, %v2613_v43 }
0x214f   :  { %v2564_v49 = vmul.f32 %v3319_v35, %v2562_v34  ;;  %vm2569_vm1 = vweird.f32 %v3319_v35 }
0x2150   :  { %vm2570_vm4 = vmor %vm2568_vm8, %vm2569_vm1 }
0x2151   :  { %v2565_v39 = vsub.f32 1.0, %v2564_v49 }
0x2153   :  { %v2566_v53 = vmul.f32 %v3319_v35, %v2565_v39 }
0x2155   :  { %v2567_v42 = vadd.f32 %v3319_v35, %v2566_v53 }
0x2157   :  { %v2571_v44 = vsel %vm2570_vm4, %v3319_v35, %v2567_v42 }
0x2158   :  { %v2576_v31 = vsel %vm2573_vm5, %v2575_v18, %v2571_v44  ;;  %vm4588_vm5 = vcmask 517376  }
0x2185   :  { %v2629_v6 = vpop.permute.xlu1 %2628 }
0x2186   :  { %v2631_v61 = vmul.f32 %v2629_v6, %v2618_v51 }
0x2188   :  { %2633 = vrot.lane.b32.xlu2 %v2631_v61, %s3529_s5 }
0x218d   :  { %v2624_v8 = vpop.permute.xlu1 %2623 }
0x218e   :  { %v2626_v29 = vmul.f32 %v2624_v8, %v2618_v51 }
0x2195   :  { %v2587_v57 = vpop.permute.xlu2 %2586 }
0x2196   :  { %v2589_v55 = vmul.f32 %v2587_v57, %v2576_v31 }
0x2198   :  { %2591 = vrot.lane.b32.xlu0 %v2589_v55, %s3529_s5 }
0x219d   :  { %v2582_v2 = vpop.permute.xlu2 %2581 }
0x219e   :  { %v2584_v32 = vmul.f32 %v2582_v2, %v2576_v31 }
0x21e2   :  { %v2634_v48 = vpop.permute.xlu2 %2633 }
0x21e3   :  { %v2636_v60 = vadd.f32 %v2634_v48, %v2626_v29 }
0x21e5   :  { %3320 = vtanh.f32 %v2636_v60  ;;  %v2662_v54 = vrot.slane %v2636_v60, 2 }
0x21eb   :  { %v3321_v10 = vpop.eup %3320 }
0x21ec   :  { %2639 = vrot.lane.b32.xlu1 %v3321_v10, %s3526_s27 }
0x220a   :  { %v2592_v0 = vpop.permute.xlu0 %2591 }
0x220b   :  { %v2594_v7 = vadd.f32 %v2592_v0, %v2584_v32 }
0x220d   :  { %3322 = vtanh.f32 %v2594_v7  ;;  %v2650_v25 = vrot.slane %v2594_v7, 4 }
0x220f   :  { %2651 = vrot.lane.b32.xlu1 %v2650_v25, %s3530_s1 }
0x2213   :  { %v3323_v41 = vpop.eup %3322 }
0x2214   :  { %2597 = vrot.lane.b32.xlu0 %v3323_v41, %s3526_s27 }
0x225e   :  { %v2640_v46 = vpop.permute.xlu1 %2639 }
0x225f   :  { %v2642_v63 = vmul.f32 %v2640_v46, %v2618_v51 }
0x2261   :  { %v2656_v14 = vrot.slane %v2642_v63, 2 }
0x2263   :  { %2657 = vrot.lane.b32.xlu0 %v2656_v14, %s3529_s5 }
0x226b   :  { %2663 = vrot.lane.b32.xlu0 %v2662_v54, %s3530_s1 }
0x2286   :  { %v2598_v33 = vpop.permute.xlu0 %2597 }
0x2287   :  { %v2600_v50 = vmul.f32 %v2598_v33, %v2576_v31 }
0x2289   :  { %v2644_v20 = vrot.slane %v2600_v50, 4 }
0x228b   :  { %2645 = vrot.lane.b32.xlu2 %v2644_v20, %s3529_s5 }
0x22d5   :  { %v4467_v30 = vpop.permute.xlu0 %2657 }
0x22d6   :  { %v2660_v34 = vsel %vm495_vm9, %v4467_v30, %v4427_v13  ;;  %v2669_v21 = vsel %vm495_vm9, %v4467_v30, 0.0 }
0x22d7   :  { %v2696_v40 = vpack.c.bf16 %v2660_v34, %v2660_v34 }
0x22d9   :  { %3023 = vmatmul.msk.bf16.vlgmr.msra.gmra.mxu3 %vm211_vm12, %v2696_v40 }
0x22dd   :  { %v2664_v13 = vpop.permute.xlu0 %2663 }
0x22de   :  { %v2666_v51 = vsel %vm495_vm9, %v2664_v13, %v4447_v26 }
0x22e5   :  { %v4474_v24 = vpop.permute.xlu2 %2645 }
0x22e6   :  { %v2648_v17 = vsel %vm515_vm10, %v4474_v24, %v4437_v9  ;;  %v2667_v12 = vsel %vm515_vm10, %v4474_v24, 0.0 }
0x22e7   :  { %v2675_v35 = vpack.c.bf16 %v2648_v17, %v2648_v17  ;;  %v2185_v17 = vsel %vm847_vm2, %v4333_v62, 0.0 }
0x22e9   :  { %3022 = vmatmul.msk.bf16.vlgmr.msra.gmra.mxu2 %vm211_vm12, %v2675_v35  ;;  %v2345_v35 = vsel %vm830_vm3, %v4385_v22, 0.0  ;;  %vm4589_vm3 = vmmov %vm4588_vm5 }
0x22ea   :  { %vm4591_vm9 = vmmov %vm4589_vm3 }
0x22eb   :  { %vm4595_vm15 = vmmov %vm4589_vm3 }
0x22ec   :  { %vm4600_vm14 = vmmov %vm4589_vm3 }
0x235c   :  { %v2709_v36 = vpop.f32.mrf.mxu3 }
0x235d   :  { %v2713_v38 = vadd.f32 %v2709_v36, %v4161_v11  ;;  %v2652_v11 = vpop.permute.xlu1 %2651 }
0x235e   :  { %v2654_v53 = vsel %vm515_vm10, %v2652_v11, %v4455_v15  ;;  %v1879_v11 = vsel %vm515_vm10, %v4236_v4, 0.0  ;;  %vm4598_vm10 = vcmp.eq.s32.totalorder %v3711_v37, 1 }
0x235f   :  { %3324 = vtanh.f32 %v2713_v38  ;;  %v2735_v42 = vrot.slane %v2654_v53, 2  ;;  %v3025_v26 = vmul.f32 -1.442695, %v2713_v38 }
0x2364   :  { %v2711_v43 = vpop.f32.mrf.mxu3 }
0x2365   :  { %v3325_v49 = vpop.eup %3324 }
0x2366   :  { %2782 = vrot.lane.b32.xlu1 %v3325_v49, %s3526_s27 }
0x236c   :  { %v2688_v52 = vpop.f32.mrf.mxu2 }
0x236d   :  { %v2693_v6 = vrot.slane %v2688_v52, 2 }
0x236e   :  { %2777 = vrot.lane.b32.xlu1 %v2666_v51, %s3529_s5 }
0x236f   :  { %v2695_v9 = vadd.f32 %v2693_v6, %v4352_v45 }
0x2371   :  { %3326 = vtanh.f32 %v2695_v9  ;;  %v3024_v3 = vmul.f32 -1.442695, %v2695_v9 }
0x2373   :  { %3328 = vpow2.f32 %v3024_v3 }
0x2374   :  { %v2690_v61 = vpop.f32.mrf.mxu2  ;;  %3330 = vpow2.f32 %v3025_v26 }
0x2375   :  { %v2339_v61 = vsel %vm847_vm2, %v4375_v16, 0.0  ;;  %vm4592_vm2 = vcmask 254976  }
0x2377   :  { %v3327_v39 = vpop.eup %3326 }
0x2378   :  { %2741 = vrot.lane.b32.xlu2 %v3327_v39, %s3526_s27 }
0x2379   :  { %v3329_v56 = vpop.eup %3328 }
0x237a   :  { %v2717_v44 = vadd.f32 1.0, %v3329_v56  ;;  %v3331_v45 = vpop.eup %3330 }
0x237b   :  { %v2759_v18 = vadd.f32 1.0, %v3331_v45  ;;  %v3065_v45 = vld [vmem:[#allocation14 + $0x18] sm:$0xff] }
0x237c   :  { %3332 = vrcp.f32 %v2717_v44  ;;  %v2729_v60 = vand.u32 2147483648, %v2717_v44  ;;  %vm2723_vm6 = vweird.f32 %v2717_v44  ;;  %v2727_v10 = vand.u32 2147483647, %v2717_v44  ;;  %2858 = vmatpush.bf16.msrb.mxu0 %v3065_v45 }
0x237d   :  { %3334 = vrcp.f32 %v2759_v18  ;;  %v2771_v63 = vand.u32 2147483648, %v2759_v18  ;;  %vm2765_vm1 = vweird.f32 %v2759_v18  ;;  %v2769_v54 = vand.u32 2147483647, %v2759_v18 }
0x237e   :  { %v2730_v7 = vor.u32 1.1754944e-38, %v2729_v60  ;;  %vm2728_vm13 = vcmp.eq.f32.partialorder %v2727_v10, 8.507059e+37 }
0x237f   :  { %v2772_v50 = vor.u32 1.1754944e-38, %v2771_v63  ;;  %vm2770_vm4 = vcmp.eq.f32.partialorder %v2769_v54, 8.507059e+37 }
0x2380   :  { %2736 = vrot.lane.b32.xlu2 %v2735_v42, %s3529_s5 }
0x2382   :  { %v3333_v57 = vpop.eup %3332 }
0x2383   :  { %v2719_v31 = vmul.f32 %v3333_v57, %v2717_v44  ;;  %v3335_v55 = vpop.eup %3334  ;;  %vm2724_vm12 = vweird.f32 %v3333_v57 }
0x2384   :  { %v2761_v8 = vmul.f32 %v3335_v55, %v2759_v18  ;;  %vm2725_vm7 = vmor %vm2723_vm6, %vm2724_vm12  ;;  %vm2766_vm0 = vweird.f32 %v3335_v55  ;;  %v3064_v18 = vld [vmem:[#allocation14 + $0x10] sm:$0xff] }
0x2385   :  { %v2720_v2 = vsub.f32 1.0, %v2719_v31  ;;  %vm2767_vm8 = vmor %vm2765_vm1, %vm2766_vm0  ;;  %2859 = vmatpush.bf16.msrb.mxu0 %v3064_v18  ;;  %vm4601_vm1 = vcmask 523264  }
0x2386   :  { %v2762_v15 = vsub.f32 1.0, %v2761_v8  ;;  %vm4590_vm12 = vmmov %vm4589_vm3 }
0x2387   :  { %v2721_v29 = vmul.f32 %v3333_v57, %v2720_v2  ;;  %vm4593_vm6 = vmmov %vm4592_vm2  ;;  %v3083_v2 = vld [vmem:[%s4571_s10] ss:$0 sm:$0xff] }
0x2388   :  { %v2763_v32 = vmul.f32 %v3335_v55, %v2762_v15  ;;  %vm4599_vm0 = vmmov %vm4592_vm2 }
0x2389   :  { %v2722_v48 = vadd.f32 %v3333_v57, %v2721_v29 }
0x238a   :  { %v2764_v25 = vadd.f32 %v3335_v55, %v2763_v32 }
0x238b   :  { %v2726_v0 = vsel %vm2725_vm7, %v3333_v57, %v2722_v48  ;;  %vm4596_vm7 = vmmov %vm4592_vm2  ;;  %v3063_v57 = vld [vmem:[#allocation14 + $0x8] sm:$0xff] }
0x238c   :  { %v2731_v46 = vsel %vm2728_vm13, %v2730_v7, %v2726_v0  ;;  %v2768_v33 = vsel %vm2767_vm8, %v3335_v55, %v2764_v25  ;;  %vm4597_vm13 = vmmov %vm4589_vm3  ;;  %2860 = vmatpush.bf16.msrb.mxu0 %v3063_v57 }
0x238d   :  { %v2773_v20 = vsel %vm2770_vm4, %v2772_v50, %v2768_v33 }
0x2390   :  { %2861 = vmatpush.bf16.msrb.mxu0 %v3062_v1 }
0x23d2   :  { %v2742_v41 = vpop.permute.xlu2 %2741 }
0x23d3   :  { %v2744_v14 = vmul.f32 %v2742_v41, %v2731_v46 }
0x23d5   :  { %2746 = vrot.lane.b32.xlu0 %v2744_v14, %s3529_s5 }
0x23d8   :  { %v2783_v34 = vpop.permute.xlu1 %2782 }
0x23d9   :  { %v2785_v40 = vmul.f32 %v2783_v34, %v2773_v20 }
0x23da   :  { %v2737_v36 = vpop.permute.xlu2 %2736 }
0x23db   :  { %2787 = vrot.lane.b32.xlu2 %v2785_v40, %s3529_s5  ;;  %v2739_v22 = vmul.f32 %v2737_v36, %v2731_v46 }
0x23e0   :  { %v2778_v38 = vpop.permute.xlu1 %2777 }
0x23e1   :  { %v2780_v43 = vmul.f32 %v2778_v38, %v2773_v20 }
0x23e3   :  { %1719 = vrot.lane.b32.xlu2 %v4190_v19, %s3529_s5 }
0x23eb   :  { %2187 = vrot.lane.b32.xlu2 %v2185_v17, %s3526_s27 }
0x23f3   :  { %2347 = vrot.lane.b32.xlu2 %v2345_v35, %s3529_s5 }
0x2435   :  { %v2788_v49 = vpop.permute.xlu2 %2787 }
0x2436   :  { %v2790_v13 = vadd.f32 %v2788_v49, %v2780_v43 }
0x2438   :  { %3336 = vtanh.f32 %v2790_v13 }
0x243d   :  { %v1720_v52 = vpop.permute.xlu2 %1719 }
0x243e   :  { %v3337_v19 = vpop.eup %3336  ;;  %1722 = vst.msk [vmem:[#allocation2 + $0xe] sm:$0x3] %vm4588_vm5, %v1720_v52 }
0x243f   :  { %2793 = vrot.lane.b32.xlu1 %v3337_v19, %s3526_s27 }
0x2445   :  { %v2188_v62 = vpop.permute.xlu2 %2187 }
0x2446   :  { %2190 = vst.msk [vmem:[#allocation2 + $0x8] sm:$0x3] %vm4589_vm3, %v2188_v62 }
0x2447   :  { %v2747_v51 = vpop.permute.xlu0 %2746  ;;  %2039 = vrot.lane.b32.xlu1 %v2037_v5, %s3529_s5 }
0x2448   :  { %v2749_v6 = vadd.f32 %v2747_v51, %v2739_v22 }
0x244a   :  { %3338 = vtanh.f32 %v2749_v6 }
0x244d   :  { %v2348_v9 = vpop.permute.xlu2 %2347 }
0x244e   :  { %2350 = vst.msk [vmem:[#allocation2 + $0x6] sm:$0x3] %vm4590_vm12, %v2348_v9 }
0x244f   :  { %2341 = vrot.lane.b32.xlu1 %v2339_v61, %s3529_s5 }
0x2450   :  { %v3339_v39 = vpop.eup %3338 }
0x2451   :  { %2752 = vrot.lane.b32.xlu0 %v3339_v39, %s3526_s27 }
0x2457   :  { %2671 = vrot.lane.b32.xlu1 %v2669_v21, %s3529_s5 }
0x2459   :  { %1881 = vrot.lane.b32.xlu0 %v1879_v11, %s3529_s5 }
0x24b1   :  { %v2794_v28 = vpop.permute.xlu1 %2793 }
0x24b2   :  { %v2796_v16 = vmul.f32 %v2794_v28, %v2773_v20 }
0x24b4   :  { %v2804_v53 = vsel %vm332_vm11, %v2796_v16, 0.0  ;;  %vm4594_vm11 = vmmov %vm4589_vm3 }
0x24b5   :  { %2806 = vrot.lane.b32.xlu2 %v2804_v53, %s3526_s27 }
0x24b9   :  { %v2040_v42 = vpop.permute.xlu1 %2039 }
0x24ba   :  { %2042 = vst.msk [vmem:[#allocation2 + $0xa] sm:$0x3] %vm4591_vm9, %v2040_v42 }
0x24bb   :  { %2510 = vst.msk [vmem:[#allocation2 + $0xa] sm:$0x3] %vm4592_vm2, %v2509_v59 }
0x24c1   :  { %v2342_v30 = vpop.permute.xlu1 %2341 }
0x24c2   :  { %2344 = vst.msk [vmem:[#allocation2 + $0x8] sm:$0x3] %vm4593_vm6, %v2342_v30 }
0x24c3   :  { %v2753_v4 = vpop.permute.xlu0 %2752 }
0x24c4   :  { %v2755_v3 = vmul.f32 %v2753_v4, %v2731_v46 }
0x24c6   :  { %v2798_v26 = vrot.slane %v2755_v3, 6 }
0x24c8   :  { %2799 = vrot.lane.b32.xlu0 %v2798_v26, %s3529_s5 }
0x24c9   :  { %v2672_v27 = vpop.permute.xlu1 %2671 }
0x24ca   :  { %2674 = vst.msk [vmem:[#allocation2 + $0x2] sm:$0x3] %vm4594_vm11, %v2672_v27 }
0x24cb   :  { %v1882_v56 = vpop.permute.xlu0 %1881 }
0x24cc   :  { %1884 = vst.msk [vmem:[#allocation2 + $0xc] sm:$0x3] %vm4595_vm15, %v1882_v56 }
0x24cd   :  { %2668 = vst.msk [vmem:[#allocation2 + $0xc] sm:$0x3] %vm4596_vm7, %v2667_v12 }
0x24d0   :  { %2513 = vrot.lane.b32.xlu0 %v2511_v58, %s3529_s5 }
0x250f   :  { %v2807_v44 = vpop.permute.xlu2 %2806 }
0x2510   :  { %2809 = vst.msk [vmem:[#allocation2] sm:$0x3] %vm4597_vm13, %v2807_v44 }
0x253a   :  { %v2800_v24 = vpop.permute.xlu0 %2799 }
0x253b   :  { %v2802_v31 = vsel %vm4598_vm10, %v2800_v24, 0.0 }
0x253c   :  { %2803 = vst.msk [vmem:[#allocation2 + $0xe] sm:$0x3] %vm4599_vm0, %v2802_v31 }
0x2542   :  { %v2514_v47 = vpop.permute.xlu0 %2513 }
0x2543   :  { %2516 = vst.msk [vmem:[#allocation2 + $0x4] sm:$0x3] %vm4600_vm14, %v2514_v47 }
0x254a   :  { %v2813_v23 = vld [vmem:[%s2812_s13] sm:$0x3] }
0x254b   :  { %v2814_v55 = vpack.c.bf16 %v2813_v23, %v2813_v23 }
0x254d   :  { %3043 = vmatmul.msk.bf16.vlgmr.msrb.gmra.mxu0 %vm4601_vm1, %v2814_v55 }
0x25ca   :  { %v2863_v37 = vpop.f32.mrf.mxu0 }
0x25cb   :  { %v2864_v8 = vadd.f32 %v3083_v2, %v2863_v37 }
0x25cd   :  { %2867 = vst [vmem:[#allocation16] sm:$0x3] %v2864_v8 }
0x25ce   :  { %2878 = dma.vmem_to_hbm [thread:$0]  %s2874_s2, 32, %s2876_s19, [#allocation7]  }
0x25d2   :  { %v2865_v29 = vpop.f32.mrf.mxu0 }
0x25d3   :  { %3516 = dma.done.wait [#allocation7], 32  }
0x25d4   :  { %3517 = vsyncadd [#allocation7], 4294967264 }
0x25d5   :  { %2883 = vsyncpa [#allocation6], 1 }
0x25d6   :  { %2884 = vsyncpa [#allocation9], 1 }
0x25d7   :  { %2885 = vsyncpa [#allocation12], 1 }
0x25d8   :  { %2886 = vsyncpa [#allocation15], 1 }
0x25d9   :  { %2887 = vsyncpa [#allocation7], 1 }

</bundles_post_ra>
